<compile_context>
chip_gen: v5e
topology: v5e:2x2
jax: 0.10.0
libtpu: 0.0.40
codegen_flags: <defaults>
</compile_context>

<pallas_src>
import functools

import jax
import jax.numpy as jnp
from jax.experimental import pallas as pl
from jax.experimental.pallas import tpu as pltpu

LANES = 128
SUBLANES = 8


def _residual_kernel(x_ref, w1_ref, w2_ref, o_ref, patch_ref, *, H, Wp8, Cp):
    """One batch element, channels-last, lane-dense (Cp = multiple of 128).

    x_ref    : ((H+2)*Wp8, Cp)   zero-padded image, spatial flattened, channels on lanes
    w1_ref   : (9*Cp, Cp)        3x3 conv as one matmul matrix; rows t*Cp:(t+1)*Cp are tap t = dy*3+dx
    w2_ref   : (Cp, Cp)          1x1 conv as a plain matmul matrix
    o_ref    : (H*Wp8, Cp)       output slab; columns w >= W of each image row are junk (dropped by wrapper)
    patch_ref: (H*Wp8, 9*Cp)     im2col scratch (VMEM)
    """
    L = H * Wp8  # output-slab rows; multiple of 8 since Wp8 is

    # ---- Build the im2col patch slab: tap t occupies lanes [t*Cp, (t+1)*Cp). ----
    for dy in range(3):
        # 8-aligned sublane slice (Wp8 % 8 == 0  =>  dy*Wp8 % 8 == 0).
        base = x_ref[dy * Wp8:dy * Wp8 + L, :]
        for dx in range(3):
            t = dy * 3 + dx
            if dx == 0:
                slab = base
            else:
                # slab[r] = base[(r + dx) % L]  (jnp.roll semantics, XLU rotate).
                # Wrapped rows (r >= L-dx) only touch halo columns w >= W,
                # which the wrapper discards.
                slab = pltpu.roll(base, shift=L - dx, axis=0)
            patch_ref[:, t * Cp:(t + 1) * Cp] = slab

    # ---- 3x3 conv == one (L, 9*Cp) @ (9*Cp, Cp) MXU matmul, f32 accumulation. ----
    acc = jnp.dot(patch_ref[...], w1_ref[...], preferred_element_type=jnp.float32)
    h = jnp.maximum(acc, 0.0).astype(x_ref.dtype)          # ReLU (functional), native MXU operand dtype
    y = jnp.dot(h, w2_ref[...], preferred_element_type=jnp.float32)  # 1x1 conv

    # ---- Residual: the center tap (dy=1, dx=1) of the patch slab IS x. ----
    res = patch_ref[:, 4 * Cp:5 * Cp].astype(jnp.float32)
    o_ref[...] = (res + y).astype(o_ref.dtype)


@jax.jit
def residual_layer_forward(x: jax.Array, w1: jax.Array, w2: jax.Array) -> jax.Array:
    """x: (B, C_in, H, W) NCHW.  w1: (C_out, C_in, 3, 3).  w2: (C_out, C_out, 1, 1)."""
    B, C, H, W = x.shape
    C_out = w1.shape[0]
    assert w1.shape == (C_out, C, 3, 3)
    assert w2.shape == (C_out, C_out, 1, 1)
    assert C_out == C, "residual add requires out_channels == in_channels"

    # Lane-dense channel padding and 8-aligned row pitch.
    Cp = max(((C + LANES - 1) // LANES) * LANES, LANES)
    Wp8 = ((W + 2 + SUBLANES - 1) // SUBLANES) * SUBLANES   # padded width, multiple of 8, >= W+2
    P = (H + 2) * Wp8                                       # flattened padded rows per image
    L = H * Wp8                                             # output-slab rows per image

    # NCHW -> NHWC (channels on lanes) -> halo + alignment + channel pad -> flatten spatial.
    x_nhwc = jnp.transpose(x, (0, 2, 3, 1))
    x_pad = jnp.pad(x_nhwc, ((0, 0), (1, 1), (1, Wp8 - W - 1), (0, Cp - C)))
    x_flat = x_pad.reshape(B, P, Cp)

    # Weights in matmul form, padded lane-dense, native activation dtype.
    w1_t = jnp.transpose(w1, (2, 3, 1, 0))                                  # (3, 3, Ci, Co)
    w1_flat = jnp.pad(w1_t, ((0, 0), (0, 0), (0, Cp - C), (0, Cp - C_out)))  # zero-padded taps
    w1_flat = w1_flat.reshape(9 * Cp, Cp).astype(x.dtype)                   # row t*Cp+ci -> tap t, chan ci
    w2_mat = jnp.pad(jnp.transpose(w2[:, :, 0, 0]),
                     ((0, Cp - C_out), (0, Cp - C_out))).astype(x.dtype)    # (Ci, Co)

    # Per-step VMEM budget (double-buffered in/out + resident weights + scratch
    # + live f32 slabs), with headroom, clamped to a safe per-generation range.
    isz = jnp.dtype(x.dtype).itemsize
    vmem_est = (2 * (P * Cp + L * Cp) * isz          # pipelined input/output blocks
                + 2 * (9 * Cp * Cp + Cp * Cp) * isz  # weight blocks
                + L * 9 * Cp * isz                   # im2col scratch
                + 3 * L * Cp * 4)                    # acc / h / y f32 live values
    vmem_limit = int(min(max(vmem_est * 3 // 2, 32 * 1024 * 1024), 64 * 1024 * 1024))

    kernel = functools.partial(_residual_kernel, H=H, Wp8=Wp8, Cp=Cp)

    y_flat = pl.pallas_call(
        kernel,
        out_shape=jax.ShapeDtypeStruct((B, L, Cp), x.dtype),
        grid_spec=pltpu.PrefetchScalarGridSpec(
            num_scalar_prefetch=0,
            grid=(B,),  # one image per step; parallel axis shards across v7x's 2 TCs
            in_specs=[
                pl.BlockSpec((None, P, Cp), lambda b: (b, 0, 0)),
                pl.BlockSpec((9 * Cp, Cp), lambda b: (0, 0)),
                pl.BlockSpec((Cp, Cp), lambda b: (0, 0)),
            ],
            out_specs=pl.BlockSpec((None, L, Cp), lambda b: (b, 0, 0)),
            scratch_shapes=[pltpu.VMEM((L, 9 * Cp), x.dtype)],
        ),
        compiler_params=pltpu.CompilerParams(
            dimension_semantics=("parallel",),
            vmem_limit_bytes=vmem_limit,
        ),
    )(x_flat, w1_flat, w2_mat)

    # Drop the junk halo columns / padded channels and go back to NCHW.
    y = y_flat.reshape(B, H, Wp8, Cp)[:, :, :W, :C]
    return jnp.transpose(y, (0, 3, 1, 2))


def _reference(x, w1, w2):
    """Pure-JAX reference: x + conv1x1(relu(conv3x3(x)))."""
    hp = jax.lax.Precision.HIGHEST
    y = jax.lax.conv_general_dilated(
        x, w1, window_strides=(1, 1), padding="SAME",
        dimension_numbers=("NCHW", "OIHW", "NCHW"), precision=hp)
    y = jnp.maximum(y, 0.0)
    y = jax.lax.conv_general_dilated(
        y, w2, window_strides=(1, 1), padding="VALID",
        dimension_numbers=("NCHW", "OIHW", "NCHW"), precision=hp)
    return x + y


if __name__ == "__main__":
    key = jax.random.PRNGKey(0)
    kx, k1, k2 = jax.random.split(key, 3)

    B, C, H, W = 2, 4, 16, 16
    x = jax.random.normal(kx, (B, C, H, W), dtype=jnp.float32)
    # Conv2d weights (bias=False in the module), OIHW layout.
    w1 = jax.random.normal(k1, (C, C, 3, 3), dtype=jnp.float32) * 0.1
    w2 = jax.random.normal(k2, (C, C, 1, 1), dtype=jnp.float32) * 0.1

    y = residual_layer_forward(x, w1, w2)
    jax.block_until_ready(y)

    y_ref = _reference(x, w1, w2)
    assert y.shape == x.shape and y.dtype == x.dtype
    max_err = float(jnp.max(jnp.abs(y - y_ref)))
    # All-f32 path: tight tolerance so tap/offset/alignment regressions are caught.
    assert bool(jnp.allclose(y, y_ref, atol=1e-4, rtol=1e-4)), \
        f"residual layer forward mismatch vs reference (max abs err {max_err:.3e})"

    print("KERNEL_OK")
</pallas_src>

<mosaic_0001>
module attributes {stable_mosaic.version = 11 : i64} {
  func.func @_residual_kernel(%arg0: i32, %arg1: memref<1x432x128xf32, #tpu.memory_space<vmem>>, %arg2: memref<1152x128xf32, #tpu.memory_space<vmem>>, %arg3: memref<128x128xf32, #tpu.memory_space<vmem>>, %arg4: memref<1x384x128xf32, #tpu.memory_space<vmem>>, %arg5: memref<384x1152xf32, #tpu.memory_space<vmem>>) attributes {dimension_semantics = [#tpu.dimension_semantics<parallel>], iteration_bounds = array<i64: 2>, scalar_prefetch = 0 : i64, scratch_operands = 1 : i64, tpu.core_type = #tpu.core_type<tc>, window_params = [{transform_indices = @transform_0, window_bounds = array<i64: 1, 432, 128>}, {pipeline_mode = #tpu.pipeline_mode<synchronous>, transform_indices = @transform_1, window_bounds = array<i64: 1152, 128>}, {pipeline_mode = #tpu.pipeline_mode<synchronous>, transform_indices = @transform_2, window_bounds = array<i64: 128, 128>}, {transform_indices = @transform_3, window_bounds = array<i64: 1, 384, 128>}]} {
    %c0 = arith.constant 0 : index
    %c0_0 = arith.constant 0 : index
    %c0_1 = arith.constant 0 : index
    %0 = vector.load %arg1[%c0, %c0_0, %c0_1] : memref<1x432x128xf32, #tpu.memory_space<vmem>>, vector<1x384x128xf32>
    %1 = vector.shape_cast %0 : vector<1x384x128xf32> to vector<384x128xf32>
    %c0_2 = arith.constant 0 : index
    %c0_3 = arith.constant 0 : index
    %2 = vector.load %arg5[%c0_2, %c0_3] : memref<384x1152xf32, #tpu.memory_space<vmem>>, vector<384x128xf32>
    tpu.vector_store %arg5[%c0_2, %c0_3], %1 {strides = array<i32>} : memref<384x1152xf32, #tpu.memory_space<vmem>>, vector<384x128xf32>,
    %c383_i32 = arith.constant 383 : i32
    %3 = tpu.dynamic_rotate %1 by %c383_i32 dim 0 : vector<384x128xf32>, i32 -> vector<384x128xf32>
    %c0_4 = arith.constant 0 : index
    %c128 = arith.constant 128 : index
    %4 = vector.load %arg5[%c0_4, %c128] : memref<384x1152xf32, #tpu.memory_space<vmem>>, vector<384x128xf32>
    tpu.vector_store %arg5[%c0_4, %c128], %3 {strides = array<i32>} : memref<384x1152xf32, #tpu.memory_space<vmem>>, vector<384x128xf32>,
    %c382_i32 = arith.constant 382 : i32
    %5 = tpu.dynamic_rotate %1 by %c382_i32 dim 0 : vector<384x128xf32>, i32 -> vector<384x128xf32>
    %c0_5 = arith.constant 0 : index
    %c256 = arith.constant 256 : index
    %6 = vector.load %arg5[%c0_5, %c256] : memref<384x1152xf32, #tpu.memory_space<vmem>>, vector<384x128xf32>
    tpu.vector_store %arg5[%c0_5, %c256], %5 {strides = array<i32>} : memref<384x1152xf32, #tpu.memory_space<vmem>>, vector<384x128xf32>,
    %c0_6 = arith.constant 0 : index
    %c24 = arith.constant 24 : index
    %c0_7 = arith.constant 0 : index
    %7 = vector.load %arg1[%c0_6, %c24, %c0_7] : memref<1x432x128xf32, #tpu.memory_space<vmem>>, vector<1x384x128xf32>
    %8 = vector.shape_cast %7 : vector<1x384x128xf32> to vector<384x128xf32>
    %c0_8 = arith.constant 0 : index
    %c384 = arith.constant 384 : index
    %9 = vector.load %arg5[%c0_8, %c384] : memref<384x1152xf32, #tpu.memory_space<vmem>>, vector<384x128xf32>
    tpu.vector_store %arg5[%c0_8, %c384], %8 {strides = array<i32>} : memref<384x1152xf32, #tpu.memory_space<vmem>>, vector<384x128xf32>,
    %c383_i32_9 = arith.constant 383 : i32
    %10 = tpu.dynamic_rotate %8 by %c383_i32_9 dim 0 : vector<384x128xf32>, i32 -> vector<384x128xf32>
    %c0_10 = arith.constant 0 : index
    %c512 = arith.constant 512 : index
    %11 = vector.load %arg5[%c0_10, %c512] : memref<384x1152xf32, #tpu.memory_space<vmem>>, vector<384x128xf32>
    tpu.vector_store %arg5[%c0_10, %c512], %10 {strides = array<i32>} : memref<384x1152xf32, #tpu.memory_space<vmem>>, vector<384x128xf32>,
    %c382_i32_11 = arith.constant 382 : i32
    %12 = tpu.dynamic_rotate %8 by %c382_i32_11 dim 0 : vector<384x128xf32>, i32 -> vector<384x128xf32>
    %c0_12 = arith.constant 0 : index
    %c640 = arith.constant 640 : index
    %13 = vector.load %arg5[%c0_12, %c640] : memref<384x1152xf32, #tpu.memory_space<vmem>>, vector<384x128xf32>
    tpu.vector_store %arg5[%c0_12, %c640], %12 {strides = array<i32>} : memref<384x1152xf32, #tpu.memory_space<vmem>>, vector<384x128xf32>,
    %c0_13 = arith.constant 0 : index
    %c48 = arith.constant 48 : index
    %c0_14 = arith.constant 0 : index
    %14 = vector.load %arg1[%c0_13, %c48, %c0_14] : memref<1x432x128xf32, #tpu.memory_space<vmem>>, vector<1x384x128xf32>
    %15 = vector.shape_cast %14 : vector<1x384x128xf32> to vector<384x128xf32>
    %c0_15 = arith.constant 0 : index
    %c768 = arith.constant 768 : index
    %16 = vector.load %arg5[%c0_15, %c768] : memref<384x1152xf32, #tpu.memory_space<vmem>>, vector<384x128xf32>
    tpu.vector_store %arg5[%c0_15, %c768], %15 {strides = array<i32>} : memref<384x1152xf32, #tpu.memory_space<vmem>>, vector<384x128xf32>,
    %c383_i32_16 = arith.constant 383 : i32
    %17 = tpu.dynamic_rotate %15 by %c383_i32_16 dim 0 : vector<384x128xf32>, i32 -> vector<384x128xf32>
    %c0_17 = arith.constant 0 : index
    %c896 = arith.constant 896 : index
    %18 = vector.load %arg5[%c0_17, %c896] : memref<384x1152xf32, #tpu.memory_space<vmem>>, vector<384x128xf32>
    tpu.vector_store %arg5[%c0_17, %c896], %17 {strides = array<i32>} : memref<384x1152xf32, #tpu.memory_space<vmem>>, vector<384x128xf32>,
    %c382_i32_18 = arith.constant 382 : i32
    %19 = tpu.dynamic_rotate %15 by %c382_i32_18 dim 0 : vector<384x128xf32>, i32 -> vector<384x128xf32>
    %c0_19 = arith.constant 0 : index
    %c1024 = arith.constant 1024 : index
    %20 = vector.load %arg5[%c0_19, %c1024] : memref<384x1152xf32, #tpu.memory_space<vmem>>, vector<384x128xf32>
    tpu.vector_store %arg5[%c0_19, %c1024], %19 {strides = array<i32>} : memref<384x1152xf32, #tpu.memory_space<vmem>>, vector<384x128xf32>,
    %c0_20 = arith.constant 0 : index
    %c0_21 = arith.constant 0 : index
    %21 = vector.load %arg5[%c0_20, %c0_21] : memref<384x1152xf32, #tpu.memory_space<vmem>>, vector<384x1152xf32>
    %c0_22 = arith.constant 0 : index
    %c0_23 = arith.constant 0 : index
    %22 = vector.load %arg2[%c0_22, %c0_23] : memref<1152x128xf32, #tpu.memory_space<vmem>>, vector<1152x128xf32>
    %cst = arith.constant dense<0.000000e+00> : vector<384x128xf32>
    %23 = tpu.matmul %21, %22, %cst {dimension_numbers = #tpu.dot_dimension_numbers<[1], [0], [0], [1], [0, 0, 1, 1], [], []>} : vector<384x1152xf32>, vector<1152x128xf32>, vector<384x128xf32> -> vector<384x128xf32>
    %cst_24 = arith.constant 0.000000e+00 : f32
    %24 = vector.broadcast %cst_24 : f32 to vector<384x128xf32>
    %25 = arith.maximumf %23, %24 : vector<384x128xf32>
    %c0_25 = arith.constant 0 : index
    %c0_26 = arith.constant 0 : index
    %26 = vector.load %arg3[%c0_25, %c0_26] : memref<128x128xf32, #tpu.memory_space<vmem>>, vector<128x128xf32>
    %cst_27 = arith.constant dense<0.000000e+00> : vector<384x128xf32>
    %27 = tpu.matmul %25, %26, %cst_27 {dimension_numbers = #tpu.dot_dimension_numbers<[1], [0], [0], [1], [0, 0, 1, 1], [], []>} : vector<384x128xf32>, vector<128x128xf32>, vector<384x128xf32> -> vector<384x128xf32>
    %c0_28 = arith.constant 0 : index
    %c512_29 = arith.constant 512 : index
    %28 = vector.load %arg5[%c0_28, %c512_29] : memref<384x1152xf32, #tpu.memory_space<vmem>>, vector<384x128xf32>
    %29 = arith.addf %28, %27 : vector<384x128xf32>
    %c0_30 = arith.constant 0 : index
    %c0_31 = arith.constant 0 : index
    %c0_32 = arith.constant 0 : index
    %30 = vector.load %arg4[%c0_30, %c0_31, %c0_32] : memref<1x384x128xf32, #tpu.memory_space<vmem>>, vector<1x384x128xf32>
    %31 = vector.shape_cast %30 : vector<1x384x128xf32> to vector<384x128xf32>
    %32 = vector.shape_cast %29 : vector<384x128xf32> to vector<1x384x128xf32>
    tpu.vector_store %arg4[%c0_30, %c0_31, %c0_32], %32 {strides = array<i32>} : memref<1x384x128xf32, #tpu.memory_space<vmem>>, vector<1x384x128xf32>,
    return
  }
  func.func @transform_0(%arg0: i32) -> (i32, i32, i32) {
    %c0_i32 = arith.constant 0 : i32
    %c0_i32_0 = arith.constant 0 : i32
    %c0_i32_1 = arith.constant 0 : i32
    return %arg0, %c0_i32, %c0_i32_0 : i32, i32, i32
  }
  func.func @transform_1(%arg0: i32) -> (i32, i32) {
    %c0_i32 = arith.constant 0 : i32
    %c0_i32_0 = arith.constant 0 : i32
    %c0_i32_1 = arith.constant 0 : i32
    return %c0_i32, %c0_i32_0 : i32, i32
  }
  func.func @transform_2(%arg0: i32) -> (i32, i32) {
    %c0_i32 = arith.constant 0 : i32
    %c0_i32_0 = arith.constant 0 : i32
    %c0_i32_1 = arith.constant 0 : i32
    return %c0_i32, %c0_i32_0 : i32, i32
  }
  func.func @transform_3(%arg0: i32) -> (i32, i32, i32) {
    %c0_i32 = arith.constant 0 : i32
    %c0_i32_0 = arith.constant 0 : i32
    %c0_i32_1 = arith.constant 0 : i32
    return %arg0, %c0_i32, %c0_i32_0 : i32, i32, i32
  }
}

</mosaic_0001>

<bundles_post_ra>
// kernel: residual_layer_forward.1
= control target key start
LH: loop header
LB: loop body
LE: loop exit
PB: predicated region body
PF: predicated region fallthrough
CT: control target
= control target key end

     0   :  { %s3879_s12 = smov 0   ;;  %s5921_s0 = inlined_call_operand.vmem [shape: f32[2,432,128], index: 0, kind: input, shape index: {}]   ;;  %s5922_s1 = inlined_call_operand.vmem [shape: f32[1152,128], index: 1, kind: input, shape index: {}]   ;;  %s5923_s2 = inlined_call_operand.vmem [shape: f32[128,128], index: 2, kind: input, shape index: {}]   ;;  %s5924_s3 = inlined_call_operand.vmem [shape: f32[2,384,128], index: 3, kind: output, shape index: {}]  }
   0x1 LB: > { %s3776_s13 = sadd.s32 4294967295, %s3857_s12   ;;  %p3780_p0 = scmp.ge.s32.totalorder %s3857_s12, 1  ;;  %s3857_s12 = sphi %s3879_s12, %s13_s12  }
   0x2   : > { %p137_p1 = scmp.lt.s32.totalorder %s3857_s12, 3 }
   0x4   : > { %p138_p2 = pnand %p3780_p0, %p137_p1 }
   0x6   : > { %141 = sbr.rel (%p138_p2) target bundleno = 1264 (0x4f0), region = 32 }
   0xb   : > { %v1774_v0 = vld [vmem:[%s5922_s1 + $0x78] sm:$0xff]  ;;  %v1773_v2 = vld [vmem:[%s5922_s1 + $0x70] sm:$0xff]  ;;  %v1772_v4 = vld [vmem:[%s5922_s1 + $0x68] sm:$0xff]  ;;  %p161_p3 = scmp.lt.s32.totalorder %s3776_s13, 1  ;;  %v315_v22 = vlaneseq }
   0xc   : > { %v1790_v1 = vld [vmem:[%s5922_s1 + $0xf8] sm:$0xff]  ;;  %3785 = vmatpush.msra.mxu2 %v1774_v0  ;;  %v1789_v3 = vld [vmem:[%s5922_s1 + $0xf0] sm:$0xff]  ;;  %v1788_v5 = vld [vmem:[%s5922_s1 + $0xe8] sm:$0xff]  ;;  %1903 = vmatpush.msra.mxu0 %v1774_v0 }
   0xd   : > { %3801 = vmatpush.msra.mxu3 %v1790_v1  ;;  %2064 = vmatpush.msra.mxu1 %v1790_v1  ;;  %v1771_v6 = vld [vmem:[%s5922_s1 + $0x60] sm:$0xff]  ;;  %v1770_v8 = vld [vmem:[%s5922_s1 + $0x58] sm:$0xff]  ;;  %v1769_v10 = vld [vmem:[%s5922_s1 + $0x50] sm:$0xff]  ;;  %s6193_s13 = smov (!%p161_p3, %s3776_s13), 1  ;;  %v3983_v29 = vshrl.u32 %v315_v22, 7 }
   0xe   : > { %3786 = vmatpush.msra.mxu2 %v1773_v2  ;;  %v1787_v7 = vld [vmem:[%s5922_s1 + $0xe0] sm:$0xff]  ;;  %1904 = vmatpush.msra.mxu0 %v1773_v2  ;;  %v1786_v9 = vld [vmem:[%s5922_s1 + $0xd8] sm:$0xff]  ;;  %v1785_v11 = vld [vmem:[%s5922_s1 + $0xd0] sm:$0xff]  ;;  %s3817_s25 = smul.u32 432, %s6193_s13 }
   0xf   : > { %3802 = vmatpush.msra.mxu3 %v1789_v3  ;;  %2065 = vmatpush.msra.mxu1 %v1789_v3  ;;  %v1768_v12 = vld [vmem:[%s5922_s1 + $0x48] sm:$0xff]  ;;  %v1767_v14 = vld [vmem:[%s5922_s1 + $0x40] sm:$0xff]  ;;  %v1766_v16 = vld [vmem:[%s5922_s1 + $0x38] sm:$0xff]  ;;  %vm317_vm0 = vcmp.lt.s32.totalorder %v3983_v29, 7  ;;  %vm462_vm1 = vcmp.lt.s32.totalorder %v3983_v29, 6  ;;  %s3818_s24 = smul.u32 384, %s6193_s13 }
  0x10   : > { %3787 = vmatpush.msra.mxu2 %v1772_v4  ;;  %1905 = vmatpush.msra.mxu0 %v1772_v4  ;;  %v1784_v13 = vld [vmem:[%s5922_s1 + $0xc8] sm:$0xff]  ;;  %v1783_v15 = vld [vmem:[%s5922_s1 + $0xc0] sm:$0xff]  ;;  %v1782_v17 = vld [vmem:[%s5922_s1 + $0xb8] sm:$0xff]  ;;  %s3963_s9 = scalar_lea.vmem %s5921_s0, %s3817_s25 }
  0x11   : > { %3803 = vmatpush.msra.mxu3 %v1788_v5  ;;  %2066 = vmatpush.msra.mxu1 %v1788_v5  ;;  %v1765_v18 = vld [vmem:[%s5922_s1 + $0x30] sm:$0xff]  ;;  %v1764_v20 = vld [vmem:[%s5922_s1 + $0x28] sm:$0xff]  ;;  %v1763_v23 = vld [vmem:[%s5922_s1 + $0x20] sm:$0xff]  ;;  %s5693_s27 = scalar_lea.vmem %s5924_s3, %s3818_s24 }
  0x12   : > { %3788 = vmatpush.msra.mxu2 %v1771_v6  ;;  %1906 = vmatpush.msra.mxu0 %v1771_v6  ;;  %v1781_v19 = vld [vmem:[%s5922_s1 + $0xb0] sm:$0xff]  ;;  %v1780_v21 = vld [vmem:[%s5922_s1 + $0xa8] sm:$0xff]  ;;  %v1779_v24 = vld [vmem:[%s5922_s1 + $0xa0] sm:$0xff] }
  0x13   : > { %3804 = vmatpush.msra.mxu3 %v1787_v7  ;;  %2067 = vmatpush.msra.mxu1 %v1787_v7  ;;  %v1762_v25 = vld [vmem:[%s5922_s1 + $0x18] sm:$0xff]  ;;  %v3978_v27 = vld [vmem:[%s3963_s9 + $0xc0] sm:$0xff]  ;;  %v3981_v28 = vld [vmem:[%s3963_s9 + $0xc8] sm:$0xff] }
  0x14   : > { %3789 = vmatpush.msra.mxu2 %v1770_v8  ;;  %1907 = vmatpush.msra.mxu0 %v1770_v8  ;;  %v1778_v26 = vld [vmem:[%s5922_s1 + $0x98] sm:$0xff]  ;;  %v1761_v30 = vld [vmem:[%s5922_s1 + $0x10] sm:$0xff]  ;;  %v5925_v32 = vrot.slane %v3978_v27, 1  ;;  %v292_v33 = vrot.slane %v3981_v28, 1  ;;  %v3994_v34 = vld [vmem:[%s3963_s9] sm:$0xff] }
  0x15   : > { %3805 = vmatpush.msra.mxu3 %v1786_v9  ;;  %2068 = vmatpush.msra.mxu1 %v1786_v9  ;;  %v1777_v31 = vld [vmem:[%s5922_s1 + $0x90] sm:$0xff]  ;;  %5982 = vst [vmem:[#allocation3_spill] sm:$0xff] %v3994_v34  ;;  %v3997_v35 = vld [vmem:[%s3963_s9 + $0x8] sm:$0xff]  ;;  %v1759_v38 = vld [vmem:[%s5922_s1] sm:$0xff]  ;;  %v5926_v40 = vrot.slane %v3994_v34, 1 }
  0x16   : > { %3790 = vmatpush.msra.mxu2 %v1769_v10  ;;  %1908 = vmatpush.msra.mxu0 %v1769_v10  ;;  %v1760_v36 = vld [vmem:[%s5922_s1 + $0x8] sm:$0xff]  ;;  %v1775_v39 = vld [vmem:[%s5922_s1 + $0x80] sm:$0xff]  ;;  %v268_v41 = vrot.slane %v3997_v35, 1  ;;  %v340_v42 = vsel %vm317_vm0, %v5925_v32, %v292_v33  ;;  %v1806_v43 = vld [vmem:[%s5922_s1 + $0x178] sm:$0xff] }
  0x17   : > { %3806 = vmatpush.msra.mxu3 %v1785_v11  ;;  %2069 = vmatpush.msra.mxu1 %v1785_v11  ;;  %v1776_v37 = vld [vmem:[%s5922_s1 + $0x88] sm:$0xff]  ;;  %v1822_v44 = vld [vmem:[%s5922_s1 + $0x1f8] sm:$0xff]  ;;  %v197_v45 = vld [vmem:[%s3963_s9 + $0xd0] sm:$0xff] }
  0x18   : > { %3791 = vmatpush.msra.mxu2 %v1768_v12  ;;  %1909 = vmatpush.msra.mxu0 %v1768_v12  ;;  %v364_v46 = vsel %vm317_vm0, %v5926_v40, %v268_v41  ;;  %v293_v47 = vrot.slane %v197_v45, 1  ;;  %v1838_v48 = vld [vmem:[%s5922_s1 + $0x278] sm:$0xff]  ;;  %v1805_v49 = vld [vmem:[%s5922_s1 + $0x170] sm:$0xff]  ;;  %v1804_v53 = vld [vmem:[%s5922_s1 + $0x168] sm:$0xff] }
  0x19   : > { %3807 = vmatpush.msra.mxu3 %v1784_v13  ;;  %2070 = vmatpush.msra.mxu1 %v1784_v13  ;;  %v4037_v50 = vld [vmem:[%s3963_s9 + $0x10] sm:$0xff]  ;;  %v1820_v55 = vld [vmem:[%s5922_s1 + $0x1e8] sm:$0xff]  ;;  %v198_v57 = vld [vmem:[%s3963_s9 + $0xd8] sm:$0xff] }
  0x1a   : > { %3792 = vmatpush.msra.mxu2 %v1767_v14  ;;  %1910 = vmatpush.msra.mxu0 %v1767_v14  ;;  %v1821_v51 = vld [vmem:[%s5922_s1 + $0x1f0] sm:$0xff]  ;;  %v269_v54 = vrot.slane %v4037_v50, 1  ;;  %v339_v56 = vsel %vm317_vm0, %v292_v33, %v293_v47  ;;  %v1836_v58 = vld [vmem:[%s5922_s1 + $0x268] sm:$0xff]  ;;  %v1803_v59 = vld [vmem:[%s5922_s1 + $0x160] sm:$0xff]  ;;  %v294_v62 = vrot.slane %v198_v57, 1 }
  0x1b   : > { %3808 = vmatpush.msra.mxu3 %v1783_v15  ;;  %2071 = vmatpush.msra.mxu1 %v1783_v15  ;;  %v1837_v52 = vld [vmem:[%s5922_s1 + $0x270] sm:$0xff]  ;;  %v1819_v60 = vld [vmem:[%s5922_s1 + $0x1e0] sm:$0xff]  ;;  %v4069_v63 = vld [vmem:[%s3963_s9 + $0x18] sm:$0xff] }
  0x1c   : > { %3793 = vmatpush.msra.mxu2 %v1766_v16  ;;  %1911 = vmatpush.msra.mxu0 %v1766_v16  ;;  %v363_v61 = vsel %vm317_vm0, %v268_v41, %v269_v54  ;;  %v1835_v0 = vld [vmem:[%s5922_s1 + $0x260] sm:$0xff]  ;;  %v4076_v1 = vrot.slane %v4069_v63, 1  ;;  %v338_v2 = vsel %vm317_vm0, %v293_v47, %v294_v62  ;;  %v1802_v5 = vld [vmem:[%s5922_s1 + $0x158] sm:$0xff]  ;;  %v200_v11 = vld [vmem:[%s3963_s9 + $0xe8] sm:$0xff] }
  0x1d   : > { %3809 = vmatpush.msra.mxu3 %v1782_v17  ;;  %2072 = vmatpush.msra.mxu1 %v1782_v17  ;;  %v199_v3 = vld [vmem:[%s3963_s9 + $0xe0] sm:$0xff]  ;;  %v1818_v6 = vld [vmem:[%s5922_s1 + $0x1d8] sm:$0xff]  ;;  %v1801_v14 = vld [vmem:[%s5922_s1 + $0x150] sm:$0xff]  ;;  %v296_v16 = vrot.slane %v200_v11, 1 }
  0x1e   : > { %3794 = vmatpush.msra.mxu2 %v1765_v18  ;;  %1912 = vmatpush.msra.mxu0 %v1765_v18  ;;  %5983 = vst [vmem:[#allocation4_spill] sm:$0xff] %v4076_v1  ;;  %v362_v4 = vsel %vm317_vm0, %v269_v54, %v4076_v1  ;;  %v295_v7 = vrot.slane %v199_v3, 1  ;;  %v4091_v8 = vld [vmem:[%s3963_s9 + $0x20] sm:$0xff]  ;;  %v1834_v13 = vld [vmem:[%s5922_s1 + $0x258] sm:$0xff]  ;;  %v1817_v15 = vld [vmem:[%s5922_s1 + $0x1d0] sm:$0xff] }
  0x1f   : > { %3810 = vmatpush.msra.mxu3 %v1781_v19  ;;  %2073 = vmatpush.msra.mxu1 %v1781_v19  ;;  %v271_v9 = vrot.slane %v4091_v8, 1  ;;  %v4113_v17 = vld [vmem:[%s3963_s9 + $0x28] sm:$0xff]  ;;  %v1833_v22 = vld [vmem:[%s5922_s1 + $0x250] sm:$0xff]  ;;  %v203_v41 = vld [vmem:[%s3963_s9 + $0x100] sm:$0xff] }
  0x20   : > { %3795 = vmatpush.msra.mxu2 %v1764_v20  ;;  %1913 = vmatpush.msra.mxu0 %v1764_v20  ;;  %v337_v10 = vsel %vm317_vm0, %v294_v62, %v295_v7  ;;  %v272_v18 = vrot.slane %v4113_v17, 1  ;;  %v336_v19 = vsel %vm317_vm0, %v295_v7, %v296_v16  ;;  %v201_v20 = vld [vmem:[%s3963_s9 + $0xf0] sm:$0xff]  ;;  %v1816_v33 = vld [vmem:[%s5922_s1 + $0x1c8] sm:$0xff]  ;;  %v4170_v47 = vld [vmem:[%s3963_s9 + $0x40] sm:$0xff] }
  0x21   : > { %3811 = vmatpush.msra.mxu3 %v1780_v21  ;;  %2074 = vmatpush.msra.mxu1 %v1780_v21  ;;  %v4101_v12 = vsel %vm317_vm0, %v4076_v1, %v271_v9  ;;  %v1797_v7 = vld [vmem:[%s5922_s1 + $0x130] sm:$0xff]  ;;  %v1823_v1 = vld [vmem:[%s5922_s1 + $0x200] sm:$0xff] }
  0x22   : > { %3796 = vmatpush.msra.mxu2 %v1763_v23  ;;  %1914 = vmatpush.msra.mxu0 %v1763_v23  ;;  %5984 = vst [vmem:[#allocation5_spill] sm:$0xff] %v4101_v12  ;;  %v4123_v21 = vsel %vm317_vm0, %v271_v9, %v272_v18  ;;  %v297_v23 = vrot.slane %v201_v20, 1  ;;  %v1813_v9 = vld [vmem:[%s5922_s1 + $0x1b0] sm:$0xff] }
  0x23   : > { %3812 = vmatpush.msra.mxu3 %v1779_v24  ;;  %2075 = vmatpush.msra.mxu1 %v1779_v24  ;;  %5985 = vst [vmem:[#allocation6_spill] sm:$0xff] %v4123_v21  ;;  %v4129_v24 = vld [vmem:[%s3963_s9 + $0x30] sm:$0xff] }
  0x24   : > { %3797 = vmatpush.msra.mxu2 %v1762_v25  ;;  %1915 = vmatpush.msra.mxu0 %v1762_v25  ;;  %v273_v25 = vrot.slane %v4129_v24, 1 }
  0x25   : > { %3813 = vmatpush.msra.mxu3 %v1778_v26  ;;  %2076 = vmatpush.msra.mxu1 %v1778_v26  ;;  %v335_v26 = vsel %vm317_vm0, %v296_v16, %v297_v23 }
  0x26   : > { %3798 = vmatpush.msra.mxu2 %v1761_v30  ;;  %1916 = vmatpush.msra.mxu0 %v1761_v30  ;;  %v4139_v30 = vsel %vm317_vm0, %v272_v18, %v273_v25  ;;  %v1829_v18 = vld [vmem:[%s5922_s1 + $0x230] sm:$0xff] }
  0x27   : > { %3814 = vmatpush.msra.mxu3 %v1777_v31  ;;  %2077 = vmatpush.msra.mxu1 %v1777_v31  ;;  %5986 = vst [vmem:[#allocation7_spill] sm:$0xff] %v4139_v30  ;;  %v1800_v31 = vld [vmem:[%s5922_s1 + $0x148] sm:$0xff] }
  0x28   : > { %3799 = vmatpush.msra.mxu2 %v1760_v36  ;;  %1917 = vmatpush.msra.mxu0 %v1760_v36 }
  0x29   : > { %3815 = vmatpush.msra.mxu3 %v1776_v37  ;;  %2078 = vmatpush.msra.mxu1 %v1776_v37  ;;  %v4148_v37 = vld [vmem:[%s3963_s9 + $0x38] sm:$0xff] }
  0x2a   : > { %3800 = vmatpush.msra.mxu2 %v1759_v38  ;;  %1918 = vmatpush.msra.mxu0 %v1759_v38  ;;  %v274_v38 = vrot.slane %v4148_v37, 1 }
  0x2b   : > { %3816 = vmatpush.msra.mxu3 %v1775_v39  ;;  %1991 = vmatmul.f32.vlgmr.msra.gmra.mxu2 %v3978_v27 }
  0x2c   : > { %2152 = vmatmul.f32.vlgmr.msra.gmra.mxu3 %v340_v42  ;;  %2225 = vmatpush.msrb.mxu2 %v1806_v43  ;;  %v4158_v42 = vsel %vm317_vm0, %v273_v25, %v274_v38  ;;  %v1832_v43 = vld [vmem:[%s5922_s1 + $0x248] sm:$0xff] }
  0x2d   : > { %2386 = vmatpush.msrb.mxu3 %v1822_v44  ;;  %2079 = vmatpush.msra.mxu1 %v1775_v39  ;;  %5987 = vst [vmem:[#allocation8_spill] sm:$0xff] %v4158_v42  ;;  %v1799_v44 = vld [vmem:[%s5922_s1 + $0x140] sm:$0xff]  ;;  %v208_v25 = vld [vmem:[%s3963_s9 + $0x128] sm:$0xff] }
  0x2e   : > { %1919 = vmatmul.f32.vlgmr.msra.gmra.mxu0 %v3994_v34  ;;  %2080 = vmatmul.f32.vlgmr.msra.gmra.mxu1 %v364_v46  ;;  %v299_v46 = vrot.slane %v203_v41, 1 }
  0x2f   : > { %2547 = vmatpush.msrb.mxu0 %v1838_v48  ;;  %2226 = vmatpush.msrb.mxu2 %v1805_v49  ;;  %v275_v48 = vrot.slane %v4170_v47, 1 }
  0x30   : > { %2387 = vmatpush.msrb.mxu3 %v1821_v51  ;;  %v204_v51 = vld [vmem:[%s3963_s9 + $0x108] sm:$0xff] }
  0x31   : > { %2548 = vmatpush.msrb.mxu0 %v1837_v52  ;;  %2227 = vmatpush.msrb.mxu2 %v1804_v53  ;;  %v4180_v52 = vsel %vm317_vm0, %v274_v38, %v275_v48  ;;  %v1831_v53 = vld [vmem:[%s5922_s1 + $0x240] sm:$0xff]  ;;  %v300_v54 = vrot.slane %v204_v51, 1 }
  0x32   : > { %2388 = vmatpush.msrb.mxu3 %v1820_v55  ;;  %5988 = vst [vmem:[#allocation9_spill] sm:$0xff] %v4180_v52  ;;  %v4186_v55 = vld [vmem:[%s3963_s9 + $0x48] sm:$0xff] }
  0x33   : > { %1994 = vmatmul.f32.gmra.mxu2 %v3981_v28  ;;  %2549 = vmatpush.msrb.mxu0 %v1836_v58  ;;  %v202_v28 = vld [vmem:[%s3963_s9 + $0xf8] sm:$0xff]  ;;  %v205_v58 = vld [vmem:[%s3963_s9 + $0x110] sm:$0xff] }
  0x34   : > { %2155 = vmatmul.f32.gmra.mxu3 %v339_v56  ;;  %2228 = vmatpush.msrb.mxu2 %v1803_v59  ;;  %v298_v36 = vrot.slane %v202_v28, 1  ;;  %v276_v56 = vrot.slane %v4186_v55, 1  ;;  %v301_v62 = vrot.slane %v205_v58, 1 }
  0x35   : > { %2389 = vmatpush.msrb.mxu3 %v1819_v60  ;;  %2550 = vmatpush.msrb.mxu0 %v1835_v0  ;;  %v1798_v60 = vld [vmem:[%s5922_s1 + $0x138] sm:$0xff]  ;;  %v4205_v0 = vld [vmem:[%s3963_s9 + $0x50] sm:$0xff] }
  0x36   : > { %1922 = vmatmul.f32.gmra.mxu0 %v3997_v35  ;;  %2083 = vmatmul.f32.gmra.mxu1 %v363_v61  ;;  %v334_v39 = vsel %vm317_vm0, %v297_v23, %v298_v36  ;;  %v333_v49 = vsel %vm317_vm0, %v298_v36, %v299_v46  ;;  %v4196_v59 = vsel %vm317_vm0, %v275_v48, %v276_v56  ;;  %v1814_v61 = vld [vmem:[%s5922_s1 + $0x1b8] sm:$0xff]  ;;  %v4262_v36 = vld [vmem:[%s3963_s9 + $0x68] sm:$0xff] }
  0x37   : > { %2229 = vmatpush.msrb.mxu2 %v1802_v5  ;;  %2390 = vmatpush.msrb.mxu3 %v1818_v6  ;;  %5989 = vst [vmem:[#allocation10_spill] sm:$0xff] %v4196_v59  ;;  %v1830_v6 = vld [vmem:[%s5922_s1 + $0x238] sm:$0xff]  ;;  %v280_v38 = vrot.slane %v4262_v36, 1 }
  0x38   : > { %2551 = vmatpush.msrb.mxu0 %v1834_v13 }
  0x39   : > { %2230 = vmatpush.msrb.mxu2 %v1801_v14  ;;  %2391 = vmatpush.msrb.mxu3 %v1817_v15  ;;  %v207_v15 = vld [vmem:[%s3963_s9 + $0x120] sm:$0xff] }
  0x3a   : > { %2552 = vmatpush.msrb.mxu0 %v1833_v22 }
  0x3b   : > { %1997 = vmatmul.f32.gmra.mxu2 %v197_v45  ;;  %2392 = vmatpush.msrb.mxu3 %v1816_v33  ;;  %v1815_v45 = vld [vmem:[%s5922_s1 + $0x1c0] sm:$0xff]  ;;  %v304_v33 = vrot.slane %v208_v25, 1 }
  0x3c   : > { %2158 = vmatmul.f32.gmra.mxu3 %v338_v2  ;;  %2231 = vmatpush.msrb.mxu2 %v1800_v31  ;;  %v277_v2 = vrot.slane %v4205_v0, 1  ;;  %v1812_v31 = vld [vmem:[%s5922_s1 + $0x1a8] sm:$0xff] }
  0x3d   : > { %2553 = vmatpush.msrb.mxu0 %v1832_v43  ;;  %2393 = vmatpush.msrb.mxu3 %v1815_v45 }
  0x3e   : > { %1925 = vmatmul.f32.gmra.mxu0 %v4037_v50  ;;  %2086 = vmatmul.f32.gmra.mxu1 %v362_v4  ;;  %v206_v4 = vld [vmem:[%s3963_s9 + $0x118] sm:$0xff]  ;;  %v4215_v5 = vsel %vm317_vm0, %v276_v56, %v277_v2 }
  0x3f   : > { %2232 = vmatpush.msrb.mxu2 %v1799_v44  ;;  %2554 = vmatpush.msrb.mxu0 %v1831_v53  ;;  %5990 = vst [vmem:[#allocation11_spill] sm:$0xff] %v4215_v5  ;;  %v1828_v44 = vld [vmem:[%s5922_s1 + $0x228] sm:$0xff] }
  0x40   : > { %2394 = vmatpush.msrb.mxu3 %v1814_v61  ;;  %v1854_v61 = vld [vmem:[%s5922_s1 + $0x2f8] sm:$0xff] }
  0x41   : > { %2233 = vmatpush.msrb.mxu2 %v1798_v60  ;;  %2555 = vmatpush.msrb.mxu0 %v1830_v6  ;;  %v1794_v6 = vld [vmem:[%s5922_s1 + $0x118] sm:$0xff] }
  0x42   : > { %2395 = vmatpush.msrb.mxu3 %v1813_v9  ;;  %2708 = vmatpush.msrb.mxu1 %v1854_v61  ;;  %v1825_v61 = vld [vmem:[%s5922_s1 + $0x210] sm:$0xff] }
  0x43   : > { %2000 = vmatmul.f32.gmra.mxu2 %v198_v57  ;;  %v332_v57 = vsel %vm317_vm0, %v299_v46, %v300_v54  ;;  %2556 = vmatpush.msrb.mxu0 %v1829_v18  ;;  %v4278_v46 = vld [vmem:[%s3963_s9 + $0x70] sm:$0xff] }
  0x44   : > { %2161 = vmatmul.f32.gmra.mxu3 %v337_v10  ;;  %v302_v10 = vrot.slane %v206_v4, 1  ;;  %2234 = vmatpush.msrb.mxu2 %v1797_v7  ;;  %v281_v48 = vrot.slane %v4278_v46, 1  ;;  %v1810_v7 = vld [vmem:[%s5922_s1 + $0x198] sm:$0xff] }
  0x45   : > { %2396 = vmatpush.msrb.mxu3 %v1812_v31  ;;  %2557 = vmatpush.msrb.mxu0 %v1828_v44  ;;  %v1793_v31 = vld [vmem:[%s5922_s1 + $0x110] sm:$0xff] }
  0x46   : > { %1928 = vmatmul.f32.gmra.mxu0 %v4069_v63  ;;  %2089 = vmatmul.f32.gmra.mxu1 %v4101_v12  ;;  %v330_v14 = vsel %vm317_vm0, %v301_v62, %v302_v10  ;;  %v4294_v56 = vsel %vm317_vm0, %v280_v38, %v281_v48 }
  0x47   : > { %5994 = vst [vmem:[#allocation15_spill] sm:$0xff] %v4294_v56 }
  0x4b   : > { %2003 = vmatmul.f32.gmra.mxu2 %v199_v3  ;;  %v331_v3 = vsel %vm317_vm0, %v300_v54, %v301_v62  ;;  %v210_v54 = vld [vmem:[%s3963_s9 + $0x138] sm:$0xff]  ;;  %v1827_v62 = vld [vmem:[%s5922_s1 + $0x220] sm:$0xff] }
  0x4c   : > { %2164 = vmatmul.f32.gmra.mxu3 %v336_v19  ;;  %v303_v19 = vrot.slane %v207_v15, 1  ;;  %2558 = vmatpush.msrb.mxu0 %v1827_v62 }
  0x4e   : > { %1931 = vmatmul.f32.gmra.mxu0 %v4091_v8  ;;  %2092 = vmatmul.f32.gmra.mxu1 %v4123_v21  ;;  %v329_v23 = vsel %vm317_vm0, %v302_v10, %v303_v19  ;;  %v4322_v10 = vld [vmem:[%s3963_s9 + $0x80] sm:$0xff] }
  0x53   : > { %2006 = vmatmul.f32.gmra.mxu2 %v200_v11  ;;  %v4227_v11 = vld [vmem:[%s3963_s9 + $0x58] sm:$0xff] }
  0x54   : > { %2167 = vmatmul.f32.gmra.mxu3 %v335_v26  ;;  %v278_v13 = vrot.slane %v4227_v11, 1 }
  0x56   : > { %1934 = vmatmul.f32.gmra.mxu0 %v4113_v17  ;;  %2095 = vmatmul.f32.gmra.mxu1 %v4139_v30  ;;  %v4237_v16 = vsel %vm317_vm0, %v277_v2, %v278_v13 }
  0x57   : > { %5991 = vst [vmem:[#allocation12_spill] sm:$0xff] %v4237_v16 }
  0x5b   : > { %2009 = vmatmul.f32.gmra.mxu2 %v201_v20  ;;  %v4243_v20 = vld [vmem:[%s3963_s9 + $0x60] sm:$0xff] }
  0x5c   : > { %2170 = vmatmul.f32.gmra.mxu3 %v334_v39  ;;  %v279_v22 = vrot.slane %v4243_v20, 1  ;;  %v328_v39 = vsel %vm317_vm0, %v303_v19, %v304_v33  ;;  %v1853_v19 = vld [vmem:[%s5922_s1 + $0x2f0] sm:$0xff] }
  0x5d   : > { %2709 = vmatpush.msrb.mxu1 %v1853_v19 }
  0x5e   : > { %1937 = vmatmul.f32.gmra.mxu0 %v4129_v24  ;;  %2098 = vmatmul.f32.gmra.mxu1 %v4158_v42  ;;  %v4253_v26 = vsel %vm317_vm0, %v278_v13, %v279_v22  ;;  %v4272_v43 = vsel %vm317_vm0, %v279_v22, %v280_v38  ;;  %v283_v13 = vrot.slane %v4322_v10, 1  ;;  %v1826_v22 = vld [vmem:[%s5922_s1 + $0x218] sm:$0xff] }
  0x5f   : > { %5992 = vst [vmem:[#allocation13_spill] sm:$0xff] %v4253_v26  ;;  %2559 = vmatpush.msrb.mxu0 %v1826_v22 }
  0x60   : > { %5993 = vst [vmem:[#allocation14_spill] sm:$0xff] %v4272_v43 }
  0x61   : > { %2560 = vmatpush.msrb.mxu0 %v1825_v61  ;;  %v1824_v61 = vld [vmem:[%s5922_s1 + $0x208] sm:$0xff] }
  0x63   : > { %2012 = vmatmul.f32.gmra.mxu2 %v202_v28  ;;  %v1796_v28 = vld [vmem:[%s5922_s1 + $0x128] sm:$0xff]  ;;  %2561 = vmatpush.msrb.mxu0 %v1824_v61  ;;  %v1849_v61 = vld [vmem:[%s5922_s1 + $0x2d0] sm:$0xff] }
  0x64   : > { %2173 = vmatmul.f32.gmra.mxu3 %v333_v49  ;;  %2235 = vmatpush.msrb.mxu2 %v1796_v28  ;;  %v1795_v49 = vld [vmem:[%s5922_s1 + $0x120] sm:$0xff] }
  0x65   : > { %2562 = vmatpush.msrb.mxu0 %v1823_v1  ;;  %v1870_v1 = vld [vmem:[%s5922_s1 + $0x378] sm:$0xff] }
  0x66   : > { %1940 = vmatmul.f32.gmra.mxu0 %v4148_v37  ;;  %2101 = vmatmul.f32.gmra.mxu1 %v4180_v52 }
  0x67   : > { %2236 = vmatpush.msrb.mxu2 %v1795_v49  ;;  %v4364_v49 = vld [vmem:[%s3963_s9 + $0x90] sm:$0xff] }
  0x69   : > { %2237 = vmatpush.msrb.mxu2 %v1794_v6 }
  0x6b   : > { %2015 = vmatmul.f32.gmra.mxu2 %v203_v41  ;;  %v209_v41 = vld [vmem:[%s3963_s9 + $0x130] sm:$0xff] }
  0x6c   : > { %2176 = vmatmul.f32.gmra.mxu3 %v332_v57  ;;  %v305_v45 = vrot.slane %v209_v41, 1  ;;  %v306_v57 = vrot.slane %v210_v54, 1  ;;  %2238 = vmatpush.msrb.mxu2 %v1793_v31 }
  0x6e   : > { %1943 = vmatmul.f32.gmra.mxu0 %v4170_v47  ;;  %2104 = vmatmul.f32.gmra.mxu1 %v4196_v59  ;;  %v327_v53 = vsel %vm317_vm0, %v304_v33, %v305_v45  ;;  %v326_v2 = vsel %vm317_vm0, %v305_v45, %v306_v57  ;;  %v1809_v33 = vld [vmem:[%s5922_s1 + $0x190] sm:$0xff] }
  0x73   : > { %2018 = vmatmul.f32.gmra.mxu2 %v204_v51  ;;  %v1811_v51 = vld [vmem:[%s5922_s1 + $0x1a0] sm:$0xff] }
  0x74   : > { %2179 = vmatmul.f32.gmra.mxu3 %v331_v3  ;;  %v211_v3 = vld [vmem:[%s3963_s9 + $0x140] sm:$0xff] }
  0x75   : > { %2397 = vmatpush.msrb.mxu3 %v1811_v51  ;;  %v307_v9 = vrot.slane %v211_v3, 1 }
  0x76   : > { %1946 = vmatmul.f32.gmra.mxu0 %v4186_v55  ;;  %2107 = vmatmul.f32.gmra.mxu1 %v4215_v5 }
  0x77   : > { %2398 = vmatpush.msrb.mxu3 %v1810_v7 }
  0x79   : > { %2399 = vmatpush.msrb.mxu3 %v1809_v33  ;;  %v215_v33 = vld [vmem:[%s3963_s9 + $0x160] sm:$0xff] }
  0x7b   : > { %2021 = vmatmul.f32.gmra.mxu2 %v205_v58  ;;  %v4297_v58 = vld [vmem:[%s3963_s9 + $0x78] sm:$0xff] }
  0x7c   : > { %2182 = vmatmul.f32.gmra.mxu3 %v330_v14  ;;  %v282_v60 = vrot.slane %v4297_v58, 1  ;;  %v325_v14 = vsel %vm317_vm0, %v306_v57, %v307_v9  ;;  %v285_v57 = vrot.slane %v4364_v49, 1 }
  0x7e   : > { %1949 = vmatmul.f32.gmra.mxu0 %v4205_v0  ;;  %2110 = vmatmul.f32.gmra.mxu1 %v4237_v16  ;;  %v4332_v18 = vsel %vm317_vm0, %v282_v60, %v283_v13 }
  0x7f   : > { %5996 = vst [vmem:[#allocation17_spill] sm:$0xff] %v4332_v18 }
  0x83   : > { %2024 = vmatmul.f32.gmra.mxu2 %v206_v4  ;;  %v4313_v4 = vsel %vm317_vm0, %v281_v48, %v282_v60  ;;  %v1852_v60 = vld [vmem:[%s5922_s1 + $0x2e8] sm:$0xff] }
  0x84   : > { %2185 = vmatmul.f32.gmra.mxu3 %v329_v23  ;;  %5995 = vst [vmem:[#allocation16_spill] sm:$0xff] %v4313_v4  ;;  %2710 = vmatpush.msrb.mxu1 %v1852_v60  ;;  %v1851_v60 = vld [vmem:[%s5922_s1 + $0x2e0] sm:$0xff] }
  0x86   : > { %1952 = vmatmul.f32.gmra.mxu0 %v4227_v11  ;;  %2113 = vmatmul.f32.gmra.mxu1 %v4253_v26 }
  0x87   : > { %2711 = vmatpush.msrb.mxu1 %v1851_v60 }
  0x8b   : > { %2027 = vmatmul.f32.gmra.mxu2 %v207_v15  ;;  %v212_v15 = vld [vmem:[%s3963_s9 + $0x148] sm:$0xff] }
  0x8c   : > { %2188 = vmatmul.f32.gmra.mxu3 %v328_v39  ;;  %v308_v23 = vrot.slane %v212_v15, 1  ;;  %v213_v39 = vld [vmem:[%s3963_s9 + $0x150] sm:$0xff] }
  0x8d   : > { %v309_v48 = vrot.slane %v213_v39, 1 }
  0x8e   : > { %1955 = vmatmul.f32.gmra.mxu0 %v4243_v20  ;;  %2116 = vmatmul.f32.gmra.mxu1 %v4272_v43  ;;  %v324_v38 = vsel %vm317_vm0, %v307_v9, %v308_v23  ;;  %v1792_v9 = vld [vmem:[%s5922_s1 + $0x108] sm:$0xff] }
  0x8f   : > { %v323_v62 = vsel %vm317_vm0, %v308_v23, %v309_v48  ;;  %2239 = vmatpush.msrb.mxu2 %v1792_v9 }
  0x93   : > { %2030 = vmatmul.f32.gmra.mxu2 %v208_v25  ;;  %v4341_v25 = vld [vmem:[%s3963_s9 + $0x88] sm:$0xff] }
  0x94   : > { %2191 = vmatmul.f32.gmra.mxu3 %v327_v53  ;;  %v284_v28 = vrot.slane %v4341_v25, 1 }
  0x96   : > { %1958 = vmatmul.f32.gmra.mxu0 %v4262_v36  ;;  %2119 = vmatmul.f32.gmra.mxu1 %v4294_v56  ;;  %v4361_v45 = vsel %vm317_vm0, %v283_v13, %v284_v28  ;;  %v4386_v7 = vsel %vm317_vm0, %v284_v28, %v285_v57  ;;  %v1808_v13 = vld [vmem:[%s5922_s1 + $0x188] sm:$0xff] }
  0x97   : > { %5997 = vst [vmem:[#allocation18_spill] sm:$0xff] %v4361_v45  ;;  %2400 = vmatpush.msrb.mxu3 %v1808_v13 }
  0x98   : > { %5999 = vst [vmem:[#allocation20_spill] sm:$0xff] %v4386_v7 }
  0x9b   : > { %2033 = vmatmul.f32.gmra.mxu2 %v209_v41 }
  0x9c   : > { %2194 = vmatmul.f32.gmra.mxu3 %v326_v2  ;;  %v214_v2 = vld [vmem:[%s3963_s9 + $0x158] sm:$0xff] }
  0x9e   : > { %1961 = vmatmul.f32.gmra.mxu0 %v4278_v46  ;;  %2122 = vmatmul.f32.gmra.mxu1 %v4313_v4 }
  0xa3   : > { %2036 = vmatmul.f32.gmra.mxu2 %v210_v54 }
  0xa4   : > { %2197 = vmatmul.f32.gmra.mxu3 %v325_v14  ;;  %v310_v14 = vrot.slane %v214_v2, 1 }
  0xa6   : > { %1964 = vmatmul.f32.gmra.mxu0 %v4297_v58  ;;  %2125 = vmatmul.f32.gmra.mxu1 %v4332_v18  ;;  %v322_v31 = vsel %vm317_vm0, %v309_v48, %v310_v14  ;;  %v311_v48 = vrot.slane %v215_v33, 1 }
  0xa8   : > { %v321_v60 = vsel %vm317_vm0, %v310_v14, %v311_v48  ;;  %v1848_v14 = vld [vmem:[%s5922_s1 + $0x2c8] sm:$0xff] }
  0xab   : > { %2039 = vmatmul.f32.gmra.mxu2 %v211_v3  ;;  %v4355_v41 = vpop.f32.mrf.mxu0  ;;  %v4357_v44 = vpop.f32.mrf.mxu1 }
  0xac   : > { %2200 = vmatmul.f32.gmra.mxu3 %v324_v38 }
  0xae   : > { %v1992_v51 = vpop.f32.mrf.mxu2  ;;  %1967 = vmatmul.f32.gmra.mxu0 %v4322_v10  ;;  %2128 = vmatmul.f32.gmra.mxu1 %v4361_v45 }
  0xaf   : > { %v2153_v53 = vpop.f32.mrf.mxu3 }
  0xb0   : > { %v4368_v54 = vadd.f32 %v2153_v53, %v1992_v51 }
  0xb2   : > { %5998 = vst [vmem:[#allocation19_spill] sm:$0xff] %v4368_v54 }
  0xb3   : > { %2042 = vmatmul.f32.gmra.mxu2 %v212_v15  ;;  %v4380_v3 = vpop.f32.mrf.mxu0  ;;  %v4382_v6 = vpop.f32.mrf.mxu1  ;;  %v4395_v15 = vld [vmem:[%s3963_s9 + $0x98] sm:$0xff] }
  0xb4   : > { %2203 = vmatmul.f32.gmra.mxu3 %v323_v62  ;;  %v286_v28 = vrot.slane %v4395_v15, 1  ;;  %v4420_v62 = vld [vmem:[%s3963_s9 + $0xa0] sm:$0xff] }
  0xb5   : > { %v287_v13 = vrot.slane %v4420_v62, 1 }
  0xb6   : > { %v1995_v19 = vpop.f32.mrf.mxu2  ;;  %1970 = vmatmul.f32.gmra.mxu0 %v4341_v25  ;;  %2131 = vmatmul.f32.gmra.mxu1 %v4386_v7  ;;  %v4411_v53 = vsel %vm317_vm0, %v285_v57, %v286_v28 }
  0xb7   : > { %v2156_v22 = vpop.f32.mrf.mxu3  ;;  %6002 = vst [vmem:[#allocation23_spill] sm:$0xff] %v4411_v53  ;;  %v4448_v40 = vsel %vm317_vm0, %v286_v28, %v287_v13 }
  0xb8   : > { %v4399_v23 = vadd.f32 %v2156_v22, %v1995_v19  ;;  %v1791_v19 = vld [vmem:[%s5922_s1 + $0x100] sm:$0xff]  ;;  %v1850_v22 = vld [vmem:[%s5922_s1 + $0x2d8] sm:$0xff]  ;;  %6006 = vst [vmem:[#allocation27_spill] sm:$0xff] %v4448_v40 }
  0xb9   : > { %2240 = vmatpush.msrb.mxu2 %v1791_v19  ;;  %2712 = vmatpush.msrb.mxu1 %v1850_v22  ;;  %v4454_v22 = vld [vmem:[%s3963_s9 + $0xa8] sm:$0xff] }
  0xba   : > { %6000 = vst [vmem:[#allocation21_spill] sm:$0xff] %v4399_v23  ;;  %v217_v23 = vld [vmem:[%s3963_s9 + $0x170] sm:$0xff] }
  0xbb   : > { %2045 = vmatmul.f32.gmra.mxu2 %v213_v39  ;;  %v4405_v38 = vpop.f32.mrf.mxu0  ;;  %v4407_v51 = vpop.f32.mrf.mxu1  ;;  %2713 = vmatpush.msrb.mxu1 %v1849_v61  ;;  %v288_v61 = vrot.slane %v4454_v22, 1 }
  0xbc   : > { %2206 = vmatmul.f32.gmra.mxu3 %v322_v31  ;;  %6001 = vst [vmem:[#allocation22_spill] sm:$0xff] %v4407_v51  ;;  %v1807_v31 = vld [vmem:[%s5922_s1 + $0x180] sm:$0xff]  ;;  %2869 = vmatpush.msra.mxu2 %v1870_v1 }
  0xbd   : > { %2401 = vmatpush.msrb.mxu3 %v1807_v31  ;;  %2714 = vmatpush.msrb.mxu1 %v1848_v14  ;;  %v1846_v14 = vld [vmem:[%s5922_s1 + $0x2b8] sm:$0xff] }
  0xbe   : > { %v1998_v39 = vpop.f32.mrf.mxu2  ;;  %1973 = vmatmul.f32.gmra.mxu0 %v4364_v49  ;;  %2134 = vmatmul.f32.gmra.mxu1 %v4411_v53 }
  0xbf   : > { %v2159_v9 = vpop.f32.mrf.mxu3 }
  0xc0   : > { %v4424_v57 = vadd.f32 %v2159_v9, %v1998_v39  ;;  %v216_v39 = vld [vmem:[%s3963_s9 + $0x168] sm:$0xff] }
  0xc1   : > { %v312_v19 = vrot.slane %v216_v39, 1 }
  0xc2   : > { %6003 = vst [vmem:[#allocation24_spill] sm:$0xff] %v4424_v57 }
  0xc3   : > { %2048 = vmatmul.f32.gmra.mxu2 %v214_v2  ;;  %v4442_v9 = vpop.f32.mrf.mxu0  ;;  %v4444_v32 = vpop.f32.mrf.mxu1  ;;  %v1847_v2 = vld [vmem:[%s5922_s1 + $0x2c0] sm:$0xff]  ;;  %v320_v57 = vsel %vm317_vm0, %v311_v48, %v312_v19  ;;  %v1886_v48 = vld [vmem:[%s5922_s1 + $0x3f8] sm:$0xff] }
  0xc4   : > { %2209 = vmatmul.f32.gmra.mxu3 %v321_v60  ;;  %6004 = vst [vmem:[#allocation25_spill] sm:$0xff] %v4442_v9  ;;  %2715 = vmatpush.msrb.mxu1 %v1847_v2 }
  0xc5   : > { %6005 = vst [vmem:[#allocation26_spill] sm:$0xff] %v4444_v32  ;;  %3030 = vmatpush.msra.mxu3 %v1886_v48  ;;  %v218_v48 = vld [vmem:[%s3963_s9 + $0x178] sm:$0xff] }
  0xc6   : > { %v2001_v31 = vpop.f32.mrf.mxu2  ;;  %1976 = vmatmul.f32.gmra.mxu0 %v4395_v15  ;;  %2137 = vmatmul.f32.gmra.mxu1 %v4448_v40  ;;  %v1842_v32 = vld [vmem:[%s5922_s1 + $0x298] sm:$0xff] }
  0xc7   : > { %v2162_v60 = vpop.f32.mrf.mxu3  ;;  %2716 = vmatpush.msrb.mxu1 %v1846_v14  ;;  %v313_v14 = vrot.slane %v217_v23, 1 }
  0xc8   : > { %v4461_v28 = vadd.f32 %v2162_v60, %v2001_v31  ;;  %v1845_v31 = vld [vmem:[%s5922_s1 + $0x2b0] sm:$0xff] }
  0xc9   : > { %2717 = vmatpush.msrb.mxu1 %v1845_v31  ;;  %v319_v1 = vsel %vm317_vm0, %v312_v19, %v313_v14  ;;  %v1902_v19 = vld [vmem:[%s5922_s1 + $0x478] sm:$0xff] }
  0xca   : > { %6007 = vst [vmem:[#allocation28_spill] sm:$0xff] %v4461_v28  ;;  %v4482_v28 = vsel %vm317_vm0, %v287_v13, %v288_v61  ;;  %3191 = vmatpush.msra.mxu0 %v1902_v19  ;;  %v1839_v19 = vld [vmem:[%s5922_s1 + $0x280] sm:$0xff] }
  0xcb   : > { %2051 = vmatmul.f32.gmra.mxu2 %v215_v33  ;;  %v4476_v2 = vpop.f32.mrf.mxu0  ;;  %v4478_v60 = vpop.f32.mrf.mxu1  ;;  %6010 = vst [vmem:[#allocation31_spill] sm:$0xff] %v4482_v28  ;;  %v4491_v33 = vld [vmem:[%s3963_s9 + $0xb0] sm:$0xff] }
  0xcc   : > { %2212 = vmatmul.f32.gmra.mxu3 %v320_v57  ;;  %6008 = vst [vmem:[#allocation29_spill] sm:$0xff] %v4476_v2  ;;  %v1844_v57 = vld [vmem:[%s5922_s1 + $0x2a8] sm:$0xff]  ;;  %v289_v31 = vrot.slane %v4491_v33, 1 }
  0xcd   : > { %6009 = vst [vmem:[#allocation30_spill] sm:$0xff] %v4478_v60  ;;  %v1843_v60 = vld [vmem:[%s5922_s1 + $0x2a0] sm:$0xff]  ;;  %2718 = vmatpush.msrb.mxu1 %v1844_v57  ;;  %v314_v57 = vrot.slane %v218_v48, 1 }
  0xce   : > { %v2004_v13 = vpop.f32.mrf.mxu2  ;;  %1979 = vmatmul.f32.gmra.mxu0 %v4420_v62  ;;  %2140 = vmatmul.f32.gmra.mxu1 %v4482_v28 }
  0xcf   : > { %v2165_v54 = vpop.f32.mrf.mxu3  ;;  %2719 = vmatpush.msrb.mxu1 %v1843_v60  ;;  %v4522_v60 = vld [vmem:[%s3963_s9 + $0xb8] sm:$0xff] }
  0xd0   : > { %v4501_v2 = vadd.f32 %v2165_v54, %v2004_v13  ;;  %v4516_v54 = vsel %vm317_vm0, %v288_v61, %v289_v31  ;;  %v1840_v61 = vld [vmem:[%s5922_s1 + $0x288] sm:$0xff] }
  0xd1   : > { %6014 = vst [vmem:[#allocation35_spill] sm:$0xff] %v4516_v54  ;;  %2720 = vmatpush.msrb.mxu1 %v1842_v32  ;;  %v318_v32 = vsel %vm317_vm0, %v313_v14, %v314_v57 }
  0xd2   : > { %6011 = vst [vmem:[#allocation32_spill] sm:$0xff] %v4501_v2 }
  0xd3   : > { %2054 = vmatmul.f32.gmra.mxu2 %v216_v39  ;;  %v4510_v9 = vpop.f32.mrf.mxu0  ;;  %v4512_v51 = vpop.f32.mrf.mxu1  ;;  %v1841_v39 = vld [vmem:[%s5922_s1 + $0x290] sm:$0xff] }
  0xd4   : > { %2215 = vmatmul.f32.gmra.mxu3 %v319_v1  ;;  %6012 = vst [vmem:[#allocation33_spill] sm:$0xff] %v4510_v9  ;;  %2721 = vmatpush.msrb.mxu1 %v1841_v39 }
  0xd5   : > { %6013 = vst [vmem:[#allocation34_spill] sm:$0xff] %v4512_v51  ;;  %v4535_v51 = vrot.slane %v4522_v60, 1 }
  0xd6   : > { %v2007_v13 = vpop.f32.mrf.mxu2  ;;  %1982 = vmatmul.f32.gmra.mxu0 %v4454_v22  ;;  %2143 = vmatmul.f32.gmra.mxu1 %v4516_v54 }
  0xd7   : > { %v2168_v1 = vpop.f32.mrf.mxu3  ;;  %2722 = vmatpush.msrb.mxu1 %v1840_v61 }
  0xd8   : > { %v4532_v2 = vadd.f32 %v2168_v1, %v2007_v13  ;;  %v4549_v13 = vsel %vm317_vm0, %v289_v31, %v4535_v51 }
  0xd9   : > { %6016 = vst [vmem:[#allocation37_spill] sm:$0xff] %v4549_v13  ;;  %2723 = vmatpush.msrb.mxu1 %v1839_v19  ;;  %v6019_v19 = vrot.slane %v3978_v27, 1 }
  0xda   : > { %6015 = vst [vmem:[#allocation36_spill] sm:$0xff] %v4532_v2 }
  0xdb   : > { %2057 = vmatmul.f32.gmra.mxu2 %v217_v23  ;;  %v4542_v9 = vpop.f32.mrf.mxu0  ;;  %v4544_v54 = vpop.f32.mrf.mxu1  ;;  %v6018_v23 = vrot.slane %v3994_v34, 1  ;;  %v341_v2 = vsel %vm317_vm0, %v4535_v51, %v6019_v19  ;;  %v4581_v19 = vrot.slane %v4069_v63, 2 }
  0xdc   : > { %2218 = vmatmul.f32.gmra.mxu3 %v318_v32 }
  0xdd   : > { %v365_v61 = vsel %vm317_vm0, %v314_v57, %v6018_v23  ;;  %v1885_v57 = vld [vmem:[%s5922_s1 + $0x3f0] sm:$0xff]  ;;  %6021 = vst [vmem:[#allocation40_spill] sm:$0xff] %v4581_v19 }
  0xde   : > { %v2010_v39 = vpop.f32.mrf.mxu2  ;;  %1985 = vmatmul.f32.gmra.mxu0 %v4491_v33  ;;  %2146 = vmatmul.f32.gmra.mxu1 %v4549_v13 }
  0xdf   : > { %v2171_v1 = vpop.f32.mrf.mxu3  ;;  %3031 = vmatpush.msra.mxu3 %v1885_v57 }
  0xe0   : > { %v4553_v14 = vadd.f32 %v2171_v1, %v2010_v39  ;;  %v1869_v39 = vld [vmem:[%s5922_s1 + $0x370] sm:$0xff]  ;;  %v415_v1 = vrot.slane %v3997_v35, 2 }
  0xe1   : > { %2870 = vmatpush.msra.mxu2 %v1869_v39 }
  0xe2   : > { %6017 = vst [vmem:[#allocation38_spill] sm:$0xff] %v4553_v14  ;;  %v800_v14 = vrot.slane %v4091_v8, 2 }
  0xe3   : > { %2060 = vmatmul.f32.gmra.mxu2 %v218_v48  ;;  %v4559_v32 = vpop.f32.mrf.mxu0  ;;  %v4561_v31 = vpop.f32.mrf.mxu1  ;;  %v5930_v48 = vrot.slane %v3994_v34, 2 }
  0xe4   : > { %2221 = vmatmul.f32.gmra.mxu3 %v365_v61 }
  0xe5   : > { %v509_v35 = vsel %vm462_vm1, %v5930_v48, %v415_v1 }
  0xe6   : > { %v2013_v27 = vpop.f32.mrf.mxu2  ;;  %1988 = vmatmul.f32.gmra.mxu0 %v4522_v60  ;;  %2149 = vmatmul.f32.gmra.mxu1 %v341_v2  ;;  %v893_v2 = vsel %vm462_vm1, %v4581_v19, %v800_v14 }
  0xe7   : > { %v2174_v23 = vpop.f32.mrf.mxu3 }
  0xe8   : > { %v4578_v61 = vadd.f32 %v2174_v23, %v2013_v27  ;;  %v1901_v27 = vld [vmem:[%s5922_s1 + $0x470] sm:$0xff]  ;;  %v416_v23 = vrot.slane %v4037_v50, 2 }
  0xe9   : > { %3192 = vmatpush.msra.mxu0 %v1901_v27 }
  0xea   : > { %6020 = vst [vmem:[#allocation39_spill] sm:$0xff] %v4578_v61  ;;  %v508_v34 = vsel %vm462_vm1, %v415_v1, %v416_v23 }
  0xeb   : > { %2241 = vmatmul.f32.vlgmr.msrb.gmra.mxu2 %v509_v35  ;;  %v4589_v39 = vpop.f32.mrf.mxu0  ;;  %v4591_v57 = vpop.f32.mrf.mxu1  ;;  %v801_v35 = vrot.slane %v4113_v17, 2 }
  0xec   : > { %2402 = vmatmul.f32.vlgmr.msrb.gmra.mxu3 %v4069_v63  ;;  %6022 = vst [vmem:[#allocation41_spill] sm:$0xff] %v4589_v39 }
  0xed   : > { %6023 = vst [vmem:[#allocation42_spill] sm:$0xff] %v4591_v57  ;;  %v892_v50 = vsel %vm462_vm1, %v800_v14, %v801_v35 }
  0xee   : > { %v2016_v61 = vpop.f32.mrf.mxu2  ;;  %2563 = vmatmul.f32.vlgmr.msrb.gmra.mxu0 %v4101_v12  ;;  %2724 = vmatmul.f32.vlgmr.msrb.gmra.mxu1 %v893_v2 }
  0xef   : > { %v2177_v48 = vpop.f32.mrf.mxu3 }
  0xf0   : > { %v4601_v63 = vadd.f32 %v2177_v48, %v2016_v61  ;;  %v802_v61 = vrot.slane %v4129_v24, 2 }
  0xf2   : > { %6024 = vst [vmem:[#allocation43_spill] sm:$0xff] %v4601_v63  ;;  %v891_v14 = vsel %vm462_vm1, %v801_v35, %v802_v61 }
  0xf3   : > { %2244 = vmatmul.f32.gmra.mxu2 %v508_v34  ;;  %v4607_v57 = vpop.f32.mrf.mxu0  ;;  %v4609_v39 = vpop.f32.mrf.mxu1  ;;  %v507_v34 = vsel %vm462_vm1, %v416_v23, %v4581_v19 }
  0xf4   : > { %2405 = vmatmul.f32.gmra.mxu3 %v4091_v8 }
  0xf6   : > { %v2019_v27 = vpop.f32.mrf.mxu2  ;;  %2566 = vmatmul.f32.gmra.mxu0 %v4123_v21  ;;  %2727 = vmatmul.f32.gmra.mxu1 %v892_v50  ;;  %v803_v21 = vrot.slane %v4148_v37, 2 }
  0xf7   : > { %v2180_v12 = vpop.f32.mrf.mxu3 }
  0xf8   : > { %v4614_v48 = vadd.f32 %v2180_v12, %v2019_v27  ;;  %v1868_v12 = vld [vmem:[%s5922_s1 + $0x368] sm:$0xff] }
  0xf9   : > { %v1884_v27 = vld [vmem:[%s5922_s1 + $0x3e8] sm:$0xff]  ;;  %2871 = vmatpush.msra.mxu2 %v1868_v12  ;;  %v890_v12 = vsel %vm462_vm1, %v802_v61, %v803_v21 }
  0xfa   : > { %6025 = vst [vmem:[#allocation44_spill] sm:$0xff] %v4614_v48  ;;  %3032 = vmatpush.msra.mxu3 %v1884_v27  ;;  %v1900_v27 = vld [vmem:[%s5922_s1 + $0x468] sm:$0xff] }
  0xfb   : > { %2247 = vmatmul.f32.gmra.mxu2 %v507_v34  ;;  %v4621_v8 = vpop.f32.mrf.mxu0  ;;  %v4623_v1 = vpop.f32.mrf.mxu1  ;;  %3193 = vmatpush.msra.mxu0 %v1900_v27 }
  0xfc   : > { %2408 = vmatmul.f32.gmra.mxu3 %v4113_v17 }
  0xfe   : > { %v2022_v23 = vpop.f32.mrf.mxu2  ;;  %2569 = vmatmul.f32.gmra.mxu0 %v4139_v30  ;;  %2730 = vmatmul.f32.gmra.mxu1 %v891_v14 }
  0xff   : > { %v2183_v34 = vpop.f32.mrf.mxu3 }
 0x100   : > { %v4634_v17 = vadd.f32 %v2183_v34, %v2022_v23 }
 0x102   : > { %6026 = vst [vmem:[#allocation45_spill] sm:$0xff] %v4634_v17 }
 0x103   : > { %2250 = vmatmul.f32.gmra.mxu2 %v893_v2  ;;  %v4638_v35 = vpop.f32.mrf.mxu0  ;;  %v4640_v48 = vpop.f32.mrf.mxu1 }
 0x104   : > { %2411 = vmatmul.f32.gmra.mxu3 %v4129_v24  ;;  %v804_v24 = vrot.slane %v4170_v47, 2 }
 0x106   : > { %v2025_v30 = vpop.f32.mrf.mxu2  ;;  %2572 = vmatmul.f32.gmra.mxu0 %v4158_v42  ;;  %2733 = vmatmul.f32.gmra.mxu1 %v890_v12  ;;  %v889_v17 = vsel %vm462_vm1, %v803_v21, %v804_v24  ;;  %v1867_v21 = vld [vmem:[%s5922_s1 + $0x360] sm:$0xff] }
 0x107   : > { %v2186_v23 = vpop.f32.mrf.mxu3  ;;  %2872 = vmatpush.msra.mxu2 %v1867_v21 }
 0x108   : > { %v4648_v2 = vadd.f32 %v2186_v23, %v2025_v30  ;;  %v805_v30 = vrot.slane %v4186_v55, 2 }
 0x10a   : > { %6027 = vst [vmem:[#allocation46_spill] sm:$0xff] %v4648_v2  ;;  %v888_v23 = vsel %vm462_vm1, %v804_v24, %v805_v30 }
 0x10b   : > { %2253 = vmatmul.f32.gmra.mxu2 %v892_v50  ;;  %v4652_v34 = vpop.f32.mrf.mxu0  ;;  %v4654_v61 = vpop.f32.mrf.mxu1 }
 0x10c   : > { %2414 = vmatmul.f32.gmra.mxu3 %v4148_v37 }
 0x10e   : > { %v2028_v27 = vpop.f32.mrf.mxu2  ;;  %2575 = vmatmul.f32.gmra.mxu0 %v4180_v52  ;;  %2736 = vmatmul.f32.gmra.mxu1 %v889_v17  ;;  %v806_v52 = vrot.slane %v4205_v0, 2 }
 0x10f   : > { %v2189_v63 = vpop.f32.mrf.mxu3 }
 0x110   : > { %v4659_v42 = vadd.f32 %v2189_v63, %v2028_v27  ;;  %v1883_v63 = vld [vmem:[%s5922_s1 + $0x3e0] sm:$0xff]  ;;  %v887_v21 = vsel %vm462_vm1, %v805_v30, %v806_v52 }
 0x111   : > { %3033 = vmatpush.msra.mxu3 %v1883_v63  ;;  %v1899_v63 = vld [vmem:[%s5922_s1 + $0x460] sm:$0xff] }
 0x112   : > { %6028 = vst [vmem:[#allocation47_spill] sm:$0xff] %v4659_v42  ;;  %3194 = vmatpush.msra.mxu0 %v1899_v63 }
 0x113   : > { %2256 = vmatmul.f32.gmra.mxu2 %v891_v14  ;;  %v4663_v37 = vpop.f32.mrf.mxu0  ;;  %v4665_v50 = vpop.f32.mrf.mxu1 }
 0x114   : > { %2417 = vmatmul.f32.gmra.mxu3 %v4170_v47 }
 0x116   : > { %v2031_v14 = vpop.f32.mrf.mxu2  ;;  %2578 = vmatmul.f32.gmra.mxu0 %v4196_v59  ;;  %2739 = vmatmul.f32.gmra.mxu1 %v888_v23 }
 0x117   : > { %v2192_v27 = vpop.f32.mrf.mxu3 }
 0x118   : > { %v4676_v47 = vadd.f32 %v2192_v27, %v2031_v14 }
 0x11a   : > { %6029 = vst [vmem:[#allocation48_spill] sm:$0xff] %v4676_v47 }
 0x11b   : > { %2259 = vmatmul.f32.gmra.mxu2 %v890_v12  ;;  %v4680_v24 = vpop.f32.mrf.mxu0  ;;  %v4682_v42 = vpop.f32.mrf.mxu1 }
 0x11c   : > { %2420 = vmatmul.f32.gmra.mxu3 %v4186_v55  ;;  %v807_v55 = vrot.slane %v4227_v11, 2 }
 0x11e   : > { %v2034_v59 = vpop.f32.mrf.mxu2  ;;  %2581 = vmatmul.f32.gmra.mxu0 %v4215_v5  ;;  %2742 = vmatmul.f32.gmra.mxu1 %v887_v21  ;;  %v886_v47 = vsel %vm462_vm1, %v806_v52, %v807_v55  ;;  %v1866_v52 = vld [vmem:[%s5922_s1 + $0x358] sm:$0xff] }
 0x11f   : > { %v2195_v14 = vpop.f32.mrf.mxu3  ;;  %2873 = vmatpush.msra.mxu2 %v1866_v52 }
 0x120   : > { %v4690_v12 = vadd.f32 %v2195_v14, %v2034_v59  ;;  %v808_v59 = vrot.slane %v4243_v20, 2 }
 0x122   : > { %6030 = vst [vmem:[#allocation49_spill] sm:$0xff] %v4690_v12  ;;  %v885_v14 = vsel %vm462_vm1, %v807_v55, %v808_v59 }
 0x123   : > { %2262 = vmatmul.f32.gmra.mxu2 %v889_v17  ;;  %v4694_v27 = vpop.f32.mrf.mxu0  ;;  %v4696_v30 = vpop.f32.mrf.mxu1 }
 0x124   : > { %2423 = vmatmul.f32.gmra.mxu3 %v4205_v0 }
 0x126   : > { %v2037_v63 = vpop.f32.mrf.mxu2  ;;  %2584 = vmatmul.f32.gmra.mxu0 %v4237_v16  ;;  %2745 = vmatmul.f32.gmra.mxu1 %v886_v47  ;;  %v809_v16 = vrot.slane %v4262_v36, 2 }
 0x127   : > { %v2198_v2 = vpop.f32.mrf.mxu3 }
 0x128   : > { %v4701_v5 = vadd.f32 %v2198_v2, %v2037_v63  ;;  %v1882_v2 = vld [vmem:[%s5922_s1 + $0x3d8] sm:$0xff]  ;;  %v884_v52 = vsel %vm462_vm1, %v808_v59, %v809_v16 }
 0x129   : > { %3034 = vmatpush.msra.mxu3 %v1882_v2  ;;  %v1898_v2 = vld [vmem:[%s5922_s1 + $0x458] sm:$0xff] }
 0x12a   : > { %6031 = vst [vmem:[#allocation50_spill] sm:$0xff] %v4701_v5  ;;  %3195 = vmatpush.msra.mxu0 %v1898_v2 }
 0x12b   : > { %2265 = vmatmul.f32.gmra.mxu2 %v888_v23  ;;  %v4705_v0 = vpop.f32.mrf.mxu0  ;;  %v4707_v17 = vpop.f32.mrf.mxu1 }
 0x12c   : > { %2426 = vmatmul.f32.gmra.mxu3 %v4227_v11 }
 0x12e   : > { %v2040_v23 = vpop.f32.mrf.mxu2  ;;  %2587 = vmatmul.f32.gmra.mxu0 %v4253_v26  ;;  %2748 = vmatmul.f32.gmra.mxu1 %v885_v14 }
 0x12f   : > { %v2201_v63 = vpop.f32.mrf.mxu3 }
 0x130   : > { %v4718_v11 = vadd.f32 %v2201_v63, %v2040_v23 }
 0x132   : > { %6032 = vst [vmem:[#allocation51_spill] sm:$0xff] %v4718_v11 }
 0x133   : > { %2268 = vmatmul.f32.gmra.mxu2 %v887_v21  ;;  %v4722_v55 = vpop.f32.mrf.mxu0  ;;  %v4724_v5 = vpop.f32.mrf.mxu1 }
 0x134   : > { %2429 = vmatmul.f32.gmra.mxu3 %v4243_v20  ;;  %v810_v20 = vrot.slane %v4278_v46, 2 }
 0x136   : > { %v2043_v26 = vpop.f32.mrf.mxu2  ;;  %2590 = vmatmul.f32.gmra.mxu0 %v4272_v43  ;;  %2751 = vmatmul.f32.gmra.mxu1 %v884_v52  ;;  %v883_v11 = vsel %vm462_vm1, %v809_v16, %v810_v20  ;;  %v1865_v16 = vld [vmem:[%s5922_s1 + $0x350] sm:$0xff] }
 0x137   : > { %v2204_v23 = vpop.f32.mrf.mxu3  ;;  %2874 = vmatpush.msra.mxu2 %v1865_v16 }
 0x138   : > { %v4732_v21 = vadd.f32 %v2204_v23, %v2043_v26  ;;  %v811_v26 = vrot.slane %v4297_v58, 2 }
 0x13a   : > { %6033 = vst [vmem:[#allocation52_spill] sm:$0xff] %v4732_v21  ;;  %v882_v23 = vsel %vm462_vm1, %v810_v20, %v811_v26 }
 0x13b   : > { %2271 = vmatmul.f32.gmra.mxu2 %v886_v47  ;;  %v4736_v63 = vpop.f32.mrf.mxu0  ;;  %v4738_v59 = vpop.f32.mrf.mxu1 }
 0x13c   : > { %2432 = vmatmul.f32.gmra.mxu3 %v4262_v36 }
 0x13e   : > { %v2046_v2 = vpop.f32.mrf.mxu2  ;;  %2593 = vmatmul.f32.gmra.mxu0 %v4294_v56  ;;  %2754 = vmatmul.f32.gmra.mxu1 %v883_v11  ;;  %v812_v56 = vrot.slane %v4322_v10, 2 }
 0x13f   : > { %v2207_v12 = vpop.f32.mrf.mxu3 }
 0x140   : > { %v4743_v43 = vadd.f32 %v2207_v12, %v2046_v2  ;;  %v1881_v12 = vld [vmem:[%s5922_s1 + $0x3d0] sm:$0xff]  ;;  %v881_v16 = vsel %vm462_vm1, %v811_v26, %v812_v56 }
 0x141   : > { %3035 = vmatpush.msra.mxu3 %v1881_v12  ;;  %v1897_v12 = vld [vmem:[%s5922_s1 + $0x450] sm:$0xff] }
 0x142   : > { %6034 = vst [vmem:[#allocation53_spill] sm:$0xff] %v4743_v43  ;;  %3196 = vmatpush.msra.mxu0 %v1897_v12 }
 0x143   : > { %2274 = vmatmul.f32.gmra.mxu2 %v885_v14  ;;  %v4747_v36 = vpop.f32.mrf.mxu0  ;;  %v4749_v47 = vpop.f32.mrf.mxu1 }
 0x144   : > { %2435 = vmatmul.f32.gmra.mxu3 %v4278_v46 }
 0x146   : > { %v2049_v14 = vpop.f32.mrf.mxu2  ;;  %2596 = vmatmul.f32.gmra.mxu0 %v4313_v4  ;;  %2757 = vmatmul.f32.gmra.mxu1 %v882_v23 }
 0x147   : > { %v2210_v2 = vpop.f32.mrf.mxu3 }
 0x148   : > { %v4760_v46 = vadd.f32 %v2210_v2, %v2049_v14 }
 0x14a   : > { %6035 = vst [vmem:[#allocation54_spill] sm:$0xff] %v4760_v46 }
 0x14b   : > { %2277 = vmatmul.f32.gmra.mxu2 %v884_v52  ;;  %v4764_v20 = vpop.f32.mrf.mxu0  ;;  %v4766_v43 = vpop.f32.mrf.mxu1 }
 0x14c   : > { %2438 = vmatmul.f32.gmra.mxu3 %v4297_v58  ;;  %v813_v58 = vrot.slane %v4341_v25, 2 }
 0x14e   : > { %v2052_v4 = vpop.f32.mrf.mxu2  ;;  %2599 = vmatmul.f32.gmra.mxu0 %v4332_v18  ;;  %2760 = vmatmul.f32.gmra.mxu1 %v881_v16  ;;  %v880_v46 = vsel %vm462_vm1, %v812_v56, %v813_v58 }
 0x14f   : > { %v2213_v14 = vpop.f32.mrf.mxu3 }
 0x150   : > { %v4774_v52 = vadd.f32 %v2213_v14, %v2052_v4  ;;  %v814_v4 = vrot.slane %v4364_v49, 2 }
 0x152   : > { %6036 = vst [vmem:[#allocation55_spill] sm:$0xff] %v4774_v52  ;;  %v879_v14 = vsel %vm462_vm1, %v813_v58, %v814_v4 }
 0x153   : > { %2280 = vmatmul.f32.gmra.mxu2 %v883_v11  ;;  %v4778_v2 = vpop.f32.mrf.mxu0  ;;  %v4780_v26 = vpop.f32.mrf.mxu1 }
 0x154   : > { %2441 = vmatmul.f32.gmra.mxu3 %v4322_v10  ;;  %v3415_v10 = vld [vmem:[%s5923_s2 + $0x78] sm:$0xff] }
 0x155   : > { %3416 = vmatpush.msra.mxu1 %v3415_v10 }
 0x156   : > { %v2055_v12 = vpop.f32.mrf.mxu2  ;;  %2602 = vmatmul.f32.gmra.mxu0 %v4361_v45  ;;  %2763 = vmatmul.f32.gmra.mxu1 %v880_v46  ;;  %v815_v45 = vrot.slane %v4395_v15, 2 }
 0x157   : > { %v2216_v21 = vpop.f32.mrf.mxu3 }
 0x158   : > { %v4785_v18 = vadd.f32 %v2216_v21, %v2055_v12  ;;  %v1864_v21 = vld [vmem:[%s5922_s1 + $0x348] sm:$0xff] }
 0x159   : > { %2875 = vmatpush.msra.mxu2 %v1864_v21  ;;  %v1880_v12 = vld [vmem:[%s5922_s1 + $0x3c8] sm:$0xff] }
 0x15a   : > { %6037 = vst [vmem:[#allocation56_spill] sm:$0xff] %v4785_v18  ;;  %3036 = vmatpush.msra.mxu3 %v1880_v12  ;;  %v878_v18 = vsel %vm462_vm1, %v814_v4, %v815_v45 }
 0x15b   : > { %2283 = vmatmul.f32.gmra.mxu2 %v882_v23  ;;  %v4792_v11 = vpop.f32.mrf.mxu0  ;;  %v4794_v56 = vpop.f32.mrf.mxu1 }
 0x15c   : > { %2444 = vmatmul.f32.gmra.mxu3 %v4341_v25 }
 0x15e   : > { %v2058_v10 = vpop.f32.mrf.mxu2  ;;  %2605 = vmatmul.f32.gmra.mxu0 %v4386_v7  ;;  %2766 = vmatmul.f32.gmra.mxu1 %v879_v14  ;;  %v1896_v7 = vld [vmem:[%s5922_s1 + $0x448] sm:$0xff] }
 0x15f   : > { %v2219_v23 = vpop.f32.mrf.mxu3  ;;  %3197 = vmatpush.msra.mxu0 %v1896_v7  ;;  %v3414_v7 = vld [vmem:[%s5923_s2 + $0x70] sm:$0xff] }
 0x160   : > { %v4805_v25 = vadd.f32 %v2219_v23, %v2058_v10  ;;  %3417 = vmatpush.msra.mxu1 %v3414_v7 }
 0x162   : > { %6038 = vst [vmem:[#allocation57_spill] sm:$0xff] %v4805_v25  ;;  %v2082_v25 = vadd.f32 %v4357_v44, %v4355_v41 }
 0x163   : > { %2286 = vmatmul.f32.gmra.mxu2 %v881_v16  ;;  %v4809_v58 = vpop.f32.mrf.mxu0  ;;  %v4811_v21 = vpop.f32.mrf.mxu1 }
 0x164   : > { %2447 = vmatmul.f32.gmra.mxu3 %v4364_v49  ;;  %6039 = vst [vmem:[#allocation58_spill] sm:$0xff] %v4811_v21  ;;  %v816_v49 = vrot.slane %v4420_v62, 2 }
 0x166   : > { %v2061_v52 = vpop.f32.mrf.mxu2  ;;  %2608 = vmatmul.f32.gmra.mxu0 %v4411_v53  ;;  %2769 = vmatmul.f32.gmra.mxu1 %v878_v18  ;;  %v877_v4 = vsel %vm462_vm1, %v815_v45, %v816_v49  ;;  %v582_v53 = vld [vmem:[%s3963_s9 + $0xd0] sm:$0xff] }
 0x167   : > { %v2222_v10 = vpop.f32.mrf.mxu3 }
 0x168   : > { %v4819_v12 = vadd.f32 %v2222_v10, %v2061_v52  ;;  %v817_v10 = vrot.slane %v4454_v22, 2 }
 0x16a   : > { %v876_v44 = vsel %vm462_vm1, %v816_v49, %v817_v10 }
 0x16b   : > { %2289 = vmatmul.f32.gmra.mxu2 %v880_v46  ;;  %v2564_v16 = vpop.f32.mrf.mxu0  ;;  %v2725_v23 = vpop.f32.mrf.mxu1 }
 0x16c   : > { %2450 = vmatmul.f32.gmra.mxu3 %v4395_v15 }
 0x16e   : > { %v2242_v19 = vpop.f32.mrf.mxu2  ;;  %2611 = vmatmul.f32.gmra.mxu0 %v4448_v40  ;;  %2772 = vmatmul.f32.gmra.mxu1 %v877_v4 }
 0x16f   : > { %v2403_v21 = vpop.f32.mrf.mxu3  ;;  %v2243_v52 = vadd.f32 %v2242_v19, %v2082_v25  ;;  %v1863_v19 = vld [vmem:[%s5922_s1 + $0x340] sm:$0xff]  ;;  %v2085_v25 = vadd.f32 %v4382_v6, %v4380_v3 }
 0x170   : > { %2876 = vmatpush.msra.mxu2 %v1863_v19 }
 0x171   : > { %v2404_v15 = vadd.f32 %v2403_v21, %v2243_v52 }
 0x173   : > { %v2565_v46 = vadd.f32 %v2564_v16, %v2404_v15  ;;  %2292 = vmatmul.f32.gmra.mxu2 %v879_v14  ;;  %v2567_v45 = vpop.f32.mrf.mxu0  ;;  %v2728_v41 = vpop.f32.mrf.mxu1  ;;  %v1879_v14 = vld [vmem:[%s5922_s1 + $0x3c0] sm:$0xff]  ;;  %v818_v16 = vrot.slane %v4491_v33, 2  ;;  %v6040_v15 = vld [vmem:[#allocation22_spill] sm:$0xff] }
 0x174   : > { %2453 = vmatmul.f32.gmra.mxu3 %v4420_v62 }
 0x175   : > { %v4840_v40 = vadd.f32 %v2725_v23, %v2565_v46  ;;  %3037 = vmatpush.msra.mxu3 %v1879_v14  ;;  %v875_v23 = vsel %vm462_vm1, %v817_v10, %v818_v16  ;;  %v2088_v46 = vadd.f32 %v6040_v15, %v4405_v38  ;;  %v6043_v15 = vld [vmem:[#allocation26_spill] sm:$0xff] }
 0x176   : > { %v2245_v62 = vpop.f32.mrf.mxu2  ;;  %2614 = vmatmul.f32.gmra.mxu0 %v4482_v28  ;;  %2775 = vmatmul.f32.gmra.mxu1 %v876_v44 }
 0x177   : > { %v2406_v21 = vpop.f32.mrf.mxu3  ;;  %v2246_v49 = vadd.f32 %v2245_v62, %v2085_v25  ;;  %v1895_v25 = vld [vmem:[%s5922_s1 + $0x440] sm:$0xff]  ;;  %v4859_v62 = vrot.slane %v4522_v60, 2 }
 0x178   : > { %3198 = vmatpush.msra.mxu0 %v1895_v25  ;;  %v3413_v25 = vld [vmem:[%s5923_s2 + $0x68] sm:$0xff] }
 0x179   : > { %v2407_v52 = vadd.f32 %v2406_v21, %v2246_v49  ;;  %v874_v49 = vsel %vm462_vm1, %v818_v16, %v4859_v62  ;;  %3418 = vmatpush.msra.mxu1 %v3413_v25 }
 0x17b   : > { %v2568_v7 = vadd.f32 %v2567_v45, %v2407_v52  ;;  %2295 = vmatmul.f32.gmra.mxu2 %v878_v18  ;;  %v2570_v3 = vpop.f32.mrf.mxu0  ;;  %v2731_v6 = vpop.f32.mrf.mxu1  ;;  %v6041_v18 = vld [vmem:[#allocation35_spill] sm:$0xff] }
 0x17c   : > { %2456 = vmatmul.f32.gmra.mxu3 %v4454_v22  ;;  %v580_v52 = vld [vmem:[%s3963_s9 + $0xc0] sm:$0xff] }
 0x17d   : > { %v4852_v19 = vadd.f32 %v2728_v41, %v2568_v7  ;;  %v6042_v7 = vld [vmem:[#allocation25_spill] sm:$0xff] }
 0x17e   : > { %v2248_v14 = vpop.f32.mrf.mxu2  ;;  %2617 = vmatmul.f32.gmra.mxu0 %v6041_v18  ;;  %2778 = vmatmul.f32.gmra.mxu1 %v875_v23  ;;  %v2091_v18 = vadd.f32 %v6043_v15, %v6042_v7 }
 0x17f   : > { %v2409_v45 = vpop.f32.mrf.mxu3  ;;  %v2249_v22 = vadd.f32 %v2248_v14, %v2088_v46 }
 0x181   : > { %v2410_v10 = vadd.f32 %v2409_v45, %v2249_v22 }
 0x183   : > { %v2571_v21 = vadd.f32 %v2570_v3, %v2410_v10  ;;  %2298 = vmatmul.f32.gmra.mxu2 %v877_v4  ;;  %v2573_v38 = vpop.f32.mrf.mxu0  ;;  %v2734_v41 = vpop.f32.mrf.mxu1  ;;  %v820_v3 = vrot.slane %v580_v52, 2 }
 0x184   : > { %2459 = vmatmul.f32.gmra.mxu3 %v4491_v33  ;;  %v676_v33 = vrot.slane %v580_v52, 1 }
 0x185   : > { %v4868_v46 = vadd.f32 %v2731_v6, %v2571_v21  ;;  %v1862_v21 = vld [vmem:[%s5922_s1 + $0x338] sm:$0xff] }
 0x186   : > { %v2251_v14 = vpop.f32.mrf.mxu2  ;;  %2620 = vmatmul.f32.gmra.mxu0 %v4549_v13  ;;  %2781 = vmatmul.f32.gmra.mxu1 %v874_v49  ;;  %v4878_v10 = vsel %vm317_vm0, %v4535_v51, %v676_v33  ;;  %v1878_v51 = vld [vmem:[%s5922_s1 + $0x3b8] sm:$0xff] }
 0x187   : > { %v2412_v28 = vpop.f32.mrf.mxu3  ;;  %v2252_v4 = vadd.f32 %v2251_v14, %v2091_v18  ;;  %6044 = vst [vmem:[#allocation22_spill] sm:$0xff] %v4878_v10  ;;  %v873_v18 = vsel %vm462_vm1, %v4859_v62, %v820_v3  ;;  %2877 = vmatpush.msra.mxu2 %v1862_v21  ;;  %3038 = vmatpush.msra.mxu3 %v1878_v51  ;;  %v678_v51 = vrot.slane %v582_v53, 1 }
 0x189   : > { %v2413_v16 = vadd.f32 %v2412_v28, %v2252_v4  ;;  %v581_v28 = vld [vmem:[%s3963_s9 + $0xc8] sm:$0xff] }
 0x18a   : > { %v677_v25 = vrot.slane %v581_v28, 1 }
 0x18b   : > { %v2574_v45 = vadd.f32 %v2573_v38, %v2413_v16  ;;  %2301 = vmatmul.f32.gmra.mxu2 %v876_v44  ;;  %v2576_v6 = vpop.f32.mrf.mxu0  ;;  %v2737_v22 = vpop.f32.mrf.mxu1  ;;  %v6045_v44 = vld [vmem:[#allocation29_spill] sm:$0xff]  ;;  %v6046_v38 = vld [vmem:[#allocation30_spill] sm:$0xff]  ;;  %v821_v16 = vrot.slane %v581_v28, 2 }
 0x18c   : > { %2462 = vmatmul.f32.gmra.mxu3 %v4522_v60  ;;  %v2094_v60 = vadd.f32 %v6046_v38, %v6045_v44  ;;  %v4897_v44 = vsel %vm317_vm0, %v676_v33, %v677_v25 }
 0x18d   : > { %v4889_v7 = vadd.f32 %v2734_v41, %v2574_v45  ;;  %6047 = vst [vmem:[#allocation25_spill] sm:$0xff] %v4897_v44  ;;  %v872_v38 = vsel %vm462_vm1, %v820_v3, %v821_v16  ;;  %v822_v3 = vrot.slane %v582_v53, 2 }
 0x18e   : > { %v2254_v15 = vpop.f32.mrf.mxu2  ;;  %2623 = vmatmul.f32.gmra.mxu0 %v4878_v10  ;;  %2784 = vmatmul.f32.gmra.mxu1 %v873_v18  ;;  %v6048_v10 = vld [vmem:[#allocation33_spill] sm:$0xff]  ;;  %v6049_v18 = vld [vmem:[#allocation34_spill] sm:$0xff] }
 0x18f   : > { %v2415_v14 = vpop.f32.mrf.mxu3  ;;  %v2255_v4 = vadd.f32 %v2254_v15, %v2094_v60  ;;  %v2097_v60 = vadd.f32 %v6049_v18, %v6048_v10  ;;  %v4912_v10 = vsel %vm317_vm0, %v677_v25, %v678_v51  ;;  %v3827_v18 = vld [vmem:[%s3963_s9 + $0xc0] sm:$0xff] }
 0x190   : > { %6050 = vst [vmem:[#allocation26_spill] sm:$0xff] %v4912_v10 }
 0x191   : > { %v2416_v21 = vadd.f32 %v2415_v14, %v2255_v4 }
 0x193   : > { %v2577_v13 = vadd.f32 %v2576_v6, %v2416_v21  ;;  %2304 = vmatmul.f32.gmra.mxu2 %v875_v23  ;;  %v2579_v41 = vpop.f32.mrf.mxu0  ;;  %v2740_v45 = vpop.f32.mrf.mxu1  ;;  %v1894_v23 = vld [vmem:[%s5922_s1 + $0x438] sm:$0xff]  ;;  %v871_v21 = vsel %vm462_vm1, %v821_v16, %v822_v3  ;;  %v3412_v16 = vld [vmem:[%s5923_s2 + $0x60] sm:$0xff] }
 0x194   : > { %2465 = vmatmul.f32.gmra.mxu3 %v580_v52  ;;  %3199 = vmatpush.msra.mxu0 %v1894_v23 }
 0x195   : > { %v4904_v15 = vadd.f32 %v2737_v22, %v2577_v13  ;;  %3419 = vmatpush.msra.mxu1 %v3412_v16 }
 0x196   : > { %v2257_v52 = vpop.f32.mrf.mxu2  ;;  %2626 = vmatmul.f32.gmra.mxu0 %v4897_v44  ;;  %2787 = vmatmul.f32.gmra.mxu1 %v872_v38  ;;  %v438_v44 = vrot.slane %v3827_v18, 2  ;;  %v583_v38 = vld [vmem:[%s3963_s9 + $0xd8] sm:$0xff]  ;;  %v3828_v18 = vld [vmem:[%s3963_s9 + $0xc8] sm:$0xff] }
 0x197   : > { %v2418_v6 = vpop.f32.mrf.mxu3  ;;  %v2258_v33 = vadd.f32 %v2257_v52, %v2097_v60  ;;  %v2100_v60 = vadd.f32 %v4544_v54, %v4542_v9  ;;  %v679_v25 = vrot.slane %v583_v38, 1  ;;  %v823_v52 = vrot.slane %v583_v38, 2 }
 0x198   : > { %v486_v9 = vsel %vm462_vm1, %v4859_v62, %v438_v44  ;;  %v439_v62 = vrot.slane %v3828_v18, 2 }
 0x199   : > { %v2419_v14 = vadd.f32 %v2418_v6, %v2258_v33 }
 0x19b   : > { %v2580_v4 = vadd.f32 %v2579_v41, %v2419_v14  ;;  %2307 = vmatmul.f32.gmra.mxu2 %v874_v49  ;;  %v2582_v13 = vpop.f32.mrf.mxu0  ;;  %v2743_v22 = vpop.f32.mrf.mxu1  ;;  %v4931_v14 = vsel %vm317_vm0, %v678_v51, %v679_v25  ;;  %v1877_v51 = vld [vmem:[%s5922_s1 + $0x3b0] sm:$0xff] }
 0x19c   : > { %2468 = vmatmul.f32.gmra.mxu3 %v581_v28  ;;  %6051 = vst [vmem:[#allocation29_spill] sm:$0xff] %v4931_v14 }
 0x19d   : > { %v4920_v23 = vadd.f32 %v2740_v45, %v2580_v4  ;;  %v870_v4 = vsel %vm462_vm1, %v822_v3, %v823_v52  ;;  %3039 = vmatpush.msra.mxu3 %v1877_v51  ;;  %v6053_v51 = vld [vmem:[#allocation41_spill] sm:$0xff] }
 0x19e   : > { %v2260_v41 = vpop.f32.mrf.mxu2  ;;  %2629 = vmatmul.f32.gmra.mxu0 %v4912_v10  ;;  %2790 = vmatmul.f32.gmra.mxu1 %v871_v21  ;;  %v1861_v21 = vld [vmem:[%s5922_s1 + $0x330] sm:$0xff] }
 0x19f   : > { %v2421_v49 = vpop.f32.mrf.mxu3  ;;  %v2261_v28 = vadd.f32 %v2260_v41, %v2100_v60  ;;  %v584_v60 = vld [vmem:[%s3963_s9 + $0xe0] sm:$0xff]  ;;  %2878 = vmatpush.msra.mxu2 %v1861_v21  ;;  %v3829_v21 = vld [vmem:[%s3963_s9 + $0xd0] sm:$0xff] }
 0x1a0   : > { %v824_v16 = vrot.slane %v584_v60, 2  ;;  %v440_v18 = vrot.slane %v3829_v21, 2 }
 0x1a1   : > { %v2422_v54 = vadd.f32 %v2421_v49, %v2261_v28  ;;  %v680_v28 = vrot.slane %v584_v60, 1 }
 0x1a3   : > { %v2583_v45 = vadd.f32 %v2582_v13, %v2422_v54  ;;  %2310 = vmatmul.f32.gmra.mxu2 %v486_v9  ;;  %v2585_v6 = vpop.f32.mrf.mxu0  ;;  %v2746_v33 = vpop.f32.mrf.mxu1 }
 0x1a4   : > { %2471 = vmatmul.f32.gmra.mxu3 %v582_v53  ;;  %v2103_v53 = vadd.f32 %v4561_v31, %v4559_v32  ;;  %v485_v32 = vsel %vm462_vm1, %v438_v44, %v439_v62 }
 0x1a5   : > { %v4942_v13 = vadd.f32 %v2743_v22, %v2583_v45  ;;  %v4952_v45 = vsel %vm317_vm0, %v679_v25, %v680_v28 }
 0x1a6   : > { %v2263_v41 = vpop.f32.mrf.mxu2  ;;  %2632 = vmatmul.f32.gmra.mxu0 %v4931_v14  ;;  %2793 = vmatmul.f32.gmra.mxu1 %v870_v4  ;;  %6052 = vst [vmem:[#allocation30_spill] sm:$0xff] %v4952_v45  ;;  %v869_v4 = vsel %vm462_vm1, %v823_v52, %v824_v16 }
 0x1a7   : > { %v2424_v49 = vpop.f32.mrf.mxu3  ;;  %v2264_v3 = vadd.f32 %v2263_v41, %v2103_v53  ;;  %v585_v53 = vld [vmem:[%s3963_s9 + $0xe8] sm:$0xff]  ;;  %v6054_v41 = vld [vmem:[#allocation42_spill] sm:$0xff] }
 0x1a8   : > { %v2106_v14 = vadd.f32 %v6054_v41, %v6053_v51  ;;  %v681_v52 = vrot.slane %v585_v53, 1 }
 0x1a9   : > { %v2425_v31 = vadd.f32 %v2424_v49, %v2264_v3  ;;  %v825_v3 = vrot.slane %v585_v53, 2 }
 0x1aa   : > { %v4970_v51 = vsel %vm317_vm0, %v680_v28, %v681_v52 }
 0x1ab   : > { %v2586_v22 = vadd.f32 %v2585_v6, %v2425_v31  ;;  %2313 = vmatmul.f32.gmra.mxu2 %v485_v32  ;;  %v2588_v9 = vpop.f32.mrf.mxu0  ;;  %v2749_v54 = vpop.f32.mrf.mxu1  ;;  %v484_v32 = vsel %vm462_vm1, %v439_v62, %v440_v18  ;;  %6055 = vst [vmem:[#allocation33_spill] sm:$0xff] %v4970_v51 }
 0x1ac   : > { %2474 = vmatmul.f32.gmra.mxu3 %v583_v38  ;;  %v1893_v38 = vld [vmem:[%s5922_s1 + $0x430] sm:$0xff] }
 0x1ad   : > { %v4960_v44 = vadd.f32 %v2746_v33, %v2586_v22  ;;  %3200 = vmatpush.msra.mxu0 %v1893_v38  ;;  %v2109_v38 = vadd.f32 %v4609_v39, %v4607_v57 }
 0x1ae   : > { %v2266_v6 = vpop.f32.mrf.mxu2  ;;  %2635 = vmatmul.f32.gmra.mxu0 %v4952_v45  ;;  %2796 = vmatmul.f32.gmra.mxu1 %v869_v4  ;;  %v868_v4 = vsel %vm462_vm1, %v824_v16, %v825_v3  ;;  %v3411_v16 = vld [vmem:[%s5923_s2 + $0x58] sm:$0xff] }
 0x1af   : > { %v2427_v49 = vpop.f32.mrf.mxu3  ;;  %v2267_v25 = vadd.f32 %v2266_v6, %v2106_v14  ;;  %v3830_v14 = vld [vmem:[%s3963_s9 + $0xd8] sm:$0xff]  ;;  %v586_v6 = vld [vmem:[%s3963_s9 + $0xf0] sm:$0xff]  ;;  %3420 = vmatpush.msra.mxu1 %v3411_v16 }
 0x1b0   : > { %v441_v41 = vrot.slane %v3830_v14, 2  ;;  %v682_v28 = vrot.slane %v586_v6, 1  ;;  %v1860_v14 = vld [vmem:[%s5922_s1 + $0x328] sm:$0xff] }
 0x1b1   : > { %v2428_v33 = vadd.f32 %v2427_v49, %v2267_v25  ;;  %v826_v25 = vrot.slane %v586_v6, 2  ;;  %2879 = vmatpush.msra.mxu2 %v1860_v14 }
 0x1b3   : > { %v2589_v31 = vadd.f32 %v2588_v9, %v2428_v33  ;;  %2316 = vmatmul.f32.gmra.mxu2 %v484_v32  ;;  %v2591_v22 = vpop.f32.mrf.mxu0  ;;  %v2752_v21 = vpop.f32.mrf.mxu1  ;;  %v483_v32 = vsel %vm462_vm1, %v440_v18, %v441_v41 }
 0x1b4   : > { %2477 = vmatmul.f32.gmra.mxu3 %v584_v60 }
 0x1b5   : > { %v4978_v62 = vadd.f32 %v2749_v54, %v2589_v31  ;;  %v4988_v31 = vsel %vm317_vm0, %v681_v52, %v682_v28  ;;  %v1876_v52 = vld [vmem:[%s5922_s1 + $0x3a8] sm:$0xff] }
 0x1b6   : > { %v2269_v9 = vpop.f32.mrf.mxu2  ;;  %2638 = vmatmul.f32.gmra.mxu0 %v4970_v51  ;;  %2799 = vmatmul.f32.gmra.mxu1 %v868_v4  ;;  %6056 = vst [vmem:[#allocation34_spill] sm:$0xff] %v4988_v31  ;;  %v867_v4 = vsel %vm462_vm1, %v825_v3, %v826_v25 }
 0x1b7   : > { %v2430_v49 = vpop.f32.mrf.mxu3  ;;  %v2270_v60 = vadd.f32 %v2269_v9, %v2109_v38  ;;  %v3831_v38 = vld [vmem:[%s3963_s9 + $0xe0] sm:$0xff]  ;;  %v587_v9 = vld [vmem:[%s3963_s9 + $0xf8] sm:$0xff]  ;;  %3040 = vmatpush.msra.mxu3 %v1876_v52  ;;  %v2115_v52 = vadd.f32 %v4640_v48, %v4638_v35 }
 0x1b8   : > { %v442_v18 = vrot.slane %v3831_v38, 2  ;;  %v683_v16 = vrot.slane %v587_v9, 1  ;;  %v3832_v38 = vld [vmem:[%s3963_s9 + $0xe8] sm:$0xff] }
 0x1b9   : > { %v2431_v39 = vadd.f32 %v2430_v49, %v2270_v60 }
 0x1ba   : > { %v5009_v14 = vsel %vm317_vm0, %v682_v28, %v683_v16 }
 0x1bb   : > { %v2592_v57 = vadd.f32 %v2591_v22, %v2431_v39  ;;  %2319 = vmatmul.f32.gmra.mxu2 %v483_v32  ;;  %v2594_v54 = vpop.f32.mrf.mxu0  ;;  %v2755_v33 = vpop.f32.mrf.mxu1  ;;  %v827_v32 = vrot.slane %v587_v9, 2  ;;  %6057 = vst [vmem:[#allocation41_spill] sm:$0xff] %v5009_v14 }
 0x1bc   : > { %2480 = vmatmul.f32.gmra.mxu3 %v585_v53  ;;  %v2112_v53 = vadd.f32 %v4623_v1, %v4621_v8  ;;  %v482_v8 = vsel %vm462_vm1, %v441_v41, %v442_v18 }
 0x1bd   : > { %v4999_v22 = vadd.f32 %v2752_v21, %v2592_v57 }
 0x1be   : > { %v2272_v49 = vpop.f32.mrf.mxu2  ;;  %2641 = vmatmul.f32.gmra.mxu0 %v4988_v31  ;;  %2802 = vmatmul.f32.gmra.mxu1 %v867_v4  ;;  %v866_v4 = vsel %vm462_vm1, %v826_v25, %v827_v32  ;;  %v6101_v31 = vld [vmem:[#allocation48_spill] sm:$0xff] }
 0x1bf   : > { %v2433_v60 = vpop.f32.mrf.mxu3  ;;  %v2273_v3 = vadd.f32 %v2272_v49, %v2112_v53  ;;  %v443_v53 = vrot.slane %v3832_v38, 2  ;;  %v588_v49 = vld [vmem:[%s3963_s9 + $0x100] sm:$0xff]  ;;  %v3833_v38 = vld [vmem:[%s3963_s9 + $0xf0] sm:$0xff] }
 0x1c0   : > { %v684_v25 = vrot.slane %v588_v49, 1 }
 0x1c1   : > { %v2434_v1 = vadd.f32 %v2433_v60, %v2273_v3  ;;  %v828_v3 = vrot.slane %v588_v49, 2  ;;  %v481_v48 = vsel %vm462_vm1, %v442_v18, %v443_v53 }
 0x1c3   : > { %v2595_v21 = vadd.f32 %v2594_v54, %v2434_v1  ;;  %2322 = vmatmul.f32.gmra.mxu2 %v482_v8  ;;  %v2597_v39 = vpop.f32.mrf.mxu0  ;;  %v2758_v57 = vpop.f32.mrf.mxu1 }
 0x1c4   : > { %2483 = vmatmul.f32.gmra.mxu3 %v586_v6  ;;  %v1892_v6 = vld [vmem:[%s5922_s1 + $0x428] sm:$0xff] }
 0x1c5   : > { %v5017_v41 = vadd.f32 %v2755_v33, %v2595_v21  ;;  %3201 = vmatpush.msra.mxu0 %v1892_v6  ;;  %v5027_v21 = vsel %vm317_vm0, %v683_v16, %v684_v25  ;;  %v2118_v6 = vadd.f32 %v4654_v61, %v4652_v34 }
 0x1c6   : > { %v2275_v54 = vpop.f32.mrf.mxu2  ;;  %2644 = vmatmul.f32.gmra.mxu0 %v5009_v14  ;;  %2805 = vmatmul.f32.gmra.mxu1 %v866_v4  ;;  %6058 = vst [vmem:[#allocation42_spill] sm:$0xff] %v5027_v21  ;;  %v865_v4 = vsel %vm462_vm1, %v827_v32, %v828_v3  ;;  %v3410_v32 = vld [vmem:[%s5923_s2 + $0x50] sm:$0xff] }
 0x1c7   : > { %v2436_v60 = vpop.f32.mrf.mxu3  ;;  %v2276_v28 = vadd.f32 %v2275_v54, %v2115_v52  ;;  %v444_v52 = vrot.slane %v3833_v38, 2  ;;  %v589_v54 = vld [vmem:[%s3963_s9 + $0x108] sm:$0xff]  ;;  %3421 = vmatpush.msra.mxu1 %v3410_v32  ;;  %v1859_v38 = vld [vmem:[%s5922_s1 + $0x320] sm:$0xff] }
 0x1c8   : > { %v685_v16 = vrot.slane %v589_v54, 1  ;;  %2880 = vmatpush.msra.mxu2 %v1859_v38 }
 0x1c9   : > { %v2437_v35 = vadd.f32 %v2436_v60, %v2276_v28  ;;  %v829_v28 = vrot.slane %v589_v54, 2 }
 0x1cb   : > { %v2598_v33 = vadd.f32 %v2597_v39, %v2437_v35  ;;  %2325 = vmatmul.f32.gmra.mxu2 %v481_v48  ;;  %v2600_v8 = vpop.f32.mrf.mxu0  ;;  %v2761_v1 = vpop.f32.mrf.mxu1  ;;  %v480_v48 = vsel %vm462_vm1, %v443_v53, %v444_v52 }
 0x1cc   : > { %2486 = vmatmul.f32.gmra.mxu3 %v587_v9 }
 0x1cd   : > { %v5035_v18 = vadd.f32 %v2758_v57, %v2598_v33  ;;  %v5045_v33 = vsel %vm317_vm0, %v684_v25, %v685_v16  ;;  %v1875_v25 = vld [vmem:[%s5922_s1 + $0x3a0] sm:$0xff] }
 0x1ce   : > { %v2278_v39 = vpop.f32.mrf.mxu2  ;;  %2647 = vmatmul.f32.gmra.mxu0 %v5027_v21  ;;  %2808 = vmatmul.f32.gmra.mxu1 %v865_v4  ;;  %6059 = vst [vmem:[#allocation59_spill] sm:$0xff] %v5045_v33  ;;  %v864_v4 = vsel %vm462_vm1, %v828_v3, %v829_v28 }
 0x1cf   : > { %v2439_v60 = vpop.f32.mrf.mxu3  ;;  %v2279_v9 = vadd.f32 %v2278_v39, %v2118_v6  ;;  %v3834_v6 = vld [vmem:[%s3963_s9 + $0xf8] sm:$0xff]  ;;  %v590_v39 = vld [vmem:[%s3963_s9 + $0x110] sm:$0xff]  ;;  %3041 = vmatpush.msra.mxu3 %v1875_v25  ;;  %v2124_v25 = vadd.f32 %v4682_v42, %v4680_v24 }
 0x1d0   : > { %v445_v53 = vrot.slane %v3834_v6, 2  ;;  %v686_v32 = vrot.slane %v590_v39, 1  ;;  %v3835_v6 = vld [vmem:[%s3963_s9 + $0x100] sm:$0xff] }
 0x1d1   : > { %v2440_v34 = vadd.f32 %v2439_v60, %v2279_v9 }
 0x1d2   : > { %v5066_v38 = vsel %vm317_vm0, %v685_v16, %v686_v32 }
 0x1d3   : > { %v2601_v61 = vadd.f32 %v2600_v8, %v2440_v34  ;;  %2328 = vmatmul.f32.gmra.mxu2 %v480_v48  ;;  %v2603_v57 = vpop.f32.mrf.mxu0  ;;  %v2764_v35 = vpop.f32.mrf.mxu1  ;;  %v830_v48 = vrot.slane %v590_v39, 2  ;;  %6060 = vst [vmem:[#allocation60_spill] sm:$0xff] %v5066_v38 }
 0x1d4   : > { %2489 = vmatmul.f32.gmra.mxu3 %v588_v49  ;;  %v2121_v49 = vadd.f32 %v4665_v50, %v4663_v37  ;;  %v479_v37 = vsel %vm462_vm1, %v444_v52, %v445_v53 }
 0x1d5   : > { %v5056_v8 = vadd.f32 %v2761_v1, %v2601_v61 }
 0x1d6   : > { %v2281_v60 = vpop.f32.mrf.mxu2  ;;  %2650 = vmatmul.f32.gmra.mxu0 %v5045_v33  ;;  %2811 = vmatmul.f32.gmra.mxu1 %v864_v4  ;;  %v863_v4 = vsel %vm462_vm1, %v829_v28, %v830_v48 }
 0x1d7   : > { %v2442_v9 = vpop.f32.mrf.mxu3  ;;  %v2282_v3 = vadd.f32 %v2281_v60, %v2121_v49  ;;  %v446_v49 = vrot.slane %v3835_v6, 2  ;;  %v591_v60 = vld [vmem:[%s3963_s9 + $0x118] sm:$0xff]  ;;  %v3836_v6 = vld [vmem:[%s3963_s9 + $0x108] sm:$0xff] }
 0x1d8   : > { %v687_v28 = vrot.slane %v591_v60, 1 }
 0x1d9   : > { %v2443_v50 = vadd.f32 %v2442_v9, %v2282_v3  ;;  %v831_v3 = vrot.slane %v591_v60, 2  ;;  %v478_v42 = vsel %vm462_vm1, %v445_v53, %v446_v49 }
 0x1db   : > { %v2604_v1 = vadd.f32 %v2603_v57, %v2443_v50  ;;  %2331 = vmatmul.f32.gmra.mxu2 %v479_v37  ;;  %v2606_v34 = vpop.f32.mrf.mxu0  ;;  %v2767_v61 = vpop.f32.mrf.mxu1 }
 0x1dc   : > { %2492 = vmatmul.f32.gmra.mxu3 %v589_v54  ;;  %v1891_v54 = vld [vmem:[%s5922_s1 + $0x420] sm:$0xff] }
 0x1dd   : > { %v5074_v52 = vadd.f32 %v2764_v35, %v2604_v1  ;;  %3202 = vmatpush.msra.mxu0 %v1891_v54  ;;  %v5084_v1 = vsel %vm317_vm0, %v686_v32, %v687_v28  ;;  %v2127_v54 = vadd.f32 %v4696_v30, %v4694_v27 }
 0x1de   : > { %v2284_v57 = vpop.f32.mrf.mxu2  ;;  %2653 = vmatmul.f32.gmra.mxu0 %v5066_v38  ;;  %2814 = vmatmul.f32.gmra.mxu1 %v863_v4  ;;  %6061 = vst [vmem:[#allocation61_spill] sm:$0xff] %v5084_v1  ;;  %v862_v4 = vsel %vm462_vm1, %v830_v48, %v831_v3  ;;  %v3409_v48 = vld [vmem:[%s5923_s2 + $0x48] sm:$0xff] }
 0x1df   : > { %v2445_v9 = vpop.f32.mrf.mxu3  ;;  %v2285_v16 = vadd.f32 %v2284_v57, %v2124_v25  ;;  %v447_v25 = vrot.slane %v3836_v6, 2  ;;  %v592_v57 = vld [vmem:[%s3963_s9 + $0x120] sm:$0xff]  ;;  %3422 = vmatpush.msra.mxu1 %v3409_v48  ;;  %v1858_v6 = vld [vmem:[%s5922_s1 + $0x318] sm:$0xff] }
 0x1e0   : > { %v688_v32 = vrot.slane %v592_v57, 1  ;;  %2881 = vmatpush.msra.mxu2 %v1858_v6 }
 0x1e1   : > { %v2446_v24 = vadd.f32 %v2445_v9, %v2285_v16  ;;  %v832_v16 = vrot.slane %v592_v57, 2 }
 0x1e3   : > { %v2607_v35 = vadd.f32 %v2606_v34, %v2446_v24  ;;  %2334 = vmatmul.f32.gmra.mxu2 %v478_v42  ;;  %v2609_v37 = vpop.f32.mrf.mxu0  ;;  %v2770_v50 = vpop.f32.mrf.mxu1  ;;  %v477_v42 = vsel %vm462_vm1, %v446_v49, %v447_v25 }
 0x1e4   : > { %2495 = vmatmul.f32.gmra.mxu3 %v590_v39 }
 0x1e5   : > { %v5092_v53 = vadd.f32 %v2767_v61, %v2607_v35  ;;  %v5102_v35 = vsel %vm317_vm0, %v687_v28, %v688_v32  ;;  %v1874_v28 = vld [vmem:[%s5922_s1 + $0x398] sm:$0xff] }
 0x1e6   : > { %v2287_v34 = vpop.f32.mrf.mxu2  ;;  %2656 = vmatmul.f32.gmra.mxu0 %v5084_v1  ;;  %2817 = vmatmul.f32.gmra.mxu1 %v862_v4  ;;  %6062 = vst [vmem:[#allocation62_spill] sm:$0xff] %v5102_v35  ;;  %v861_v4 = vsel %vm462_vm1, %v831_v3, %v832_v16 }
 0x1e7   : > { %v2448_v9 = vpop.f32.mrf.mxu3  ;;  %v2288_v39 = vadd.f32 %v2287_v34, %v2127_v54  ;;  %v3837_v54 = vld [vmem:[%s3963_s9 + $0x110] sm:$0xff]  ;;  %v593_v34 = vld [vmem:[%s3963_s9 + $0x128] sm:$0xff]  ;;  %3042 = vmatpush.msra.mxu3 %v1874_v28  ;;  %v2133_v28 = vadd.f32 %v4724_v5, %v4722_v55 }
 0x1e8   : > { %v448_v49 = vrot.slane %v3837_v54, 2  ;;  %v689_v48 = vrot.slane %v593_v34, 1  ;;  %v3838_v54 = vld [vmem:[%s3963_s9 + $0x118] sm:$0xff] }
 0x1e9   : > { %v2449_v27 = vadd.f32 %v2448_v9, %v2288_v39 }
 0x1ea   : > { %v5123_v6 = vsel %vm317_vm0, %v688_v32, %v689_v48 }
 0x1eb   : > { %v2610_v30 = vadd.f32 %v2609_v37, %v2449_v27  ;;  %2337 = vmatmul.f32.gmra.mxu2 %v477_v42  ;;  %v2612_v61 = vpop.f32.mrf.mxu0  ;;  %v2773_v24 = vpop.f32.mrf.mxu1  ;;  %v833_v42 = vrot.slane %v593_v34, 2  ;;  %6063 = vst [vmem:[#allocation63_spill] sm:$0xff] %v5123_v6 }
 0x1ec   : > { %2498 = vmatmul.f32.gmra.mxu3 %v591_v60  ;;  %v2130_v60 = vadd.f32 %v4707_v17, %v4705_v0  ;;  %v476_v0 = vsel %vm462_vm1, %v447_v25, %v448_v49 }
 0x1ed   : > { %v5113_v37 = vadd.f32 %v2770_v50, %v2610_v30 }
 0x1ee   : > { %v2290_v9 = vpop.f32.mrf.mxu2  ;;  %2659 = vmatmul.f32.gmra.mxu0 %v5102_v35  ;;  %2820 = vmatmul.f32.gmra.mxu1 %v861_v4  ;;  %v860_v4 = vsel %vm462_vm1, %v832_v16, %v833_v42 }
 0x1ef   : > { %v2451_v39 = vpop.f32.mrf.mxu3  ;;  %v2291_v3 = vadd.f32 %v2290_v9, %v2130_v60  ;;  %v449_v60 = vrot.slane %v3838_v54, 2  ;;  %v594_v9 = vld [vmem:[%s3963_s9 + $0x130] sm:$0xff]  ;;  %v3839_v54 = vld [vmem:[%s3963_s9 + $0x120] sm:$0xff] }
 0x1f0   : > { %v690_v16 = vrot.slane %v594_v9, 1 }
 0x1f1   : > { %v2452_v17 = vadd.f32 %v2451_v39, %v2291_v3  ;;  %v834_v3 = vrot.slane %v594_v9, 2  ;;  %v475_v5 = vsel %vm462_vm1, %v448_v49, %v449_v60 }
 0x1f3   : > { %v2613_v50 = vadd.f32 %v2612_v61, %v2452_v17  ;;  %2340 = vmatmul.f32.gmra.mxu2 %v476_v0  ;;  %v2615_v27 = vpop.f32.mrf.mxu0  ;;  %v2776_v30 = vpop.f32.mrf.mxu1 }
 0x1f4   : > { %2501 = vmatmul.f32.gmra.mxu3 %v592_v57  ;;  %v1890_v57 = vld [vmem:[%s5922_s1 + $0x418] sm:$0xff] }
 0x1f5   : > { %v5131_v25 = vadd.f32 %v2773_v24, %v2613_v50  ;;  %3203 = vmatpush.msra.mxu0 %v1890_v57  ;;  %v5141_v50 = vsel %vm317_vm0, %v689_v48, %v690_v16  ;;  %v2136_v57 = vadd.f32 %v4738_v59, %v4736_v63 }
 0x1f6   : > { %v2293_v61 = vpop.f32.mrf.mxu2  ;;  %2662 = vmatmul.f32.gmra.mxu0 %v5123_v6  ;;  %2823 = vmatmul.f32.gmra.mxu1 %v860_v4  ;;  %6064 = vst [vmem:[#allocation64_spill] sm:$0xff] %v5141_v50  ;;  %v859_v4 = vsel %vm462_vm1, %v833_v42, %v834_v3  ;;  %v3408_v42 = vld [vmem:[%s5923_s2 + $0x40] sm:$0xff] }
 0x1f7   : > { %v2454_v39 = vpop.f32.mrf.mxu3  ;;  %v2294_v32 = vadd.f32 %v2293_v61, %v2133_v28  ;;  %v450_v28 = vrot.slane %v3839_v54, 2  ;;  %v595_v61 = vld [vmem:[%s3963_s9 + $0x138] sm:$0xff]  ;;  %3423 = vmatpush.msra.mxu1 %v3408_v42  ;;  %v1857_v54 = vld [vmem:[%s5922_s1 + $0x310] sm:$0xff] }
 0x1f8   : > { %v691_v48 = vrot.slane %v595_v61, 1  ;;  %2882 = vmatpush.msra.mxu2 %v1857_v54 }
 0x1f9   : > { %v2455_v55 = vadd.f32 %v2454_v39, %v2294_v32  ;;  %v835_v32 = vrot.slane %v595_v61, 2 }
 0x1fb   : > { %v2616_v24 = vadd.f32 %v2615_v27, %v2455_v55  ;;  %2343 = vmatmul.f32.gmra.mxu2 %v475_v5  ;;  %v2618_v0 = vpop.f32.mrf.mxu0  ;;  %v2779_v17 = vpop.f32.mrf.mxu1  ;;  %v474_v5 = vsel %vm462_vm1, %v449_v60, %v450_v28 }
 0x1fc   : > { %2504 = vmatmul.f32.gmra.mxu3 %v593_v34 }
 0x1fd   : > { %v5149_v49 = vadd.f32 %v2776_v30, %v2616_v24  ;;  %v5159_v24 = vsel %vm317_vm0, %v690_v16, %v691_v48  ;;  %v1873_v16 = vld [vmem:[%s5922_s1 + $0x390] sm:$0xff] }
 0x1fe   : > { %v2296_v27 = vpop.f32.mrf.mxu2  ;;  %2665 = vmatmul.f32.gmra.mxu0 %v5141_v50  ;;  %2826 = vmatmul.f32.gmra.mxu1 %v859_v4  ;;  %6065 = vst [vmem:[#allocation65_spill] sm:$0xff] %v5159_v24  ;;  %v858_v4 = vsel %vm462_vm1, %v834_v3, %v835_v32 }
 0x1ff   : > { %v2457_v39 = vpop.f32.mrf.mxu3  ;;  %v2297_v34 = vadd.f32 %v2296_v27, %v2136_v57  ;;  %v3840_v57 = vld [vmem:[%s3963_s9 + $0x128] sm:$0xff]  ;;  %v596_v27 = vld [vmem:[%s3963_s9 + $0x140] sm:$0xff]  ;;  %3043 = vmatpush.msra.mxu3 %v1873_v16  ;;  %v2142_v16 = vadd.f32 %v4766_v43, %v4764_v20 }
 0x200   : > { %v451_v60 = vrot.slane %v3840_v57, 2  ;;  %v692_v42 = vrot.slane %v596_v27, 1  ;;  %v3841_v57 = vld [vmem:[%s3963_s9 + $0x130] sm:$0xff] }
 0x201   : > { %v2458_v63 = vadd.f32 %v2457_v39, %v2297_v34 }
 0x202   : > { %v5180_v54 = vsel %vm317_vm0, %v691_v48, %v692_v42 }
 0x203   : > { %v2619_v59 = vadd.f32 %v2618_v0, %v2458_v63  ;;  %2346 = vmatmul.f32.gmra.mxu2 %v474_v5  ;;  %v2621_v30 = vpop.f32.mrf.mxu0  ;;  %v2782_v55 = vpop.f32.mrf.mxu1  ;;  %v836_v5 = vrot.slane %v596_v27, 2  ;;  %6066 = vst [vmem:[#allocation66_spill] sm:$0xff] %v5180_v54 }
 0x204   : > { %2507 = vmatmul.f32.gmra.mxu3 %v594_v9  ;;  %v2139_v9 = vadd.f32 %v4749_v47, %v4747_v36  ;;  %v473_v36 = vsel %vm462_vm1, %v450_v28, %v451_v60 }
 0x205   : > { %v5170_v0 = vadd.f32 %v2779_v17, %v2619_v59 }
 0x206   : > { %v2299_v39 = vpop.f32.mrf.mxu2  ;;  %2668 = vmatmul.f32.gmra.mxu0 %v5159_v24  ;;  %2829 = vmatmul.f32.gmra.mxu1 %v858_v4  ;;  %v857_v4 = vsel %vm462_vm1, %v835_v32, %v836_v5 }
 0x207   : > { %v2460_v34 = vpop.f32.mrf.mxu3  ;;  %v2300_v3 = vadd.f32 %v2299_v39, %v2139_v9  ;;  %v452_v9 = vrot.slane %v3841_v57, 2  ;;  %v597_v39 = vld [vmem:[%s3963_s9 + $0x148] sm:$0xff] }
 0x208   : > { %v693_v32 = vrot.slane %v597_v39, 1 }
 0x209   : > { %v2461_v47 = vadd.f32 %v2460_v34, %v2300_v3  ;;  %v837_v3 = vrot.slane %v597_v39, 2  ;;  %v472_v43 = vsel %vm462_vm1, %v451_v60, %v452_v9 }
 0x20b   : > { %v2622_v17 = vadd.f32 %v2621_v30, %v2461_v47  ;;  %2349 = vmatmul.f32.gmra.mxu2 %v473_v36  ;;  %v2624_v63 = vpop.f32.mrf.mxu0  ;;  %v2785_v59 = vpop.f32.mrf.mxu1  ;;  %v5198_v47 = vsel %vm317_vm0, %v692_v42, %v693_v32 }
 0x20c   : > { %2510 = vmatmul.f32.gmra.mxu3 %v595_v61  ;;  %v1889_v61 = vld [vmem:[%s5922_s1 + $0x410] sm:$0xff]  ;;  %6067 = vst [vmem:[#allocation67_spill] sm:$0xff] %v5198_v47 }
 0x20d   : > { %v5188_v28 = vadd.f32 %v2782_v55, %v2622_v17  ;;  %3204 = vmatpush.msra.mxu0 %v1889_v61  ;;  %v856_v17 = vsel %vm462_vm1, %v836_v5, %v837_v3  ;;  %v2145_v61 = vadd.f32 %v4780_v26, %v4778_v2  ;;  %v3407_v5 = vld [vmem:[%s5923_s2 + $0x38] sm:$0xff] }
 0x20e   : > { %v2302_v30 = vpop.f32.mrf.mxu2  ;;  %2671 = vmatmul.f32.gmra.mxu0 %v5180_v54  ;;  %2832 = vmatmul.f32.gmra.mxu1 %v857_v4  ;;  %v3842_v4 = vld [vmem:[%s3963_s9 + $0x138] sm:$0xff] }
 0x20f   : > { %v2463_v34 = vpop.f32.mrf.mxu3  ;;  %v2303_v48 = vadd.f32 %v2302_v30, %v2142_v16  ;;  %v453_v57 = vrot.slane %v3842_v4, 2  ;;  %v598_v16 = vld [vmem:[%s3963_s9 + $0x150] sm:$0xff]  ;;  %3424 = vmatpush.msra.mxu1 %v3407_v5  ;;  %v3843_v4 = vld [vmem:[%s3963_s9 + $0x140] sm:$0xff] }
 0x210   : > { %v694_v42 = vrot.slane %v598_v16, 1 }
 0x211   : > { %v2464_v20 = vadd.f32 %v2463_v34, %v2303_v48  ;;  %v838_v48 = vrot.slane %v598_v16, 2  ;;  %v471_v2 = vsel %vm462_vm1, %v452_v9, %v453_v57  ;;  %v599_v9 = vld [vmem:[%s3963_s9 + $0x158] sm:$0xff] }
 0x212   : > { %v839_v5 = vrot.slane %v599_v9, 2 }
 0x213   : > { %v2625_v55 = vadd.f32 %v2624_v63, %v2464_v20  ;;  %2352 = vmatmul.f32.gmra.mxu2 %v472_v43  ;;  %v2627_v36 = vpop.f32.mrf.mxu0  ;;  %v2788_v60 = vpop.f32.mrf.mxu1  ;;  %v5216_v20 = vsel %vm317_vm0, %v693_v32, %v694_v42  ;;  %v1872_v32 = vld [vmem:[%s5922_s1 + $0x388] sm:$0xff] }
 0x214   : > { %2513 = vmatmul.f32.gmra.mxu3 %v596_v27  ;;  %6068 = vst [vmem:[#allocation68_spill] sm:$0xff] %v5216_v20 }
 0x215   : > { %v5206_v30 = vadd.f32 %v2785_v59, %v2625_v55  ;;  %v855_v55 = vsel %vm462_vm1, %v837_v3, %v838_v48  ;;  %3044 = vmatpush.msra.mxu3 %v1872_v32  ;;  %v6070_v32 = vld [vmem:[#allocation58_spill] sm:$0xff] }
 0x216   : > { %v2305_v63 = vpop.f32.mrf.mxu2  ;;  %2674 = vmatmul.f32.gmra.mxu0 %v5198_v47  ;;  %2835 = vmatmul.f32.gmra.mxu1 %v856_v17  ;;  %v1856_v17 = vld [vmem:[%s5922_s1 + $0x308] sm:$0xff] }
 0x217   : > { %v2466_v34 = vpop.f32.mrf.mxu3  ;;  %v2306_v27 = vadd.f32 %v2305_v63, %v2145_v61  ;;  %v454_v61 = vrot.slane %v3843_v4, 2  ;;  %2883 = vmatpush.msra.mxu2 %v1856_v17  ;;  %v3844_v17 = vld [vmem:[%s3963_s9 + $0x148] sm:$0xff] }
 0x218   : > { %v455_v4 = vrot.slane %v3844_v17, 2 }
 0x219   : > { %v2467_v26 = vadd.f32 %v2466_v34, %v2306_v27  ;;  %v695_v27 = vrot.slane %v599_v9, 1 }
 0x21b   : > { %v2628_v59 = vadd.f32 %v2627_v36, %v2467_v26  ;;  %2355 = vmatmul.f32.gmra.mxu2 %v471_v2  ;;  %v2630_v43 = vpop.f32.mrf.mxu0  ;;  %v2148_v36 = vadd.f32 %v4794_v56, %v4792_v11  ;;  %v470_v11 = vsel %vm462_vm1, %v453_v57, %v454_v61  ;;  %v2791_v56 = vpop.f32.mrf.mxu1 }
 0x21c   : > { %2516 = vmatmul.f32.gmra.mxu3 %v597_v39 }
 0x21d   : > { %v5227_v39 = vadd.f32 %v2788_v60, %v2628_v59  ;;  %v5237_v59 = vsel %vm317_vm0, %v694_v42, %v695_v27 }
 0x21e   : > { %v2308_v63 = vpop.f32.mrf.mxu2  ;;  %2677 = vmatmul.f32.gmra.mxu0 %v5216_v20  ;;  %2838 = vmatmul.f32.gmra.mxu1 %v855_v55  ;;  %6069 = vst [vmem:[#allocation69_spill] sm:$0xff] %v5237_v59  ;;  %v854_v55 = vsel %vm462_vm1, %v838_v48, %v839_v5 }
 0x21f   : > { %v2469_v34 = vpop.f32.mrf.mxu3  ;;  %v2309_v3 = vadd.f32 %v2308_v63, %v2148_v36  ;;  %v600_v36 = vld [vmem:[%s3963_s9 + $0x160] sm:$0xff]  ;;  %v2151_v63 = vadd.f32 %v6070_v32, %v4809_v58  ;;  %v469_v58 = vsel %vm462_vm1, %v454_v61, %v455_v4  ;;  %v3845_v32 = vld [vmem:[%s3963_s9 + $0x150] sm:$0xff] }
 0x220   : > { %v696_v48 = vrot.slane %v600_v36, 1 }
 0x221   : > { %v2470_v60 = vadd.f32 %v2469_v34, %v2309_v3  ;;  %v840_v3 = vrot.slane %v600_v36, 2 }
 0x222   : > { %v5255_v17 = vsel %vm317_vm0, %v695_v27, %v696_v48 }
 0x223   : > { %v2631_v2 = vadd.f32 %v2630_v43, %v2470_v60  ;;  %2358 = vmatmul.f32.gmra.mxu2 %v470_v11  ;;  %v2633_v26 = vpop.f32.mrf.mxu0  ;;  %6071 = vst [vmem:[#allocation58_spill] sm:$0xff] %v5255_v17 }
 0x224   : > { %2519 = vmatmul.f32.gmra.mxu3 %v598_v16  ;;  %v1888_v16 = vld [vmem:[%s5922_s1 + $0x408] sm:$0xff] }
 0x225   : > { %v5245_v57 = vadd.f32 %v2791_v56, %v2631_v2  ;;  %3205 = vmatpush.msra.mxu0 %v1888_v16  ;;  %v2794_v56 = vpop.f32.mrf.mxu1 }
 0x226   : > { %v2311_v43 = vpop.f32.mrf.mxu2  ;;  %2680 = vmatmul.f32.gmra.mxu0 %v5237_v59  ;;  %2841 = vmatmul.f32.gmra.mxu1 %v854_v55  ;;  %v853_v55 = vsel %vm462_vm1, %v839_v5, %v840_v3  ;;  %v3406_v5 = vld [vmem:[%s5923_s2 + $0x30] sm:$0xff] }
 0x227   : > { %v2472_v34 = vpop.f32.mrf.mxu3  ;;  %v2312_v42 = vadd.f32 %v2311_v43, %v2151_v63  ;;  %v456_v63 = vrot.slane %v3845_v32, 2  ;;  %v601_v43 = vld [vmem:[%s3963_s9 + $0x168] sm:$0xff]  ;;  %3425 = vmatpush.msra.mxu1 %v3406_v5  ;;  %v3846_v32 = vld [vmem:[%s3963_s9 + $0x158] sm:$0xff] }
 0x228   : > { %v841_v27 = vrot.slane %v601_v43, 2 }
 0x229   : > { %v2473_v11 = vadd.f32 %v2472_v34, %v2312_v42  ;;  %v697_v34 = vrot.slane %v601_v43, 1  ;;  %v468_v42 = vsel %vm462_vm1, %v455_v4, %v456_v63  ;;  %v457_v4 = vrot.slane %v3846_v32, 2 }
 0x22b   : > { %v2634_v60 = vadd.f32 %v2633_v26, %v2473_v11  ;;  %2361 = vmatmul.f32.gmra.mxu2 %v469_v58  ;;  %v2636_v2 = vpop.f32.mrf.mxu0 }
 0x22c   : > { %2522 = vmatmul.f32.gmra.mxu3 %v599_v9  ;;  %v6072_v9 = vld [vmem:[#allocation19_spill] sm:$0xff] }
 0x22d   : > { %v5261_v16 = vadd.f32 %v2794_v56, %v2634_v60  ;;  %v852_v60 = vsel %vm462_vm1, %v840_v3, %v841_v27 }
 0x22e   : > { %v2314_v59 = vpop.f32.mrf.mxu2  ;;  %2683 = vmatmul.f32.gmra.mxu0 %v5255_v17  ;;  %2844 = vmatmul.f32.gmra.mxu1 %v853_v55  ;;  %v1855_v55 = vld [vmem:[%s5922_s1 + $0x300] sm:$0xff] }
 0x22f   : > { %v2475_v61 = vpop.f32.mrf.mxu3  ;;  %v2315_v26 = vadd.f32 %v2314_v59, %v6072_v9  ;;  %v5274_v59 = vsel %vm317_vm0, %v696_v48, %v697_v34  ;;  %v602_v9 = vld [vmem:[%s3963_s9 + $0x170] sm:$0xff]  ;;  %2884 = vmatpush.msra.mxu2 %v1855_v55 }
 0x230   : > { %6073 = vst [vmem:[#allocation19_spill] sm:$0xff] %v5274_v59  ;;  %v6074_v48 = vld [vmem:[#allocation21_spill] sm:$0xff]  ;;  %v842_v5 = vrot.slane %v602_v9, 2 }
 0x231   : > { %v2476_v58 = vadd.f32 %v2475_v61, %v2315_v26  ;;  %v698_v26 = vrot.slane %v602_v9, 1 }
 0x233   : > { %v5270_v11 = vadd.f32 %v2636_v2, %v2476_v58  ;;  %2364 = vmatmul.f32.gmra.mxu2 %v468_v42  ;;  %v2639_v56 = vpop.f32.mrf.mxu0  ;;  %v467_v42 = vsel %vm462_vm1, %v456_v63, %v457_v4  ;;  %v5294_v17 = vsel %vm317_vm0, %v697_v34, %v698_v26  ;;  %v1887_v63 = vld [vmem:[%s5922_s1 + $0x400] sm:$0xff] }
 0x234   : > { %2525 = vmatmul.f32.gmra.mxu3 %v600_v36  ;;  %v1871_v36 = vld [vmem:[%s5922_s1 + $0x380] sm:$0xff]  ;;  %6075 = vst [vmem:[#allocation21_spill] sm:$0xff] %v5294_v17  ;;  %3206 = vmatpush.msra.mxu0 %v1887_v63 }
 0x235   : > { %3045 = vmatpush.msra.mxu3 %v1871_v36 }
 0x236   : > { %v2317_v2 = vpop.f32.mrf.mxu2  ;;  %2686 = vmatmul.f32.gmra.mxu0 %v5274_v59  ;;  %2847 = vmatmul.f32.gmra.mxu1 %v852_v60  ;;  %v851_v60 = vsel %vm462_vm1, %v841_v27, %v842_v5  ;;  %v603_v59 = vld [vmem:[%s3963_s9 + $0x178] sm:$0xff] }
 0x237   : > { %v2478_v61 = vpop.f32.mrf.mxu3  ;;  %v2318_v3 = vadd.f32 %v2317_v2, %v6074_v48  ;;  %v3847_v2 = vld [vmem:[%s3963_s9 + $0x160] sm:$0xff] }
 0x238   : > { %v458_v48 = vrot.slane %v3847_v2, 2 }
 0x239   : > { %v2479_v58 = vadd.f32 %v2478_v61, %v2318_v3  ;;  %v699_v61 = vrot.slane %v603_v59, 1  ;;  %v843_v3 = vrot.slane %v603_v59, 2 }
 0x23a   : > { %v466_v27 = vsel %vm462_vm1, %v457_v4, %v458_v48  ;;  %v6078_v4 = vld [vmem:[#allocation28_spill] sm:$0xff] }
 0x23b   : > { %v5290_v55 = vadd.f32 %v2639_v56, %v2479_v58  ;;  %2367 = vmatmul.f32.gmra.mxu2 %v467_v42  ;;  %v2642_v32 = vpop.f32.mrf.mxu0  ;;  %v5311_v20 = vsel %vm317_vm0, %v698_v26, %v699_v61  ;;  %v3405_v26 = vld [vmem:[%s5923_s2 + $0x28] sm:$0xff] }
 0x23c   : > { %2528 = vmatmul.f32.gmra.mxu3 %v601_v43  ;;  %v6076_v43 = vld [vmem:[#allocation24_spill] sm:$0xff]  ;;  %3426 = vmatpush.msra.mxu1 %v3405_v26 }
 0x23d   : > { %6077 = vst [vmem:[#allocation24_spill] sm:$0xff] %v5311_v20 }
 0x23e   : > { %v2320_v36 = vpop.f32.mrf.mxu2  ;;  %2689 = vmatmul.f32.gmra.mxu0 %v5294_v17  ;;  %2850 = vmatmul.f32.gmra.mxu1 %v851_v60  ;;  %v850_v60 = vsel %vm462_vm1, %v842_v5, %v843_v3  ;;  %v604_v17 = vld [vmem:[%s3963_s9 + $0x180] sm:$0xff] }
 0x23f   : > { %v2481_v56 = vpop.f32.mrf.mxu3  ;;  %v2321_v34 = vadd.f32 %v2320_v36, %v6076_v43  ;;  %v3848_v36 = vld [vmem:[%s3963_s9 + $0x168] sm:$0xff] }
 0x240   : > { %v459_v43 = vrot.slane %v3848_v36, 2 }
 0x241   : > { %v2482_v42 = vadd.f32 %v2481_v56, %v2321_v34  ;;  %v844_v56 = vrot.slane %v604_v17, 2 }
 0x242   : > { %v465_v5 = vsel %vm462_vm1, %v458_v48, %v459_v43 }
 0x243   : > { %v5307_v58 = vadd.f32 %v2642_v32, %v2482_v42  ;;  %2370 = vmatmul.f32.gmra.mxu2 %v466_v27  ;;  %v2645_v2 = vpop.f32.mrf.mxu0  ;;  %v700_v32 = vrot.slane %v604_v17, 1  ;;  %v849_v36 = vsel %vm462_vm1, %v843_v3, %v844_v56 }
 0x244   : > { %2531 = vmatmul.f32.gmra.mxu3 %v602_v9 }
 0x246   : > { %v2323_v63 = vpop.f32.mrf.mxu2  ;;  %2692 = vmatmul.f32.gmra.mxu0 %v5311_v20  ;;  %2853 = vmatmul.f32.gmra.mxu1 %v850_v60  ;;  %v5328_v60 = vsel %vm317_vm0, %v699_v61, %v700_v32  ;;  %v605_v20 = vld [vmem:[%s3963_s9 + $0x188] sm:$0xff] }
 0x247   : > { %v2484_v47 = vpop.f32.mrf.mxu3  ;;  %v2324_v9 = vadd.f32 %v2323_v63, %v6078_v4  ;;  %6079 = vst [vmem:[#allocation28_spill] sm:$0xff] %v5328_v60  ;;  %v3849_v63 = vld [vmem:[%s3963_s9 + $0x170] sm:$0xff] }
 0x248   : > { %v460_v4 = vrot.slane %v3849_v63, 2  ;;  %v3850_v63 = vld [vmem:[%s3963_s9 + $0x178] sm:$0xff] }
 0x249   : > { %v2485_v34 = vadd.f32 %v2484_v47, %v2324_v9  ;;  %v6080_v47 = vld [vmem:[#allocation32_spill] sm:$0xff]  ;;  %v845_v9 = vrot.slane %v605_v20, 2 }
 0x24a   : > { %v464_v61 = vsel %vm462_vm1, %v459_v43, %v460_v4  ;;  %v6082_v43 = vld [vmem:[#allocation36_spill] sm:$0xff] }
 0x24b   : > { %v5324_v27 = vadd.f32 %v2645_v2, %v2485_v34  ;;  %2373 = vmatmul.f32.gmra.mxu2 %v465_v5  ;;  %v2648_v42 = vpop.f32.mrf.mxu0  ;;  %v701_v2 = vrot.slane %v605_v20, 1 }
 0x24c   : > { %2534 = vmatmul.f32.gmra.mxu3 %v603_v59 }
 0x24d   : > { %v5342_v34 = vsel %vm317_vm0, %v700_v32, %v701_v2 }
 0x24e   : > { %v2326_v54 = vpop.f32.mrf.mxu2  ;;  %2695 = vmatmul.f32.gmra.mxu0 %v5328_v60  ;;  %2856 = vmatmul.f32.gmra.mxu1 %v849_v36  ;;  %6081 = vst [vmem:[#allocation32_spill] sm:$0xff] %v5342_v34  ;;  %v848_v36 = vsel %vm462_vm1, %v844_v56, %v845_v9 }
 0x24f   : > { %v2487_v48 = vpop.f32.mrf.mxu3  ;;  %v2327_v59 = vadd.f32 %v2326_v54, %v6080_v47  ;;  %v461_v54 = vrot.slane %v3850_v63, 2  ;;  %v606_v47 = vld [vmem:[%s3963_s9 + $0x190] sm:$0xff] }
 0x251   : > { %v2488_v26 = vadd.f32 %v2487_v48, %v2327_v59  ;;  %v702_v48 = vrot.slane %v606_v47, 1  ;;  %v463_v59 = vsel %vm462_vm1, %v460_v4, %v461_v54 }
 0x253   : > { %v5338_v5 = vadd.f32 %v2648_v42, %v2488_v26  ;;  %2376 = vmatmul.f32.gmra.mxu2 %v464_v61  ;;  %v2651_v3 = vpop.f32.mrf.mxu0  ;;  %v5356_v26 = vsel %vm317_vm0, %v701_v2, %v702_v48 }
 0x254   : > { %2537 = vmatmul.f32.gmra.mxu3 %v604_v17  ;;  %v846_v17 = vrot.slane %v606_v47, 2  ;;  %6083 = vst [vmem:[#allocation36_spill] sm:$0xff] %v5356_v26 }
 0x256   : > { %v2329_v60 = vpop.f32.mrf.mxu2  ;;  %2698 = vmatmul.f32.gmra.mxu0 %v5342_v34  ;;  %2859 = vmatmul.f32.gmra.mxu1 %v848_v36  ;;  %v6091_v34 = vld [vmem:[#allocation43_spill] sm:$0xff] }
 0x257   : > { %v2490_v24 = vpop.f32.mrf.mxu3  ;;  %v2330_v42 = vadd.f32 %v2329_v60, %v6082_v43  ;;  %v847_v60 = vsel %vm462_vm1, %v845_v9, %v846_v17  ;;  %v944_v9 = vld [vmem:[%s3963_s9 + $0x38] sm:$0xff] }
 0x259   : > { %v2491_v32 = vadd.f32 %v2490_v24, %v2330_v42  ;;  %v6084_v24 = vld [vmem:[#allocation38_spill] sm:$0xff] }
 0x25b   : > { %v5352_v61 = vadd.f32 %v2651_v3, %v2491_v32  ;;  %2379 = vmatmul.f32.gmra.mxu2 %v463_v59  ;;  %v2654_v56 = vpop.f32.mrf.mxu0  ;;  %v3404_v3 = vld [vmem:[%s5923_s2 + $0x20] sm:$0xff]  ;;  %v5370_v59 = vld [vmem:[%s3963_s9 + $0x30] sm:$0xff] }
 0x25c   : > { %2540 = vmatmul.f32.gmra.mxu3 %v605_v20  ;;  %v6085_v20 = vld [vmem:[#allocation3_spill] sm:$0xff]  ;;  %3427 = vmatpush.msra.mxu1 %v3404_v3 }
 0x25d   : > { %v6086_v43 = vrot.slane %v6085_v20, 2  ;;  %v6089_v20 = vld [vmem:[#allocation40_spill] sm:$0xff] }
 0x25e   : > { %v2332_v36 = vpop.f32.mrf.mxu2  ;;  %2701 = vmatmul.f32.gmra.mxu0 %v5356_v26  ;;  %2862 = vmatmul.f32.gmra.mxu1 %v847_v60 }
 0x25f   : > { %v2493_v63 = vpop.f32.mrf.mxu3  ;;  %v2333_v4 = vadd.f32 %v2332_v36, %v6084_v24  ;;  %v510_v2 = vsel %vm462_vm1, %v461_v54, %v6086_v43  ;;  %v6087_v36 = vld [vmem:[#allocation4_spill] sm:$0xff]  ;;  %v894_v54 = vsel %vm462_vm1, %v846_v17, %v6089_v20 }
 0x260   : > { %v5378_v24 = vsel %vm317_vm0, %v702_v48, %v6087_v36  ;;  %v945_v36 = vld [vmem:[%s3963_s9 + $0x40] sm:$0xff] }
 0x261   : > { %v2494_v42 = vadd.f32 %v2493_v63, %v2333_v4  ;;  %6088 = vst [vmem:[#allocation38_spill] sm:$0xff] %v5378_v24  ;;  %v5968_v63 = vrot.slane %v5370_v59, 1  ;;  %v1040_v4 = vrot.slane %v944_v9, 1  ;;  %v1185_v50 = vrot.slane %v945_v36, 2 }
 0x263   : > { %v5373_v32 = vadd.f32 %v2654_v56, %v2494_v42  ;;  %2382 = vmatmul.f32.gmra.mxu2 %v510_v2  ;;  %v2657_v60 = vpop.f32.mrf.mxu0  ;;  %v6090_v56 = vld [vmem:[#allocation39_spill] sm:$0xff]  ;;  %v5970_v2 = vrot.slane %v5370_v59, 2  ;;  %v1184_v42 = vrot.slane %v944_v9, 2  ;;  %v1133_v48 = vsel %vm317_vm0, %v5968_v63, %v1040_v4 }
 0x264   : > { %2543 = vmatmul.f32.gmra.mxu3 %v606_v47 }
 0x266   : > { %v2335_v3 = vpop.f32.mrf.mxu2  ;;  %2704 = vmatmul.f32.gmra.mxu0 %v5378_v24  ;;  %2865 = vmatmul.f32.gmra.mxu1 %v894_v54  ;;  %v1277_v54 = vsel %vm462_vm1, %v5970_v2, %v1184_v42  ;;  %v1276_v2 = vsel %vm462_vm1, %v1184_v42, %v1185_v50 }
 0x267   : > { %v2496_v43 = vpop.f32.mrf.mxu3  ;;  %v2336_v47 = vadd.f32 %v2335_v3, %v6090_v56  ;;  %v1041_v3 = vrot.slane %v945_v36, 1 }
 0x269   : > { %v2497_v17 = vadd.f32 %v2496_v43, %v2336_v47  ;;  %v946_v47 = vld [vmem:[%s3963_s9 + $0x48] sm:$0xff] }
 0x26a   : > { %v1042_v6 = vrot.slane %v946_v47, 1  ;;  %v1186_v1 = vrot.slane %v946_v47, 2 }
 0x26b   : > { %v5392_v20 = vadd.f32 %v2657_v60, %v2497_v17  ;;  %2885 = vmatmul.f32.vlgmr.msra.gmra.mxu2 %v5370_v59  ;;  %v2660_v24 = vpop.f32.mrf.mxu0  ;;  %v1132_v60 = vsel %vm317_vm0, %v1040_v4, %v1041_v3 }
 0x26c   : > { %3046 = vmatmul.f32.vlgmr.msra.gmra.mxu3 %v1133_v48 }
 0x26e   : > { %v2338_v56 = vpop.f32.mrf.mxu2  ;;  %3207 = vmatmul.f32.vlgmr.msra.gmra.mxu0 %v1277_v54 }
 0x26f   : > { %v2499_v26 = vpop.f32.mrf.mxu3  ;;  %v2339_v63 = vadd.f32 %v2338_v56, %v6091_v34  ;;  %v6093_v34 = vld [vmem:[#allocation44_spill] sm:$0xff] }
 0x271   : > { %v2500_v43 = vadd.f32 %v2499_v26, %v2339_v63  ;;  %v3403_v26 = vld [vmem:[%s5923_s2 + $0x18] sm:$0xff]  ;;  %v947_v63 = vld [vmem:[%s3963_s9 + $0x50] sm:$0xff] }
 0x272   : > { %3428 = vmatpush.msra.mxu1 %v3403_v26  ;;  %v1187_v33 = vrot.slane %v947_v63, 2 }
 0x273   : > { %v5403_v48 = vadd.f32 %v2660_v24, %v2500_v43  ;;  %2888 = vmatmul.f32.gmra.mxu2 %v944_v9  ;;  %v2663_v17 = vpop.f32.mrf.mxu0  ;;  %v1131_v24 = vsel %vm317_vm0, %v1041_v3, %v1042_v6 }
 0x274   : > { %3049 = vmatmul.f32.gmra.mxu3 %v1132_v60 }
 0x275   : > { %6092 = vst [vmem:[#allocation3_spill] sm:$0xff] %v5403_v48 }
 0x276   : > { %v2341_v35 = vpop.f32.mrf.mxu2  ;;  %3210 = vmatmul.f32.gmra.mxu0 %v1276_v2  ;;  %v1043_v2 = vrot.slane %v947_v63, 1 }
 0x277   : > { %v2502_v54 = vpop.f32.mrf.mxu3  ;;  %v2342_v56 = vadd.f32 %v2341_v35, %v6093_v34  ;;  %v1275_v35 = vsel %vm462_vm1, %v1185_v50, %v1186_v1  ;;  %v6095_v34 = vld [vmem:[#allocation45_spill] sm:$0xff]  ;;  %v1274_v50 = vsel %vm462_vm1, %v1186_v1, %v1187_v33 }
 0x278   : > { %v1130_v3 = vsel %vm317_vm0, %v1042_v6, %v1043_v2 }
 0x279   : > { %v2503_v9 = vadd.f32 %v2502_v54, %v2342_v56 }
 0x27b   : > { %v5414_v4 = vadd.f32 %v2663_v17, %v2503_v9  ;;  %2891 = vmatmul.f32.gmra.mxu2 %v945_v36  ;;  %v2666_v42 = vpop.f32.mrf.mxu0  ;;  %v948_v17 = vld [vmem:[%s3963_s9 + $0x58] sm:$0xff] }
 0x27c   : > { %3052 = vmatmul.f32.gmra.mxu3 %v1131_v24  ;;  %v1044_v26 = vrot.slane %v948_v17, 1  ;;  %v5426_v24 = vpop.f32.mrf.mxu1  ;;  %v1188_v6 = vrot.slane %v948_v17, 2  ;;  %v6141_v29 = vld [vmem:[#allocation3_spill] sm:$0xff] }
 0x27d   : > { %6094 = vst [vmem:[#allocation4_spill] sm:$0xff] %v5414_v4 }
 0x27e   : > { %v2344_v60 = vpop.f32.mrf.mxu2  ;;  %3213 = vmatmul.f32.gmra.mxu0 %v1275_v35 }
 0x27f   : > { %v2505_v43 = vpop.f32.mrf.mxu3  ;;  %v2345_v38 = vadd.f32 %v2344_v60, %v6095_v34  ;;  %v6097_v60 = vld [vmem:[#allocation46_spill] sm:$0xff] }
 0x281   : > { %v2506_v54 = vadd.f32 %v2505_v43, %v2345_v38  ;;  %v1129_v38 = vsel %vm317_vm0, %v1043_v2, %v1044_v26  ;;  %v949_v43 = vld [vmem:[%s3963_s9 + $0x60] sm:$0xff] }
 0x282   : > { %v1189_v2 = vrot.slane %v949_v43, 2 }
 0x283   : > { %v5422_v56 = vadd.f32 %v2666_v42, %v2506_v54  ;;  %2894 = vmatmul.f32.gmra.mxu2 %v946_v47  ;;  %v2669_v36 = vpop.f32.mrf.mxu0  ;;  %v1045_v54 = vrot.slane %v949_v43, 1 }
 0x284   : > { %3055 = vmatmul.f32.gmra.mxu3 %v1130_v3  ;;  %v1273_v3 = vsel %vm462_vm1, %v1187_v33, %v1188_v6  ;;  %v950_v33 = vld [vmem:[%s3963_s9 + $0x68] sm:$0xff] }
 0x285   : > { %6096 = vst [vmem:[#allocation40_spill] sm:$0xff] %v5422_v56  ;;  %v1190_v45 = vrot.slane %v950_v33, 2 }
 0x286   : > { %v2347_v9 = vpop.f32.mrf.mxu2  ;;  %3216 = vmatmul.f32.gmra.mxu0 %v1274_v50 }
 0x287   : > { %v2508_v35 = vpop.f32.mrf.mxu3  ;;  %v2348_v34 = vadd.f32 %v2347_v9, %v6097_v60  ;;  %v5436_v9 = vpop.f32.mrf.mxu1  ;;  %v6099_v60 = vld [vmem:[#allocation47_spill] sm:$0xff] }
 0x289   : > { %v2509_v42 = vadd.f32 %v2508_v35, %v2348_v34 }
 0x28b   : > { %v5432_v47 = vadd.f32 %v2669_v36, %v2509_v42  ;;  %2897 = vmatmul.f32.gmra.mxu2 %v947_v63  ;;  %v2672_v1 = vpop.f32.mrf.mxu0  ;;  %v3402_v36 = vld [vmem:[%s5923_s2 + $0x10] sm:$0xff]  ;;  %v1128_v63 = vsel %vm317_vm0, %v1044_v26, %v1045_v54  ;;  %v1046_v42 = vrot.slane %v950_v33, 1 }
 0x28c   : > { %3058 = vmatmul.f32.gmra.mxu3 %v1129_v38  ;;  %3429 = vmatpush.msra.mxu1 %v3402_v36  ;;  %v1271_v36 = vsel %vm462_vm1, %v1189_v2, %v1190_v45 }
 0x28d   : > { %6098 = vst [vmem:[#allocation39_spill] sm:$0xff] %v5432_v47 }
 0x28e   : > { %v2350_v21 = vpop.f32.mrf.mxu2  ;;  %3219 = vmatmul.f32.gmra.mxu0 %v1273_v3 }
 0x28f   : > { %v2511_v50 = vpop.f32.mrf.mxu3  ;;  %v2351_v14 = vadd.f32 %v2350_v21, %v6099_v60  ;;  %v1272_v21 = vsel %vm462_vm1, %v1188_v6, %v1189_v2  ;;  %v5452_v26 = vpop.f32.mrf.mxu1 }
 0x291   : > { %v2512_v35 = vadd.f32 %v2511_v50, %v2351_v14  ;;  %v1127_v14 = vsel %vm317_vm0, %v1045_v54, %v1046_v42 }
 0x293   : > { %v5445_v34 = vadd.f32 %v2672_v1, %v2512_v35  ;;  %2900 = vmatmul.f32.gmra.mxu2 %v948_v17  ;;  %v2675_v38 = vpop.f32.mrf.mxu0  ;;  %v951_v17 = vld [vmem:[%s3963_s9 + $0x70] sm:$0xff] }
 0x294   : > { %3061 = vmatmul.f32.gmra.mxu3 %v1128_v63  ;;  %v1047_v63 = vrot.slane %v951_v17, 1  ;;  %v1191_v54 = vrot.slane %v951_v17, 2 }
 0x295   : > { %6100 = vst [vmem:[#allocation43_spill] sm:$0xff] %v5445_v34  ;;  %v6107_v34 = vld [vmem:[#allocation51_spill] sm:$0xff] }
 0x296   : > { %v2353_v3 = vpop.f32.mrf.mxu2  ;;  %3222 = vmatmul.f32.gmra.mxu0 %v1272_v21  ;;  %v6103_v21 = vld [vmem:[#allocation49_spill] sm:$0xff]  ;;  %v1126_v10 = vsel %vm317_vm0, %v1046_v42, %v1047_v63 }
 0x297   : > { %v2514_v60 = vpop.f32.mrf.mxu3  ;;  %v2354_v51 = vadd.f32 %v2353_v3, %v6101_v31 }
 0x299   : > { %v2515_v1 = vadd.f32 %v2514_v60, %v2354_v51  ;;  %v952_v60 = vld [vmem:[%s3963_s9 + $0x78] sm:$0xff] }
 0x29a   : > { %v1192_v42 = vrot.slane %v952_v60, 2 }
 0x29b   : > { %v5455_v50 = vadd.f32 %v2675_v38, %v2515_v1  ;;  %2903 = vmatmul.f32.gmra.mxu2 %v949_v43  ;;  %v2678_v6 = vpop.f32.mrf.mxu0  ;;  %v5463_v38 = vpop.f32.mrf.mxu1  ;;  %v1048_v1 = vrot.slane %v952_v60, 1 }
 0x29c   : > { %3064 = vmatmul.f32.gmra.mxu3 %v1127_v14  ;;  %v1270_v14 = vsel %vm462_vm1, %v1190_v45, %v1191_v54 }
 0x29d   : > { %6102 = vst [vmem:[#allocation44_spill] sm:$0xff] %v5455_v50 }
 0x29e   : > { %v2356_v35 = vpop.f32.mrf.mxu2  ;;  %3225 = vmatmul.f32.gmra.mxu0 %v1271_v36 }
 0x29f   : > { %v2517_v31 = vpop.f32.mrf.mxu3  ;;  %v2357_v3 = vadd.f32 %v2356_v35, %v6103_v21  ;;  %v6105_v21 = vld [vmem:[#allocation50_spill] sm:$0xff] }
 0x2a1   : > { %v2518_v51 = vadd.f32 %v2517_v31, %v2357_v3  ;;  %v3401_v31 = vld [vmem:[%s5923_s2 + $0x8] sm:$0xff] }
 0x2a2   : > { %3430 = vmatpush.msra.mxu1 %v3401_v31 }
 0x2a3   : > { %v5465_v43 = vadd.f32 %v2678_v6, %v2518_v51  ;;  %2906 = vmatmul.f32.gmra.mxu2 %v950_v33  ;;  %v2681_v2 = vpop.f32.mrf.mxu0  ;;  %v1125_v6 = vsel %vm317_vm0, %v1047_v63, %v1048_v1  ;;  %v953_v33 = vld [vmem:[%s3963_s9 + $0x80] sm:$0xff]  ;;  %v1269_v51 = vsel %vm462_vm1, %v1191_v54, %v1192_v42 }
 0x2a4   : > { %3067 = vmatmul.f32.gmra.mxu3 %v1126_v10  ;;  %v1193_v31 = vrot.slane %v953_v33, 2 }
 0x2a5   : > { %6104 = vst [vmem:[#allocation45_spill] sm:$0xff] %v5465_v43 }
 0x2a6   : > { %v2359_v36 = vpop.f32.mrf.mxu2  ;;  %3228 = vmatmul.f32.gmra.mxu0 %v1270_v14  ;;  %v1049_v14 = vrot.slane %v953_v33, 1 }
 0x2a7   : > { %v2520_v35 = vpop.f32.mrf.mxu3  ;;  %v2360_v50 = vadd.f32 %v2359_v36, %v6105_v21  ;;  %v5480_v36 = vpop.f32.mrf.mxu1 }
 0x2a9   : > { %v2521_v10 = vadd.f32 %v2520_v35, %v2360_v50  ;;  %v1124_v50 = vsel %vm317_vm0, %v1048_v1, %v1049_v14 }
 0x2ab   : > { %v5476_v3 = vadd.f32 %v2681_v2, %v2521_v10  ;;  %2909 = vmatmul.f32.gmra.mxu2 %v951_v17  ;;  %v2684_v45 = vpop.f32.mrf.mxu0  ;;  %v954_v17 = vld [vmem:[%s3963_s9 + $0x88] sm:$0xff] }
 0x2ac   : > { %3070 = vmatmul.f32.gmra.mxu3 %v1125_v6  ;;  %v1268_v6 = vsel %vm462_vm1, %v1192_v42, %v1193_v31  ;;  %v1050_v10 = vrot.slane %v954_v17, 1  ;;  %v1194_v1 = vrot.slane %v954_v17, 2 }
 0x2ad   : > { %6106 = vst [vmem:[#allocation46_spill] sm:$0xff] %v5476_v3 }
 0x2ae   : > { %v2362_v21 = vpop.f32.mrf.mxu2  ;;  %3231 = vmatmul.f32.gmra.mxu0 %v1269_v51 }
 0x2af   : > { %v2523_v43 = vpop.f32.mrf.mxu3  ;;  %v2363_v63 = vadd.f32 %v2362_v21, %v6107_v34  ;;  %v5490_v34 = vpop.f32.mrf.mxu1  ;;  %v6109_v21 = vld [vmem:[#allocation52_spill] sm:$0xff] }
 0x2b1   : > { %v2524_v2 = vadd.f32 %v2523_v43, %v2363_v63  ;;  %v1123_v43 = vsel %vm317_vm0, %v1049_v14, %v1050_v10  ;;  %v955_v63 = vld [vmem:[%s3963_s9 + $0x90] sm:$0xff] }
 0x2b2   : > { %v1195_v56 = vrot.slane %v955_v63, 2 }
 0x2b3   : > { %v5486_v35 = vadd.f32 %v2684_v45, %v2524_v2  ;;  %2912 = vmatmul.f32.gmra.mxu2 %v952_v60  ;;  %v2687_v54 = vpop.f32.mrf.mxu0  ;;  %v1051_v2 = vrot.slane %v955_v63, 1 }
 0x2b4   : > { %3073 = vmatmul.f32.gmra.mxu3 %v1124_v50  ;;  %v1267_v50 = vsel %vm462_vm1, %v1193_v31, %v1194_v1  ;;  %v956_v31 = vld [vmem:[%s3963_s9 + $0x98] sm:$0xff] }
 0x2b5   : > { %6108 = vst [vmem:[#allocation47_spill] sm:$0xff] %v5486_v35  ;;  %v1122_v14 = vsel %vm317_vm0, %v1050_v10, %v1051_v2 }
 0x2b6   : > { %v2365_v3 = vpop.f32.mrf.mxu2  ;;  %3234 = vmatmul.f32.gmra.mxu0 %v1268_v6 }
 0x2b7   : > { %v2526_v51 = vpop.f32.mrf.mxu3  ;;  %v2366_v47 = vadd.f32 %v2365_v3, %v6109_v21  ;;  %v6111_v3 = vld [vmem:[#allocation53_spill] sm:$0xff] }
 0x2b9   : > { %v2527_v45 = vadd.f32 %v2526_v51, %v2366_v47  ;;  %v3400_v47 = vld [vmem:[%s5923_s2] sm:$0xff] }
 0x2ba   : > { %3431 = vmatpush.msra.mxu1 %v3400_v47  ;;  %v1196_v47 = vrot.slane %v956_v31, 2 }
 0x2bb   : > { %v5496_v60 = vadd.f32 %v2687_v54, %v2527_v45  ;;  %2915 = vmatmul.f32.gmra.mxu2 %v953_v33  ;;  %v2690_v42 = vpop.f32.mrf.mxu0  ;;  %v5506_v33 = vpop.f32.mrf.mxu1  ;;  %v1266_v45 = vsel %vm462_vm1, %v1194_v1, %v1195_v56 }
 0x2bc   : > { %3076 = vmatmul.f32.gmra.mxu3 %v1123_v43 }
 0x2bd   : > { %6110 = vst [vmem:[#allocation48_spill] sm:$0xff] %v5496_v60  ;;  %v6113_v60 = vld [vmem:[#allocation54_spill] sm:$0xff] }
 0x2be   : > { %v2368_v6 = vpop.f32.mrf.mxu2  ;;  %3237 = vmatmul.f32.gmra.mxu0 %v1267_v50  ;;  %v1052_v50 = vrot.slane %v956_v31, 1 }
 0x2bf   : > { %v2529_v35 = vpop.f32.mrf.mxu3  ;;  %v2369_v21 = vadd.f32 %v2368_v6, %v6111_v3 }
 0x2c0   : > { %v1121_v4 = vsel %vm317_vm0, %v1051_v2, %v1052_v50 }
 0x2c1   : > { %v2530_v54 = vadd.f32 %v2529_v35, %v2369_v21 }
 0x2c3   : > { %v5509_v51 = vadd.f32 %v2690_v42, %v2530_v54  ;;  %2918 = vmatmul.f32.gmra.mxu2 %v954_v17  ;;  %v2693_v43 = vpop.f32.mrf.mxu0  ;;  %v957_v42 = vld [vmem:[%s3963_s9 + $0xa0] sm:$0xff]  ;;  %v5517_v21 = vpop.f32.mrf.mxu1 }
 0x2c4   : > { %3079 = vmatmul.f32.gmra.mxu3 %v1122_v14  ;;  %v1265_v14 = vsel %vm462_vm1, %v1195_v56, %v1196_v47  ;;  %v1053_v54 = vrot.slane %v957_v42, 1  ;;  %v1197_v2 = vrot.slane %v957_v42, 2 }
 0x2c5   : > { %6112 = vst [vmem:[#allocation49_spill] sm:$0xff] %v5509_v51 }
 0x2c6   : > { %v2371_v6 = vpop.f32.mrf.mxu2  ;;  %3240 = vmatmul.f32.gmra.mxu0 %v1266_v45  ;;  %v1264_v56 = vsel %vm462_vm1, %v1196_v47, %v1197_v2 }
 0x2c7   : > { %v2532_v3 = vpop.f32.mrf.mxu3  ;;  %v2372_v10 = vadd.f32 %v2371_v6, %v6113_v60  ;;  %v6115_v6 = vld [vmem:[#allocation55_spill] sm:$0xff] }
 0x2c9   : > { %v2533_v35 = vadd.f32 %v2532_v3, %v2372_v10  ;;  %v1120_v3 = vsel %vm317_vm0, %v1052_v50, %v1053_v54 }
 0x2cb   : > { %v5519_v17 = vadd.f32 %v2693_v43, %v2533_v35  ;;  %2921 = vmatmul.f32.gmra.mxu2 %v955_v63  ;;  %v2696_v1 = vpop.f32.mrf.mxu0  ;;  %v958_v43 = vld [vmem:[%s3963_s9 + $0xa8] sm:$0xff] }
 0x2cc   : > { %3082 = vmatmul.f32.gmra.mxu3 %v1121_v4  ;;  %v1054_v63 = vrot.slane %v958_v43, 1  ;;  %v1198_v50 = vrot.slane %v958_v43, 2 }
 0x2cd   : > { %6114 = vst [vmem:[#allocation50_spill] sm:$0xff] %v5519_v17  ;;  %v5531_v17 = vpop.f32.mrf.mxu1 }
 0x2ce   : > { %v2374_v45 = vpop.f32.mrf.mxu2  ;;  %3243 = vmatmul.f32.gmra.mxu0 %v1265_v14  ;;  %6117 = vst [vmem:[#allocation52_spill] sm:$0xff] %v5531_v17 }
 0x2cf   : > { %v2535_v60 = vpop.f32.mrf.mxu3  ;;  %v2375_v51 = vadd.f32 %v2374_v45, %v6115_v6  ;;  %v6118_v6 = vld [vmem:[#allocation56_spill] sm:$0xff] }
 0x2d1   : > { %v2536_v10 = vadd.f32 %v2535_v60, %v2375_v51  ;;  %v1119_v51 = vsel %vm317_vm0, %v1053_v54, %v1054_v63 }
 0x2d3   : > { %v5527_v35 = vadd.f32 %v2696_v1, %v2536_v10  ;;  %2924 = vmatmul.f32.gmra.mxu2 %v956_v31  ;;  %v2699_v4 = vpop.f32.mrf.mxu0  ;;  %v959_v31 = vld [vmem:[%s3963_s9 + $0xb0] sm:$0xff] }
 0x2d4   : > { %3085 = vmatmul.f32.gmra.mxu3 %v1120_v3  ;;  %v1263_v3 = vsel %vm462_vm1, %v1197_v2, %v1198_v50  ;;  %v1055_v10 = vrot.slane %v959_v31, 1  ;;  %v1199_v54 = vrot.slane %v959_v31, 2 }
 0x2d5   : > { %6116 = vst [vmem:[#allocation51_spill] sm:$0xff] %v5527_v35 }
 0x2d6   : > { %v2377_v14 = vpop.f32.mrf.mxu2  ;;  %3246 = vmatmul.f32.gmra.mxu0 %v1264_v56 }
 0x2d7   : > { %v2538_v45 = vpop.f32.mrf.mxu3  ;;  %v2378_v48 = vadd.f32 %v2377_v14, %v6118_v6  ;;  %v5541_v14 = vpop.f32.mrf.mxu1  ;;  %v6120_v6 = vld [vmem:[#allocation57_spill] sm:$0xff] }
 0x2d9   : > { %v2539_v1 = vadd.f32 %v2538_v45, %v2378_v48  ;;  %v1118_v48 = vsel %vm317_vm0, %v1054_v63, %v1055_v10 }
 0x2db   : > { %v5537_v60 = vadd.f32 %v2699_v4, %v2539_v1  ;;  %2927 = vmatmul.f32.gmra.mxu2 %v957_v42  ;;  %v2702_v47 = vpop.f32.mrf.mxu0  ;;  %v960_v42 = vld [vmem:[%s3963_s9 + $0xb8] sm:$0xff] }
 0x2dc   : > { %3088 = vmatmul.f32.gmra.mxu3 %v1119_v51  ;;  %v1262_v51 = vsel %vm462_vm1, %v1198_v50, %v1199_v54  ;;  %v1056_v1 = vrot.slane %v960_v42, 1 }
 0x2dd   : > { %6119 = vst [vmem:[#allocation53_spill] sm:$0xff] %v5537_v60 }
 0x2de   : > { %v2380_v35 = vpop.f32.mrf.mxu2  ;;  %3249 = vmatmul.f32.gmra.mxu0 %v1263_v3 }
 0x2df   : > { %v2541_v56 = vpop.f32.mrf.mxu3  ;;  %v2381_v17 = vadd.f32 %v2380_v35, %v6120_v6  ;;  %v1200_v6 = vrot.slane %v960_v42, 2  ;;  %v5554_v63 = vpop.f32.mrf.mxu1 }
 0x2e1   : > { %v2542_v4 = vadd.f32 %v2541_v56, %v2381_v17  ;;  %v1117_v17 = vsel %vm317_vm0, %v1055_v10, %v1056_v1 }
 0x2e3   : > { %v5547_v45 = vadd.f32 %v2702_v47, %v2542_v4  ;;  %2930 = vmatmul.f32.gmra.mxu2 %v958_v43  ;;  %v2705_v2 = vpop.f32.mrf.mxu0  ;;  %v961_v43 = vld [vmem:[%s3963_s9 + $0xc0] sm:$0xff] }
 0x2e4   : > { %3091 = vmatmul.f32.gmra.mxu3 %v1118_v48  ;;  %v1261_v48 = vsel %vm462_vm1, %v1199_v54, %v1200_v6  ;;  %v1057_v4 = vrot.slane %v961_v43, 1  ;;  %v1201_v10 = vrot.slane %v961_v43, 2 }
 0x2e5   : > { %6121 = vst [vmem:[#allocation54_spill] sm:$0xff] %v5547_v45 }
 0x2e6   : > { %v2383_v3 = vpop.f32.mrf.mxu2  ;;  %3252 = vmatmul.f32.gmra.mxu0 %v1262_v51  ;;  %v1116_v45 = vsel %vm317_vm0, %v1056_v1, %v1057_v4  ;;  %v1260_v54 = vsel %vm462_vm1, %v1200_v6, %v1201_v10 }
 0x2e7   : > { %v2544_v60 = vpop.f32.mrf.mxu3  ;;  %v2384_v35 = vadd.f32 %v2383_v3, %v4819_v12 }
 0x2e9   : > { %v2545_v47 = vadd.f32 %v2544_v60, %v2384_v35  ;;  %v962_v35 = vld [vmem:[%s3963_s9 + $0xc8] sm:$0xff] }
 0x2ea   : > { %v1202_v1 = vrot.slane %v962_v35, 2 }
 0x2eb   : > { %v5557_v56 = vadd.f32 %v2705_v2, %v2545_v47  ;;  %2933 = vmatmul.f32.gmra.mxu2 %v959_v31  ;;  %v3208_v50 = vpop.f32.mrf.mxu0  ;;  %v5565_v2 = vpop.f32.mrf.mxu1  ;;  %v1058_v47 = vrot.slane %v962_v35, 1 }
 0x2ec   : > { %3094 = vmatmul.f32.gmra.mxu3 %v1117_v17  ;;  %v1259_v6 = vsel %vm462_vm1, %v1201_v10, %v1202_v1 }
 0x2ed   : > { %6122 = vst [vmem:[#allocation55_spill] sm:$0xff] %v5557_v56 }
 0x2ee   : > { %v2886_v51 = vpop.f32.mrf.mxu2  ;;  %3255 = vmatmul.f32.gmra.mxu0 %v1261_v48 }
 0x2ef   : > { %v3047_v12 = vpop.f32.mrf.mxu3  ;;  %v2887_v3 = vadd.f32 %v2886_v51, %v4840_v40 }
 0x2f1   : > { %v3048_v60 = vadd.f32 %v3047_v12, %v2887_v3  ;;  %v1115_v12 = vsel %vm317_vm0, %v1057_v4, %v1058_v47 }
 0x2f3   : > { %v3209_v31 = vadd.f32 %v3208_v50, %v3048_v60  ;;  %2936 = vmatmul.f32.gmra.mxu2 %v960_v42  ;;  %v3211_v17 = vpop.f32.mrf.mxu0  ;;  %v963_v50 = vld [vmem:[%s3963_s9 + $0xd0] sm:$0xff] }
 0x2f4   : > { %3097 = vmatmul.f32.gmra.mxu3 %v1116_v45  ;;  %v1059_v60 = vrot.slane %v963_v50, 1  ;;  %v1203_v4 = vrot.slane %v963_v50, 2 }
 0x2f5   : > { %v3352_v48 = vmax.f32 %v3209_v31, 0.0  ;;  %v5575_v31 = vpop.f32.mrf.mxu1 }
 0x2f6   : > { %v2889_v56 = vpop.f32.mrf.mxu2  ;;  %3258 = vmatmul.f32.gmra.mxu0 %v1260_v54  ;;  %6123 = vst [vmem:[#allocation56_spill] sm:$0xff] %v5575_v31 }
 0x2f7   : > { %v3050_v40 = vpop.f32.mrf.mxu3  ;;  %v2890_v51 = vadd.f32 %v2889_v56, %v4852_v19  ;;  %3432 = vmatmul.f32.vlgmr.msra.gmra.mxu1 %v3352_v48 }
 0x2f9   : > { %v3051_v3 = vadd.f32 %v3050_v40, %v2890_v51  ;;  %v964_v40 = vld [vmem:[%s3963_s9 + $0xd8] sm:$0xff] }
 0x2fb   : > { %v3212_v42 = vadd.f32 %v3211_v17, %v3051_v3  ;;  %2939 = vmatmul.f32.gmra.mxu2 %v961_v43  ;;  %v3214_v45 = vpop.f32.mrf.mxu0  ;;  %v1114_v17 = vsel %vm317_vm0, %v1058_v47, %v1059_v60  ;;  %v1060_v3 = vrot.slane %v964_v40, 1  ;;  %v1204_v47 = vrot.slane %v964_v40, 2 }
 0x2fc   : > { %3100 = vmatmul.f32.gmra.mxu3 %v1115_v12  ;;  %v1258_v12 = vsel %vm462_vm1, %v1202_v1, %v1203_v4 }
 0x2fd   : > { %v3353_v54 = vmax.f32 %v3212_v42, 0.0 }
 0x2fe   : > { %v2892_v19 = vpop.f32.mrf.mxu2  ;;  %3261 = vmatmul.f32.gmra.mxu0 %v1259_v6 }
 0x2ff   : > { %v3053_v56 = vpop.f32.mrf.mxu3  ;;  %v2893_v48 = vadd.f32 %v2892_v19, %v4868_v46  ;;  %3435 = vmatmul.f32.gmra.mxu1 %v3353_v54  ;;  %v5583_v46 = vpop.f32.mrf.mxu1  ;;  %v965_v19 = vld [vmem:[%s3963_s9 + $0xe0] sm:$0xff] }
 0x301   : > { %v3054_v43 = vadd.f32 %v3053_v56, %v2893_v48  ;;  %v1257_v48 = vsel %vm462_vm1, %v1203_v4, %v1204_v47 }
 0x303   : > { %v3215_v51 = vadd.f32 %v3214_v45, %v3054_v43  ;;  %2942 = vmatmul.f32.gmra.mxu2 %v962_v35  ;;  %v3217_v10 = vpop.f32.mrf.mxu0  ;;  %v1113_v45 = vsel %vm317_vm0, %v1059_v60, %v1060_v3 }
 0x304   : > { %3103 = vmatmul.f32.gmra.mxu3 %v1114_v17  ;;  %v1061_v17 = vrot.slane %v965_v19, 1 }
 0x305   : > { %v3354_v42 = vmax.f32 %v3215_v51, 0.0 }
 0x306   : > { %v2895_v6 = vpop.f32.mrf.mxu2  ;;  %3264 = vmatmul.f32.gmra.mxu0 %v1258_v12  ;;  %v1112_v60 = vsel %vm317_vm0, %v1060_v3, %v1061_v17 }
 0x307   : > { %v3056_v31 = vpop.f32.mrf.mxu3  ;;  %v2896_v54 = vadd.f32 %v2895_v6, %v4889_v7  ;;  %3438 = vmatmul.f32.gmra.mxu1 %v3354_v42  ;;  %v1205_v42 = vrot.slane %v965_v19, 2 }
 0x309   : > { %v3057_v35 = vadd.f32 %v3056_v31, %v2896_v54  ;;  %v5594_v31 = vpop.f32.mrf.mxu1  ;;  %v1256_v54 = vsel %vm462_vm1, %v1204_v47, %v1205_v42 }
 0x30b   : > { %v3218_v56 = vadd.f32 %v3217_v10, %v3057_v35  ;;  %2945 = vmatmul.f32.gmra.mxu2 %v963_v50  ;;  %v3220_v1 = vpop.f32.mrf.mxu0  ;;  %v966_v10 = vld [vmem:[%s3963_s9 + $0xe8] sm:$0xff] }
 0x30c   : > { %3106 = vmatmul.f32.gmra.mxu3 %v1113_v45  ;;  %v1062_v45 = vrot.slane %v966_v10, 1  ;;  %v1206_v3 = vrot.slane %v966_v10, 2 }
 0x30d   : > { %v3355_v43 = vmax.f32 %v3218_v56, 0.0 }
 0x30e   : > { %v2898_v51 = vpop.f32.mrf.mxu2  ;;  %3267 = vmatmul.f32.gmra.mxu0 %v1257_v48 }
 0x30f   : > { %v3059_v12 = vpop.f32.mrf.mxu3  ;;  %v2899_v7 = vadd.f32 %v2898_v51, %v4904_v15  ;;  %3441 = vmatmul.f32.gmra.mxu1 %v3355_v43  ;;  %v1111_v43 = vsel %vm317_vm0, %v1061_v17, %v1062_v45 }
 0x311   : > { %v3060_v50 = vadd.f32 %v3059_v12, %v2899_v7  ;;  %v1255_v7 = vsel %vm462_vm1, %v1205_v42, %v1206_v3 }
 0x313   : > { %v3221_v6 = vadd.f32 %v3220_v1, %v3060_v50  ;;  %2948 = vmatmul.f32.gmra.mxu2 %v964_v40  ;;  %v3223_v4 = vpop.f32.mrf.mxu0  ;;  %v967_v1 = vld [vmem:[%s3963_s9 + $0xf0] sm:$0xff]  ;;  %v5603_v40 = vpop.f32.mrf.mxu1 }
 0x314   : > { %3109 = vmatmul.f32.gmra.mxu3 %v1112_v60  ;;  %v1063_v60 = vrot.slane %v967_v1, 1  ;;  %v1207_v17 = vrot.slane %v967_v1, 2 }
 0x315   : > { %v3356_v35 = vmax.f32 %v3221_v6, 0.0 }
 0x316   : > { %v2901_v15 = vpop.f32.mrf.mxu2  ;;  %3270 = vmatmul.f32.gmra.mxu0 %v1256_v54  ;;  %v1254_v42 = vsel %vm462_vm1, %v1206_v3, %v1207_v17 }
 0x317   : > { %v3062_v56 = vpop.f32.mrf.mxu3  ;;  %v2902_v48 = vadd.f32 %v2901_v15, %v4920_v23  ;;  %3444 = vmatmul.f32.gmra.mxu1 %v3356_v35  ;;  %v1110_v35 = vsel %vm317_vm0, %v1062_v45, %v1063_v60 }
 0x319   : > { %v3063_v51 = vadd.f32 %v3062_v56, %v2902_v48 }
 0x31b   : > { %v3224_v12 = vadd.f32 %v3223_v4, %v3063_v51  ;;  %2951 = vmatmul.f32.gmra.mxu2 %v965_v19  ;;  %v3226_v47 = vpop.f32.mrf.mxu0  ;;  %v968_v4 = vld [vmem:[%s3963_s9 + $0xf8] sm:$0xff] }
 0x31c   : > { %3112 = vmatmul.f32.gmra.mxu3 %v1111_v43  ;;  %v1064_v48 = vrot.slane %v968_v4, 1  ;;  %v5613_v43 = vpop.f32.mrf.mxu1  ;;  %v1208_v45 = vrot.slane %v968_v4, 2 }
 0x31d   : > { %v3357_v50 = vmax.f32 %v3224_v12, 0.0 }
 0x31e   : > { %v2904_v23 = vpop.f32.mrf.mxu2  ;;  %3273 = vmatmul.f32.gmra.mxu0 %v1255_v7 }
 0x31f   : > { %v3065_v6 = vpop.f32.mrf.mxu3  ;;  %v2905_v54 = vadd.f32 %v2904_v23, %v4942_v13  ;;  %3447 = vmatmul.f32.gmra.mxu1 %v3357_v50  ;;  %v969_v50 = vld [vmem:[%s3963_s9 + $0x100] sm:$0xff] }
 0x321   : > { %v3066_v15 = vadd.f32 %v3065_v6, %v2905_v54  ;;  %v1253_v6 = vsel %vm462_vm1, %v1207_v17, %v1208_v45  ;;  %v1065_v54 = vrot.slane %v969_v50, 1 }
 0x323   : > { %v3227_v19 = vadd.f32 %v3226_v47, %v3066_v15  ;;  %2954 = vmatmul.f32.gmra.mxu2 %v966_v10  ;;  %v3229_v56 = vpop.f32.mrf.mxu0  ;;  %v1109_v47 = vsel %vm317_vm0, %v1063_v60, %v1064_v48  ;;  %v1209_v60 = vrot.slane %v969_v50, 2 }
 0x324   : > { %3115 = vmatmul.f32.gmra.mxu3 %v1110_v35 }
 0x325   : > { %v3358_v51 = vmax.f32 %v3227_v19, 0.0 }
 0x326   : > { %v2907_v13 = vpop.f32.mrf.mxu2  ;;  %3276 = vmatmul.f32.gmra.mxu0 %v1254_v42 }
 0x327   : > { %v3068_v12 = vpop.f32.mrf.mxu3  ;;  %v2908_v7 = vadd.f32 %v2907_v13, %v4960_v44  ;;  %3450 = vmatmul.f32.gmra.mxu1 %v3358_v51  ;;  %v5621_v44 = vpop.f32.mrf.mxu1  ;;  %v970_v51 = vld [vmem:[%s3963_s9 + $0x108] sm:$0xff] }
 0x329   : > { %v3069_v10 = vadd.f32 %v3068_v12, %v2908_v7  ;;  %v1252_v12 = vsel %vm462_vm1, %v1208_v45, %v1209_v60  ;;  %v1066_v7 = vrot.slane %v970_v51, 1 }
 0x32b   : > { %v3230_v23 = vadd.f32 %v3229_v56, %v3069_v10  ;;  %2957 = vmatmul.f32.gmra.mxu2 %v967_v1  ;;  %v3232_v3 = vpop.f32.mrf.mxu0  ;;  %v1108_v56 = vsel %vm317_vm0, %v1064_v48, %v1065_v54  ;;  %v1107_v48 = vsel %vm317_vm0, %v1065_v54, %v1066_v7 }
 0x32c   : > { %3118 = vmatmul.f32.gmra.mxu3 %v1109_v47 }
 0x32d   : > { %v3359_v35 = vmax.f32 %v3230_v23, 0.0 }
 0x32e   : > { %v2910_v15 = vpop.f32.mrf.mxu2  ;;  %3279 = vmatmul.f32.gmra.mxu0 %v1253_v6  ;;  %v1210_v6 = vrot.slane %v970_v51, 2 }
 0x32f   : > { %v3071_v19 = vpop.f32.mrf.mxu3  ;;  %v2911_v42 = vadd.f32 %v2910_v15, %v4978_v62  ;;  %3453 = vmatmul.f32.gmra.mxu1 %v3359_v35  ;;  %v971_v35 = vld [vmem:[%s3963_s9 + $0x110] sm:$0xff] }
 0x330   : > { %v1211_v54 = vrot.slane %v971_v35, 2 }
 0x331   : > { %v3072_v1 = vadd.f32 %v3071_v19, %v2911_v42  ;;  %v1251_v19 = vsel %vm462_vm1, %v1209_v60, %v1210_v6  ;;  %v1067_v42 = vrot.slane %v971_v35, 1 }
 0x333   : > { %v3233_v13 = vadd.f32 %v3232_v3, %v3072_v1  ;;  %2960 = vmatmul.f32.gmra.mxu2 %v968_v4  ;;  %v3235_v17 = vpop.f32.mrf.mxu0  ;;  %v5632_v3 = vpop.f32.mrf.mxu1 }
 0x334   : > { %3121 = vmatmul.f32.gmra.mxu3 %v1108_v56 }
 0x335   : > { %v3360_v47 = vmax.f32 %v3233_v13, 0.0 }
 0x336   : > { %v2913_v10 = vpop.f32.mrf.mxu2  ;;  %3282 = vmatmul.f32.gmra.mxu0 %v1252_v12  ;;  %v1106_v12 = vsel %vm317_vm0, %v1066_v7, %v1067_v42 }
 0x337   : > { %v3074_v23 = vpop.f32.mrf.mxu3  ;;  %v2914_v62 = vadd.f32 %v2913_v10, %v4999_v22  ;;  %3456 = vmatmul.f32.gmra.mxu1 %v3360_v47 }
 0x339   : > { %v3075_v4 = vadd.f32 %v3074_v23, %v2914_v62  ;;  %v1250_v23 = vsel %vm462_vm1, %v1210_v6, %v1211_v54 }
 0x33b   : > { %v3236_v15 = vadd.f32 %v3235_v17, %v3075_v4  ;;  %2963 = vmatmul.f32.gmra.mxu2 %v969_v50  ;;  %v3238_v45 = vpop.f32.mrf.mxu0  ;;  %v972_v17 = vld [vmem:[%s3963_s9 + $0x118] sm:$0xff]  ;;  %v5641_v50 = vpop.f32.mrf.mxu1 }
 0x33c   : > { %3124 = vmatmul.f32.gmra.mxu3 %v1107_v48  ;;  %v1068_v62 = vrot.slane %v972_v17, 1  ;;  %v1212_v7 = vrot.slane %v972_v17, 2 }
 0x33d   : > { %v3361_v56 = vmax.f32 %v3236_v15, 0.0 }
 0x33e   : > { %v2916_v22 = vpop.f32.mrf.mxu2  ;;  %3285 = vmatmul.f32.gmra.mxu0 %v1251_v19  ;;  %v1105_v19 = vsel %vm317_vm0, %v1067_v42, %v1068_v62  ;;  %v1249_v6 = vsel %vm462_vm1, %v1211_v54, %v1212_v7 }
 0x33f   : > { %v3077_v1 = vpop.f32.mrf.mxu3  ;;  %v2917_v13 = vadd.f32 %v2916_v22, %v5017_v41  ;;  %3459 = vmatmul.f32.gmra.mxu1 %v3361_v56 }
 0x341   : > { %v3078_v47 = vadd.f32 %v3077_v1, %v2917_v13 }
 0x343   : > { %v3239_v10 = vadd.f32 %v3238_v45, %v3078_v47  ;;  %2966 = vmatmul.f32.gmra.mxu2 %v970_v51  ;;  %v3241_v60 = vpop.f32.mrf.mxu0  ;;  %v973_v45 = vld [vmem:[%s3963_s9 + $0x120] sm:$0xff]  ;;  %v5651_v13 = vpop.f32.mrf.mxu1 }
 0x344   : > { %3127 = vmatmul.f32.gmra.mxu3 %v1106_v12  ;;  %v1069_v1 = vrot.slane %v973_v45, 1  ;;  %v1213_v42 = vrot.slane %v973_v45, 2 }
 0x345   : > { %v3362_v48 = vmax.f32 %v3239_v10, 0.0 }
 0x346   : > { %v2919_v41 = vpop.f32.mrf.mxu2  ;;  %3288 = vmatmul.f32.gmra.mxu0 %v1250_v23  ;;  %v974_v23 = vld [vmem:[%s3963_s9 + $0x128] sm:$0xff] }
 0x347   : > { %v3080_v4 = vpop.f32.mrf.mxu3  ;;  %v2920_v15 = vadd.f32 %v2919_v41, %v5035_v18  ;;  %3462 = vmatmul.f32.gmra.mxu1 %v3362_v48  ;;  %v1248_v41 = vsel %vm462_vm1, %v1212_v7, %v1213_v42 }
 0x349   : > { %v3081_v56 = vadd.f32 %v3080_v4, %v2920_v15  ;;  %v1070_v4 = vrot.slane %v974_v23, 1 }
 0x34b   : > { %v3242_v51 = vadd.f32 %v3241_v60, %v3081_v56  ;;  %2969 = vmatmul.f32.gmra.mxu2 %v971_v35  ;;  %v3244_v22 = vpop.f32.mrf.mxu0  ;;  %v1104_v60 = vsel %vm317_vm0, %v1068_v62, %v1069_v1  ;;  %v5660_v62 = vpop.f32.mrf.mxu1 }
 0x34c   : > { %3130 = vmatmul.f32.gmra.mxu3 %v1105_v19 }
 0x34d   : > { %v3363_v12 = vmax.f32 %v3242_v51, 0.0  ;;  %v1214_v51 = vrot.slane %v974_v23, 2 }
 0x34e   : > { %v2922_v18 = vpop.f32.mrf.mxu2  ;;  %3291 = vmatmul.f32.gmra.mxu0 %v1249_v6  ;;  %v975_v6 = vld [vmem:[%s3963_s9 + $0x130] sm:$0xff] }
 0x34f   : > { %v3083_v47 = vpop.f32.mrf.mxu3  ;;  %v2923_v10 = vadd.f32 %v2922_v18, %v5056_v8  ;;  %3465 = vmatmul.f32.gmra.mxu1 %v3363_v12  ;;  %v1247_v18 = vsel %vm462_vm1, %v1213_v42, %v1214_v51 }
 0x351   : > { %v3084_v35 = vadd.f32 %v3083_v47, %v2923_v10  ;;  %v1071_v47 = vrot.slane %v975_v6, 1 }
 0x353   : > { %v3245_v48 = vadd.f32 %v3244_v22, %v3084_v35  ;;  %2972 = vmatmul.f32.gmra.mxu2 %v972_v17  ;;  %v3247_v54 = vpop.f32.mrf.mxu0  ;;  %v1103_v22 = vsel %vm317_vm0, %v1069_v1, %v1070_v4  ;;  %v1102_v1 = vsel %vm317_vm0, %v1070_v4, %v1071_v47 }
 0x354   : > { %3133 = vmatmul.f32.gmra.mxu3 %v1104_v60 }
 0x355   : > { %v3364_v15 = vmax.f32 %v3245_v48, 0.0  ;;  %v1215_v48 = vrot.slane %v975_v6, 2 }
 0x356   : > { %v2925_v19 = vpop.f32.mrf.mxu2  ;;  %3294 = vmatmul.f32.gmra.mxu0 %v1248_v41 }
 0x357   : > { %v3086_v56 = vpop.f32.mrf.mxu3  ;;  %v2926_v8 = vadd.f32 %v2925_v19, %v5074_v52  ;;  %3468 = vmatmul.f32.gmra.mxu1 %v3364_v15  ;;  %v1246_v19 = vsel %vm462_vm1, %v1214_v51, %v1215_v48 }
 0x359   : > { %v3087_v17 = vadd.f32 %v3086_v56, %v2926_v8 }
 0x35b   : > { %v3248_v12 = vadd.f32 %v3247_v54, %v3087_v17  ;;  %2975 = vmatmul.f32.gmra.mxu2 %v973_v45  ;;  %v3250_v7 = vpop.f32.mrf.mxu0  ;;  %v976_v54 = vld [vmem:[%s3963_s9 + $0x138] sm:$0xff]  ;;  %v5671_v45 = vpop.f32.mrf.mxu1 }
 0x35c   : > { %3136 = vmatmul.f32.gmra.mxu3 %v1103_v22  ;;  %v1072_v56 = vrot.slane %v976_v54, 1  ;;  %v1216_v4 = vrot.slane %v976_v54, 2 }
 0x35d   : > { %v3365_v10 = vmax.f32 %v3248_v12, 0.0 }
 0x35e   : > { %v2928_v52 = vpop.f32.mrf.mxu2  ;;  %3297 = vmatmul.f32.gmra.mxu0 %v1247_v18  ;;  %v1101_v12 = vsel %vm317_vm0, %v1071_v47, %v1072_v56 }
 0x35f   : > { %v3089_v60 = vpop.f32.mrf.mxu3  ;;  %v2929_v35 = vadd.f32 %v2928_v52, %v5092_v53  ;;  %3471 = vmatmul.f32.gmra.mxu1 %v3365_v10  ;;  %v1245_v10 = vsel %vm462_vm1, %v1215_v48, %v1216_v4 }
 0x361   : > { %v3090_v41 = vadd.f32 %v3089_v60, %v2929_v35 }
 0x363   : > { %v3251_v15 = vadd.f32 %v3250_v7, %v3090_v41  ;;  %2978 = vmatmul.f32.gmra.mxu2 %v974_v23  ;;  %v3253_v42 = vpop.f32.mrf.mxu0  ;;  %v977_v23 = vld [vmem:[%s3963_s9 + $0x140] sm:$0xff]  ;;  %v5681_v52 = vpop.f32.mrf.mxu1 }
 0x364   : > { %3139 = vmatmul.f32.gmra.mxu3 %v1102_v1  ;;  %v1073_v60 = vrot.slane %v977_v23, 1  ;;  %v1217_v41 = vrot.slane %v977_v23, 2 }
 0x365   : > { %v3366_v8 = vmax.f32 %v3251_v15, 0.0 }
 0x366   : > { %v2931_v53 = vpop.f32.mrf.mxu2  ;;  %3300 = vmatmul.f32.gmra.mxu0 %v1246_v19 }
 0x367   : > { %v3092_v22 = vpop.f32.mrf.mxu3  ;;  %v2932_v17 = vadd.f32 %v2931_v53, %v5113_v37  ;;  %3474 = vmatmul.f32.gmra.mxu1 %v3366_v8  ;;  %v1244_v8 = vsel %vm462_vm1, %v1216_v4, %v1217_v41 }
 0x369   : > { %v3093_v18 = vadd.f32 %v3092_v22, %v2932_v17 }
 0x36b   : > { %v3254_v7 = vadd.f32 %v3253_v42, %v3093_v18  ;;  %2981 = vmatmul.f32.gmra.mxu2 %v975_v6  ;;  %v3256_v51 = vpop.f32.mrf.mxu0  ;;  %v1100_v6 = vsel %vm317_vm0, %v1072_v56, %v1073_v60  ;;  %v978_v42 = vld [vmem:[%s3963_s9 + $0x148] sm:$0xff]  ;;  %v6124_v56 = vld [vmem:[#allocation5_spill] sm:$0xff] }
 0x36c   : > { %3142 = vmatmul.f32.gmra.mxu3 %v1101_v12  ;;  %v1074_v53 = vrot.slane %v978_v42, 1 }
 0x36d   : > { %v3367_v37 = vmax.f32 %v3254_v7, 0.0  ;;  %v1218_v7 = vrot.slane %v978_v42, 2 }
 0x36e   : > { %v2934_v35 = vpop.f32.mrf.mxu2  ;;  %3303 = vmatmul.f32.gmra.mxu0 %v1245_v10  ;;  %v1099_v4 = vsel %vm317_vm0, %v1073_v60, %v1074_v53  ;;  %v979_v10 = vld [vmem:[%s3963_s9 + $0x150] sm:$0xff] }
 0x36f   : > { %v3095_v1 = vpop.f32.mrf.mxu3  ;;  %v2935_v47 = vadd.f32 %v2934_v35, %v5131_v25  ;;  %3477 = vmatmul.f32.gmra.mxu1 %v3367_v37 }
 0x371   : > { %v3096_v15 = vadd.f32 %v3095_v1, %v2935_v47  ;;  %v1243_v1 = vsel %vm462_vm1, %v1217_v41, %v1218_v7 }
 0x373   : > { %v3257_v19 = vadd.f32 %v3256_v51, %v3096_v15  ;;  %2984 = vmatmul.f32.gmra.mxu2 %v976_v54  ;;  %v3259_v48 = vpop.f32.mrf.mxu0 }
 0x374   : > { %3145 = vmatmul.f32.gmra.mxu3 %v1100_v6  ;;  %v3433_v25 = vpop.f32.mrf.mxu1  ;;  %v1075_v6 = vrot.slane %v979_v10, 1 }
 0x375   : > { %v3368_v22 = vmax.f32 %v3257_v19, 0.0  ;;  %v3625_v17 = vadd.f32 %v3433_v25, %v6124_v56  ;;  %v980_v56 = vld [vmem:[%s3963_s9 + $0x158] sm:$0xff] }
 0x376   : > { %v2937_v12 = vpop.f32.mrf.mxu2  ;;  %3306 = vmatmul.f32.gmra.mxu0 %v1244_v8 }
 0x377   : > { %v3098_v18 = vpop.f32.mrf.mxu3  ;;  %3673 = vst [vmem:[%s5693_s27] sm:$0xff] %v3625_v17  ;;  %v2938_v54 = vadd.f32 %v2937_v12, %v5149_v49  ;;  %3480 = vmatmul.f32.gmra.mxu1 %v3368_v22  ;;  %v6125_v49 = vld [vmem:[#allocation6_spill] sm:$0xff] }
 0x379   : > { %v3099_v51 = vadd.f32 %v3098_v18, %v2938_v54  ;;  %v1076_v54 = vrot.slane %v980_v56, 1 }
 0x37b   : > { %v3260_v37 = vadd.f32 %v3259_v48, %v3099_v51  ;;  %2987 = vmatmul.f32.gmra.mxu2 %v977_v23  ;;  %v3262_v35 = vpop.f32.mrf.mxu0  ;;  %v1219_v48 = vrot.slane %v979_v10, 2  ;;  %v1098_v23 = vsel %vm317_vm0, %v1074_v53, %v1075_v6 }
 0x37c   : > { %3148 = vmatmul.f32.gmra.mxu3 %v1099_v4  ;;  %v3436_v47 = vpop.f32.mrf.mxu1 }
 0x37d   : > { %v3369_v15 = vmax.f32 %v3260_v37, 0.0  ;;  %v3626_v19 = vadd.f32 %v3436_v47, %v6125_v49  ;;  %v1242_v12 = vsel %vm462_vm1, %v1218_v7, %v1219_v48 }
 0x37e   : > { %v2940_v8 = vpop.f32.mrf.mxu2  ;;  %3309 = vmatmul.f32.gmra.mxu0 %v1243_v1 }
 0x37f   : > { %v3101_v25 = vpop.f32.mrf.mxu3  ;;  %3674 = vst [vmem:[%s5693_s27 + $0x8] sm:$0xff] %v3626_v19  ;;  %v2941_v60 = vadd.f32 %v2940_v8, %v5170_v0  ;;  %3483 = vmatmul.f32.gmra.mxu1 %v3369_v15  ;;  %v6126_v0 = vld [vmem:[#allocation7_spill] sm:$0xff] }
 0x380   : > { %v981_v15 = vld [vmem:[%s3963_s9 + $0x160] sm:$0xff] }
 0x381   : > { %v3102_v22 = vadd.f32 %v3101_v25, %v2941_v60  ;;  %v1077_v25 = vrot.slane %v981_v15, 1 }
 0x383   : > { %v3263_v41 = vadd.f32 %v3262_v35, %v3102_v22  ;;  %2990 = vmatmul.f32.gmra.mxu2 %v978_v42  ;;  %v3265_v17 = vpop.f32.mrf.mxu0  ;;  %v1220_v35 = vrot.slane %v980_v56, 2  ;;  %v1097_v42 = vsel %vm317_vm0, %v1075_v6, %v1076_v54 }
 0x384   : > { %3151 = vmatmul.f32.gmra.mxu3 %v1098_v23  ;;  %v3439_v18 = vpop.f32.mrf.mxu1 }
 0x385   : > { %v3370_v4 = vmax.f32 %v3263_v41, 0.0  ;;  %v3627_v51 = vadd.f32 %v3439_v18, %v6126_v0  ;;  %v1241_v19 = vsel %vm462_vm1, %v1219_v48, %v1220_v35  ;;  %v982_v18 = vld [vmem:[%s3963_s9 + $0x168] sm:$0xff] }
 0x386   : > { %v2943_v37 = vpop.f32.mrf.mxu2  ;;  %3312 = vmatmul.f32.gmra.mxu0 %v1242_v12 }
 0x387   : > { %v3104_v1 = vpop.f32.mrf.mxu3  ;;  %3675 = vst [vmem:[%s5693_s27 + $0x10] sm:$0xff] %v3627_v51  ;;  %v2944_v53 = vadd.f32 %v2943_v37, %v5188_v28  ;;  %3486 = vmatmul.f32.gmra.mxu1 %v3370_v4  ;;  %v6127_v28 = vld [vmem:[#allocation8_spill] sm:$0xff]  ;;  %v1078_v37 = vrot.slane %v982_v18, 1 }
 0x389   : > { %v3105_v47 = vadd.f32 %v3104_v1, %v2944_v53 }
 0x38b   : > { %v3266_v7 = vadd.f32 %v3265_v17, %v3105_v47  ;;  %2993 = vmatmul.f32.gmra.mxu2 %v979_v10  ;;  %v3268_v49 = vpop.f32.mrf.mxu0  ;;  %v1221_v17 = vrot.slane %v981_v15, 2  ;;  %v1096_v10 = vsel %vm317_vm0, %v1076_v54, %v1077_v25 }
 0x38c   : > { %3154 = vmatmul.f32.gmra.mxu3 %v1097_v42  ;;  %v3442_v8 = vpop.f32.mrf.mxu1 }
 0x38d   : > { %v3371_v60 = vmax.f32 %v3266_v7, 0.0  ;;  %v3628_v23 = vadd.f32 %v3442_v8, %v6127_v28  ;;  %v1240_v0 = vsel %vm462_vm1, %v1220_v35, %v1221_v17  ;;  %v1222_v7 = vrot.slane %v982_v18, 2 }
 0x38e   : > { %v2946_v22 = vpop.f32.mrf.mxu2  ;;  %3315 = vmatmul.f32.gmra.mxu0 %v1241_v19  ;;  %v983_v19 = vld [vmem:[%s3963_s9 + $0x170] sm:$0xff] }
 0x38f   : > { %v3107_v41 = vpop.f32.mrf.mxu3  ;;  %3676 = vst [vmem:[%s5693_s27 + $0x18] sm:$0xff] %v3628_v23  ;;  %v2947_v6 = vadd.f32 %v2946_v22, %v5206_v30  ;;  %3489 = vmatmul.f32.gmra.mxu1 %v3371_v60  ;;  %v6128_v30 = vld [vmem:[#allocation9_spill] sm:$0xff]  ;;  %v1239_v60 = vsel %vm462_vm1, %v1221_v17, %v1222_v7  ;;  %v1079_v23 = vrot.slane %v983_v19, 1 }
 0x391   : > { %v3108_v12 = vadd.f32 %v3107_v41, %v2947_v6 }
 0x393   : > { %v3269_v48 = vadd.f32 %v3268_v49, %v3108_v12  ;;  %2996 = vmatmul.f32.gmra.mxu2 %v980_v56  ;;  %v3271_v4 = vpop.f32.mrf.mxu0  ;;  %v1095_v56 = vsel %vm317_vm0, %v1077_v25, %v1078_v37  ;;  %v1223_v12 = vrot.slane %v983_v19, 2 }
 0x394   : > { %3157 = vmatmul.f32.gmra.mxu3 %v1096_v10  ;;  %v3445_v51 = vpop.f32.mrf.mxu1 }
 0x395   : > { %v3372_v1 = vmax.f32 %v3269_v48, 0.0  ;;  %v3629_v53 = vadd.f32 %v3445_v51, %v6128_v30  ;;  %v1238_v51 = vsel %vm462_vm1, %v1222_v7, %v1223_v12 }
 0x396   : > { %v2949_v42 = vpop.f32.mrf.mxu2  ;;  %3318 = vmatmul.f32.gmra.mxu0 %v1240_v0 }
 0x397   : > { %v3110_v47 = vpop.f32.mrf.mxu3  ;;  %3677 = vst [vmem:[%s5693_s27 + $0x20] sm:$0xff] %v3629_v53  ;;  %v2950_v54 = vadd.f32 %v2949_v42, %v5227_v39  ;;  %3492 = vmatmul.f32.gmra.mxu1 %v3372_v1  ;;  %v6129_v39 = vld [vmem:[#allocation10_spill] sm:$0xff] }
 0x399   : > { %v3111_v49 = vadd.f32 %v3110_v47, %v2950_v54 }
 0x39b   : > { %v3272_v35 = vadd.f32 %v3271_v4, %v3111_v49  ;;  %2999 = vmatmul.f32.gmra.mxu2 %v981_v15  ;;  %v3274_v8 = vpop.f32.mrf.mxu0  ;;  %v1094_v15 = vsel %vm317_vm0, %v1078_v37, %v1079_v23  ;;  %v984_v4 = vld [vmem:[%s3963_s9 + $0x178] sm:$0xff] }
 0x39c   : > { %3160 = vmatmul.f32.gmra.mxu3 %v1095_v56  ;;  %v3448_v28 = vpop.f32.mrf.mxu1  ;;  %v1080_v30 = vrot.slane %v984_v4, 1  ;;  %v1224_v56 = vrot.slane %v984_v4, 2 }
 0x39d   : > { %v3373_v22 = vmax.f32 %v3272_v35, 0.0  ;;  %v3630_v41 = vadd.f32 %v3448_v28, %v6129_v39  ;;  %v985_v35 = vld [vmem:[%s3963_s9 + $0x180] sm:$0xff] }
 0x39e   : > { %v2952_v6 = vpop.f32.mrf.mxu2  ;;  %3321 = vmatmul.f32.gmra.mxu0 %v1239_v60  ;;  %v1237_v60 = vsel %vm462_vm1, %v1223_v12, %v1224_v56 }
 0x39f   : > { %v3113_v10 = vpop.f32.mrf.mxu3  ;;  %3678 = vst [vmem:[%s5693_s27 + $0x28] sm:$0xff] %v3630_v41  ;;  %v2953_v25 = vadd.f32 %v2952_v6, %v5245_v57  ;;  %3495 = vmatmul.f32.gmra.mxu1 %v3373_v22  ;;  %v6130_v57 = vld [vmem:[#allocation11_spill] sm:$0xff]  ;;  %v1081_v22 = vrot.slane %v985_v35, 1  ;;  %v6131_v41 = vld [vmem:[#allocation12_spill] sm:$0xff] }
 0x3a1   : > { %v3114_v48 = vadd.f32 %v3113_v10, %v2953_v25 }
 0x3a3   : > { %v3275_v17 = vadd.f32 %v3274_v8, %v3114_v48  ;;  %3002 = vmatmul.f32.gmra.mxu2 %v982_v18  ;;  %v3277_v0 = vpop.f32.mrf.mxu0  ;;  %v1093_v18 = vsel %vm317_vm0, %v1079_v23, %v1080_v30  ;;  %v986_v48 = vld [vmem:[%s3963_s9 + $0x188] sm:$0xff] }
 0x3a4   : > { %3163 = vmatmul.f32.gmra.mxu3 %v1094_v15  ;;  %v3451_v1 = vpop.f32.mrf.mxu1  ;;  %v1092_v15 = vsel %vm317_vm0, %v1080_v30, %v1081_v22 }
 0x3a5   : > { %v3374_v53 = vmax.f32 %v3275_v17, 0.0  ;;  %v3631_v42 = vadd.f32 %v3451_v1, %v6130_v57  ;;  %v2801_v1 = vadd.f32 %v5436_v9, %v5290_v55  ;;  %v6132_v57 = vld [vmem:[#allocation13_spill] sm:$0xff] }
 0x3a6   : > { %v2955_v47 = vpop.f32.mrf.mxu2  ;;  %3324 = vmatmul.f32.gmra.mxu0 %v1238_v51  ;;  %v1082_v51 = vrot.slane %v986_v48, 1 }
 0x3a7   : > { %v3116_v54 = vpop.f32.mrf.mxu3  ;;  %3679 = vst [vmem:[%s5693_s27 + $0x30] sm:$0xff] %v3631_v42  ;;  %v2956_v37 = vadd.f32 %v2955_v47, %v5261_v16  ;;  %3498 = vmatmul.f32.gmra.mxu1 %v3374_v53  ;;  %v2798_v16 = vadd.f32 %v5426_v24, %v5270_v11 }
 0x3a9   : > { %v3117_v49 = vadd.f32 %v3116_v54, %v2956_v37  ;;  %v1091_v37 = vsel %vm317_vm0, %v1081_v22, %v1082_v51 }
 0x3ab   : > { %v3278_v7 = vadd.f32 %v3277_v0, %v3117_v49  ;;  %3005 = vmatmul.f32.gmra.mxu2 %v983_v19  ;;  %v3280_v8 = vpop.f32.mrf.mxu0  ;;  %v1225_v19 = vrot.slane %v985_v35, 2 }
 0x3ac   : > { %3166 = vmatmul.f32.gmra.mxu3 %v1093_v18  ;;  %v3454_v28 = vpop.f32.mrf.mxu1  ;;  %v987_v18 = vld [vmem:[%s3963_s9 + $0x190] sm:$0xff] }
 0x3ad   : > { %v3375_v39 = vmax.f32 %v3278_v7, 0.0  ;;  %v3632_v6 = vadd.f32 %v3454_v28, %v6131_v41  ;;  %v1236_v24 = vsel %vm462_vm1, %v1224_v56, %v1225_v19 }
 0x3ae   : > { %v2958_v23 = vpop.f32.mrf.mxu2  ;;  %3327 = vmatmul.f32.gmra.mxu0 %v1237_v60  ;;  %v2804_v60 = vadd.f32 %v5452_v26, %v5307_v58 }
 0x3af   : > { %v3119_v10 = vpop.f32.mrf.mxu3  ;;  %3680 = vst [vmem:[%s5693_s27 + $0x38] sm:$0xff] %v3632_v6  ;;  %v2959_v25 = vadd.f32 %v2958_v23, %v2798_v16  ;;  %3501 = vmatmul.f32.gmra.mxu1 %v3375_v39  ;;  %v6133_v16 = vld [vmem:[#allocation14_spill] sm:$0xff] }
 0x3b1   : > { %v3120_v12 = vadd.f32 %v3119_v10, %v2959_v25  ;;  %v988_v25 = vld [vmem:[%s3963_s9 + $0x198] sm:$0xff] }
 0x3b3   : > { %v3281_v17 = vadd.f32 %v3280_v8, %v3120_v12  ;;  %3008 = vmatmul.f32.gmra.mxu2 %v984_v4  ;;  %v3283_v11 = vpop.f32.mrf.mxu0  ;;  %v1226_v4 = vrot.slane %v986_v48, 2  ;;  %v1083_v8 = vrot.slane %v987_v18, 1  ;;  %v1084_v12 = vrot.slane %v988_v25, 1 }
 0x3b4   : > { %3169 = vmatmul.f32.gmra.mxu3 %v1092_v15  ;;  %v3457_v0 = vpop.f32.mrf.mxu1 }
 0x3b5   : > { %v3376_v53 = vmax.f32 %v3281_v17, 0.0  ;;  %v3633_v42 = vadd.f32 %v3457_v0, %v6132_v57  ;;  %v1235_v9 = vsel %vm462_vm1, %v1225_v19, %v1226_v4  ;;  %v1090_v23 = vsel %vm317_vm0, %v1082_v51, %v1083_v8 }
 0x3b6   : > { %v2961_v30 = vpop.f32.mrf.mxu2  ;;  %3330 = vmatmul.f32.gmra.mxu0 %v1236_v24  ;;  %v2807_v17 = vadd.f32 %v5463_v38, %v5324_v27  ;;  %v6134_v24 = vld [vmem:[#allocation15_spill] sm:$0xff]  ;;  %v1089_v57 = vsel %vm317_vm0, %v1083_v8, %v1084_v12 }
 0x3b7   : > { %v3122_v47 = vpop.f32.mrf.mxu3  ;;  %3681 = vst [vmem:[%s5693_s27 + $0x40] sm:$0xff] %v3633_v42  ;;  %v2962_v54 = vadd.f32 %v2961_v30, %v2801_v1  ;;  %3504 = vmatmul.f32.gmra.mxu1 %v3376_v53  ;;  %v989_v30 = vld [vmem:[%s3963_s9 + $0x1a0] sm:$0xff] }
 0x3b9   : > { %v3123_v56 = vadd.f32 %v3122_v47, %v2962_v54 }
 0x3bb   : > { %v3284_v49 = vadd.f32 %v3283_v11, %v3123_v56  ;;  %3011 = vmatmul.f32.gmra.mxu2 %v985_v35  ;;  %v3286_v55 = vpop.f32.mrf.mxu0  ;;  %v1227_v35 = vrot.slane %v987_v18, 2 }
 0x3bc   : > { %3172 = vmatmul.f32.gmra.mxu3 %v1091_v37  ;;  %v3460_v7 = vpop.f32.mrf.mxu1  ;;  %v2810_v37 = vadd.f32 %v5480_v36, %v5338_v5 }
 0x3bd   : > { %v3377_v28 = vmax.f32 %v3284_v49, 0.0  ;;  %v3634_v39 = vadd.f32 %v3460_v7, %v6133_v16  ;;  %v1234_v26 = vsel %vm462_vm1, %v1226_v4, %v1227_v35  ;;  %v1085_v4 = vrot.slane %v989_v30, 1  ;;  %v6135_v49 = vld [vmem:[#allocation16_spill] sm:$0xff] }
 0x3be   : > { %v2964_v22 = vpop.f32.mrf.mxu2  ;;  %3333 = vmatmul.f32.gmra.mxu0 %v1235_v9  ;;  %v990_v16 = vld [vmem:[%s3963_s9 + $0x1a8] sm:$0xff] }
 0x3bf   : > { %v3125_v41 = vpop.f32.mrf.mxu3  ;;  %3682 = vst [vmem:[%s5693_s27 + $0x48] sm:$0xff] %v3634_v39  ;;  %v2965_v6 = vadd.f32 %v2964_v22, %v2804_v60  ;;  %3507 = vmatmul.f32.gmra.mxu1 %v3377_v28  ;;  %v1088_v60 = vsel %vm317_vm0, %v1084_v12, %v1085_v4 }
 0x3c1   : > { %v3126_v10 = vadd.f32 %v3125_v41, %v2965_v6  ;;  %v1086_v41 = vrot.slane %v990_v16, 1  ;;  %v2813_v6 = vadd.f32 %v5490_v34, %v5352_v61 }
 0x3c3   : > { %v3287_v19 = vadd.f32 %v3286_v55, %v3126_v10  ;;  %3014 = vmatmul.f32.gmra.mxu2 %v986_v48  ;;  %v3289_v58 = vpop.f32.mrf.mxu0  ;;  %v1228_v48 = vrot.slane %v988_v25, 2 }
 0x3c4   : > { %3175 = vmatmul.f32.gmra.mxu3 %v1090_v23  ;;  %v3463_v15 = vpop.f32.mrf.mxu1  ;;  %v6136_v23 = vld [vmem:[#allocation17_spill] sm:$0xff] }
 0x3c5   : > { %v3378_v11 = vmax.f32 %v3287_v19, 0.0  ;;  %v3635_v0 = vadd.f32 %v3463_v15, %v6134_v24  ;;  %v1233_v38 = vsel %vm462_vm1, %v1227_v35, %v1228_v48  ;;  %v1087_v15 = vsel %vm317_vm0, %v1085_v4, %v1086_v41 }
 0x3c6   : > { %v2967_v51 = vpop.f32.mrf.mxu2  ;;  %3336 = vmatmul.f32.gmra.mxu0 %v1234_v26  ;;  %v2816_v24 = vadd.f32 %v5506_v33, %v5373_v32  ;;  %v6139_v33 = vrot.slane %v5370_v59, 2  ;;  %v2819_v4 = vadd.f32 %v5517_v21, %v5392_v20 }
 0x3c7   : > { %v3128_v1 = vpop.f32.mrf.mxu3  ;;  %3683 = vst [vmem:[%s5693_s27 + $0x50] sm:$0xff] %v3635_v0  ;;  %v2968_v53 = vadd.f32 %v2967_v51, %v2807_v17  ;;  %3510 = vmatmul.f32.gmra.mxu1 %v3378_v11  ;;  %v6137_v51 = vld [vmem:[#allocation18_spill] sm:$0xff] }
 0x3c9   : > { %v3129_v42 = vadd.f32 %v3128_v1, %v2968_v53 }
 0x3cb   : > { %v3290_v47 = vadd.f32 %v3289_v58, %v3129_v42  ;;  %3017 = vmatmul.f32.gmra.mxu2 %v987_v18  ;;  %v3292_v27 = vpop.f32.mrf.mxu0  ;;  %v1229_v18 = vrot.slane %v989_v30, 2  ;;  %v6138_v42 = vrot.slane %v5370_v59, 1 }
 0x3cc   : > { %3178 = vmatmul.f32.gmra.mxu3 %v1089_v57  ;;  %v3466_v54 = vpop.f32.mrf.mxu1 }
 0x3cd   : > { %v3379_v56 = vmax.f32 %v3290_v47, 0.0  ;;  %v3636_v55 = vadd.f32 %v3466_v54, %v6135_v49  ;;  %v1232_v36 = vsel %vm462_vm1, %v1228_v48, %v1229_v18 }
 0x3ce   : > { %v2970_v9 = vpop.f32.mrf.mxu2  ;;  %3339 = vmatmul.f32.gmra.mxu0 %v1233_v38 }
 0x3cf   : > { %v3131_v7 = vpop.f32.mrf.mxu3  ;;  %3684 = vst [vmem:[%s5693_s27 + $0x58] sm:$0xff] %v3636_v55  ;;  %v2971_v8 = vadd.f32 %v2970_v9, %v2810_v37  ;;  %3513 = vmatmul.f32.gmra.mxu1 %v3379_v56  ;;  %v6140_v56 = vld [vmem:[#allocation20_spill] sm:$0xff] }
 0x3d1   : > { %v3132_v28 = vadd.f32 %v3131_v7, %v2971_v8 }
 0x3d3   : > { %v3293_v39 = vadd.f32 %v3292_v27, %v3132_v28  ;;  %3020 = vmatmul.f32.gmra.mxu2 %v988_v25  ;;  %v3295_v5 = vpop.f32.mrf.mxu0  ;;  %v1230_v25 = vrot.slane %v990_v16, 2  ;;  %v6142_v28 = vld [vmem:[#allocation52_spill] sm:$0xff] }
 0x3d4   : > { %3181 = vmatmul.f32.gmra.mxu3 %v1088_v60  ;;  %v3469_v22 = vpop.f32.mrf.mxu1 }
 0x3d5   : > { %v3380_v35 = vmax.f32 %v3293_v39, 0.0  ;;  %v3637_v10 = vadd.f32 %v3469_v22, %v6136_v23  ;;  %v1231_v61 = vsel %vm462_vm1, %v1229_v18, %v1230_v25  ;;  %v1278_v38 = vsel %vm462_vm1, %v1230_v25, %v6139_v33  ;;  %v6148_v33 = vld [vmem:[#allocation39_spill] sm:$0xff] }
 0x3d6   : > { %v2973_v19 = vpop.f32.mrf.mxu2  ;;  %3342 = vmatmul.f32.gmra.mxu0 %v1232_v36 }
 0x3d7   : > { %v3134_v58 = vpop.f32.mrf.mxu3  ;;  %3685 = vst [vmem:[%s5693_s27 + $0x60] sm:$0xff] %v3637_v10  ;;  %v2974_v26 = vadd.f32 %v2973_v19, %v2813_v6  ;;  %3516 = vmatmul.f32.gmra.mxu1 %v3380_v35  ;;  %v6144_v10 = vld [vmem:[#allocation4_spill] sm:$0xff] }
 0x3d8   : > { %v2825_v19 = vadd.f32 %v5541_v14, %v6144_v10 }
 0x3d9   : > { %v3135_v12 = vadd.f32 %v3134_v58, %v2974_v26  ;;  %v6145_v26 = vld [vmem:[#allocation27_spill] sm:$0xff] }
 0x3db   : > { %v3296_v17 = vadd.f32 %v3295_v5, %v3135_v12  ;;  %3023 = vmatmul.f32.gmra.mxu2 %v989_v30  ;;  %v3298_v11 = vpop.f32.mrf.mxu0  ;;  %v1134_v30 = vsel %vm317_vm0, %v1086_v41, %v6138_v42  ;;  %v6143_v5 = vld [vmem:[#allocation23_spill] sm:$0xff] }
 0x3dc   : > { %3184 = vmatmul.f32.gmra.mxu3 %v1087_v15  ;;  %v3472_v34 = vpop.f32.mrf.mxu1 }
 0x3dd   : > { %v3381_v0 = vmax.f32 %v3296_v17, 0.0  ;;  %v3638_v1 = vadd.f32 %v3472_v34, %v6137_v51 }
 0x3de   : > { %v2976_v53 = vpop.f32.mrf.mxu2  ;;  %3345 = vmatmul.f32.gmra.mxu0 %v1231_v61 }
 0x3df   : > { %v3137_v48 = vpop.f32.mrf.mxu3  ;;  %3686 = vst [vmem:[%s5693_s27 + $0x68] sm:$0xff] %v3638_v1  ;;  %v2977_v57 = vadd.f32 %v2976_v53, %v2816_v24  ;;  %3519 = vmatmul.f32.gmra.mxu1 %v3381_v0  ;;  %v6146_v0 = vld [vmem:[#allocation40_spill] sm:$0xff]  ;;  %v6147_v53 = vld [vmem:[#allocation31_spill] sm:$0xff] }
 0x3e0   : > { %v2828_v51 = vadd.f32 %v5554_v63, %v6146_v0 }
 0x3e1   : > { %v3138_v47 = vadd.f32 %v3137_v48, %v2977_v57 }
 0x3e3   : > { %v3299_v27 = vadd.f32 %v3298_v11, %v3138_v47  ;;  %3026 = vmatmul.f32.gmra.mxu2 %v990_v16  ;;  %v3301_v32 = vpop.f32.mrf.mxu0  ;;  %v2822_v16 = vadd.f32 %v6142_v28, %v6141_v29  ;;  %v6152_v28 = vld [vmem:[#allocation37_spill] sm:$0xff] }
 0x3e4   : > { %3187 = vmatmul.f32.gmra.mxu3 %v1134_v30  ;;  %v3475_v54 = vpop.f32.mrf.mxu1 }
 0x3e5   : > { %v3382_v37 = vmax.f32 %v3299_v27, 0.0  ;;  %v3639_v49 = vadd.f32 %v3475_v54, %v6140_v56 }
 0x3e6   : > { %v2979_v55 = vpop.f32.mrf.mxu2  ;;  %3348 = vmatmul.f32.gmra.mxu0 %v1278_v38  ;;  %v2831_v38 = vadd.f32 %v5565_v2, %v6148_v33 }
 0x3e7   : > { %v3140_v9 = vpop.f32.mrf.mxu3  ;;  %3687 = vst [vmem:[%s5693_s27 + $0x70] sm:$0xff] %v3639_v49  ;;  %v2980_v7 = vadd.f32 %v2979_v55, %v2819_v4  ;;  %3522 = vmatmul.f32.gmra.mxu1 %v3382_v37  ;;  %v6149_v4 = vld [vmem:[#allocation35_spill] sm:$0xff] }
 0x3e9   : > { %v3141_v8 = vadd.f32 %v3140_v9, %v2980_v7 }
 0x3eb   : > { %v3302_v18 = vadd.f32 %v3301_v32, %v3141_v8  ;;  %v3304_v59 = vpop.f32.mrf.mxu0 }
 0x3ec   : > { %v3478_v60 = vpop.f32.mrf.mxu1 }
 0x3ed   : > { %v3383_v39 = vmax.f32 %v3302_v18, 0.0  ;;  %v3640_v20 = vadd.f32 %v3478_v60, %v6143_v5  ;;  %v6150_v18 = vld [vmem:[#allocation43_spill] sm:$0xff] }
 0x3ee   : > { %v2982_v21 = vpop.f32.mrf.mxu2 }
 0x3ef   : > { %v3143_v36 = vpop.f32.mrf.mxu3  ;;  %3688 = vst [vmem:[%s5693_s27 + $0x78] sm:$0xff] %v3640_v20  ;;  %v2983_v22 = vadd.f32 %v2982_v21, %v2822_v16  ;;  %3525 = vmatmul.f32.gmra.mxu1 %v3383_v39 }
 0x3f1   : > { %v3144_v41 = vadd.f32 %v3143_v36, %v2983_v22 }
 0x3f3   : > { %v3305_v6 = vadd.f32 %v3304_v59, %v3144_v41  ;;  %v3307_v35 = vpop.f32.mrf.mxu0  ;;  %v6151_v59 = vld [vmem:[#allocation56_spill] sm:$0xff] }
 0x3f4   : > { %v3481_v23 = vpop.f32.mrf.mxu1  ;;  %v2834_v60 = vadd.f32 %v6151_v59, %v6150_v18  ;;  %v6153_v41 = vld [vmem:[#allocation44_spill] sm:$0xff] }
 0x3f5   : > { %v3384_v58 = vmax.f32 %v3305_v6, 0.0  ;;  %v3641_v25 = vadd.f32 %v3481_v23, %v6145_v26  ;;  %v2837_v6 = vadd.f32 %v5583_v46, %v6153_v41  ;;  %v6154_v23 = vld [vmem:[#allocation22_spill] sm:$0xff] }
 0x3f6   : > { %v2985_v15 = vpop.f32.mrf.mxu2 }
 0x3f7   : > { %v3146_v12 = vpop.f32.mrf.mxu3  ;;  %3689 = vst [vmem:[%s5693_s27 + $0x80] sm:$0xff] %v3641_v25  ;;  %v2986_v17 = vadd.f32 %v2985_v15, %v2825_v19  ;;  %3528 = vmatmul.f32.gmra.mxu1 %v3384_v58 }
 0x3f9   : > { %v3147_v11 = vadd.f32 %v3146_v12, %v2986_v17 }
 0x3fb   : > { %v3308_v61 = vadd.f32 %v3307_v35, %v3147_v11  ;;  %v3310_v34 = vpop.f32.mrf.mxu0  ;;  %v6155_v11 = vld [vmem:[#allocation45_spill] sm:$0xff] }
 0x3fc   : > { %v3484_v24 = vpop.f32.mrf.mxu1 }
 0x3fd   : > { %v3385_v1 = vmax.f32 %v3308_v61, 0.0  ;;  %v3642_v14 = vadd.f32 %v3484_v24, %v6147_v53  ;;  %v2840_v61 = vadd.f32 %v5594_v31, %v6155_v11  ;;  %v6156_v24 = vld [vmem:[#allocation25_spill] sm:$0xff] }
 0x3fe   : > { %v2988_v48 = vpop.f32.mrf.mxu2 }
 0x3ff   : > { %v3149_v57 = vpop.f32.mrf.mxu3  ;;  %3690 = vst [vmem:[%s5693_s27 + $0x88] sm:$0xff] %v3642_v14  ;;  %v2989_v42 = vadd.f32 %v2988_v48, %v2828_v51  ;;  %3531 = vmatmul.f32.gmra.mxu1 %v3385_v1 }
 0x401   : > { %v3150_v30 = vadd.f32 %v3149_v57, %v2989_v42  ;;  %v6157_v42 = vld [vmem:[#allocation46_spill] sm:$0xff] }
 0x403   : > { %v3311_v47 = vadd.f32 %v3310_v34, %v3150_v30  ;;  %v3313_v27 = vpop.f32.mrf.mxu0  ;;  %v2843_v30 = vadd.f32 %v5603_v40, %v6157_v42 }
 0x404   : > { %v3487_v32 = vpop.f32.mrf.mxu1 }
 0x405   : > { %v3386_v54 = vmax.f32 %v3311_v47, 0.0  ;;  %v3643_v63 = vadd.f32 %v3487_v32, %v6149_v4 }
 0x406   : > { %v2991_v37 = vpop.f32.mrf.mxu2 }
 0x407   : > { %v3152_v56 = vpop.f32.mrf.mxu3  ;;  %3691 = vst [vmem:[%s5693_s27 + $0x90] sm:$0xff] %v3643_v63  ;;  %v2992_v49 = vadd.f32 %v2991_v37, %v2831_v38  ;;  %3534 = vmatmul.f32.gmra.mxu1 %v3386_v54 }
 0x409   : > { %v3153_v55 = vadd.f32 %v3152_v56, %v2992_v49  ;;  %v6159_v56 = vld [vmem:[#allocation47_spill] sm:$0xff] }
 0x40a   : > { %v2846_v49 = vadd.f32 %v5613_v43, %v6159_v56  ;;  %v6169_v56 = vld [vmem:[#allocation53_spill] sm:$0xff] }
 0x40b   : > { %v3314_v9 = vadd.f32 %v3313_v27, %v3153_v55  ;;  %v3316_v7 = vpop.f32.mrf.mxu0  ;;  %v6158_v27 = vld [vmem:[#allocation26_spill] sm:$0xff] }
 0x40c   : > { %v3490_v8 = vpop.f32.mrf.mxu1 }
 0x40d   : > { %v3387_v29 = vmax.f32 %v3314_v9, 0.0  ;;  %v3644_v2 = vadd.f32 %v3490_v8, %v6152_v28  ;;  %v6160_v9 = vld [vmem:[#allocation29_spill] sm:$0xff] }
 0x40e   : > { %v2994_v16 = vpop.f32.mrf.mxu2 }
 0x40f   : > { %v3155_v39 = vpop.f32.mrf.mxu3  ;;  %3692 = vst [vmem:[%s5693_s27 + $0x98] sm:$0xff] %v3644_v2  ;;  %v2995_v5 = vadd.f32 %v2994_v16, %v2834_v60  ;;  %3537 = vmatmul.f32.gmra.mxu1 %v3387_v29  ;;  %v6161_v2 = vld [vmem:[#allocation48_spill] sm:$0xff] }
 0x410   : > { %v2849_v16 = vadd.f32 %v5621_v44, %v6161_v2 }
 0x411   : > { %v3156_v20 = vadd.f32 %v3155_v39, %v2995_v5  ;;  %v6162_v5 = vld [vmem:[#allocation30_spill] sm:$0xff] }
 0x413   : > { %v3317_v21 = vadd.f32 %v3316_v7, %v3156_v20  ;;  %v3319_v36 = vpop.f32.mrf.mxu0 }
 0x414   : > { %v3493_v22 = vpop.f32.mrf.mxu1 }
 0x415   : > { %v3388_v35 = vmax.f32 %v3317_v21, 0.0  ;;  %v3645_v10 = vadd.f32 %v3493_v22, %v6154_v23  ;;  %v6163_v23 = vld [vmem:[#allocation49_spill] sm:$0xff] }
 0x416   : > { %v2997_v19 = vpop.f32.mrf.mxu2 }
 0x417   : > { %v3158_v58 = vpop.f32.mrf.mxu3  ;;  %3693 = vst [vmem:[%s5693_s27 + $0xa0] sm:$0xff] %v3645_v10  ;;  %v2998_v26 = vadd.f32 %v2997_v19, %v2837_v6  ;;  %3540 = vmatmul.f32.gmra.mxu1 %v3388_v35  ;;  %v2852_v10 = vadd.f32 %v5632_v3, %v6163_v23  ;;  %v6174_v23 = vld [vmem:[#allocation60_spill] sm:$0xff] }
 0x419   : > { %v3159_v25 = vadd.f32 %v3158_v58, %v2998_v26  ;;  %v6164_v58 = vld [vmem:[#allocation33_spill] sm:$0xff] }
 0x41b   : > { %v3320_v15 = vadd.f32 %v3319_v36, %v3159_v25  ;;  %v3322_v12 = vpop.f32.mrf.mxu0 }
 0x41c   : > { %v3496_v17 = vpop.f32.mrf.mxu1 }
 0x41d   : > { %v3389_v34 = vmax.f32 %v3320_v15, 0.0  ;;  %v3646_v46 = vadd.f32 %v3496_v17, %v6156_v24 }
 0x41e   : > { %v3000_v0 = vpop.f32.mrf.mxu2 }
 0x41f   : > { %v3161_v51 = vpop.f32.mrf.mxu3  ;;  %3694 = vst [vmem:[%s5693_s27 + $0xa8] sm:$0xff] %v3646_v46  ;;  %v3001_v1 = vadd.f32 %v3000_v0, %v2840_v61  ;;  %3543 = vmatmul.f32.gmra.mxu1 %v3389_v34  ;;  %v6165_v34 = vld [vmem:[#allocation50_spill] sm:$0xff] }
 0x420   : > { %v2855_v24 = vadd.f32 %v5641_v50, %v6165_v34  ;;  %v6166_v0 = vld [vmem:[#allocation34_spill] sm:$0xff] }
 0x421   : > { %v3162_v53 = vadd.f32 %v3161_v51, %v3001_v1 }
 0x423   : > { %v3323_v14 = vadd.f32 %v3322_v12, %v3162_v53  ;;  %v3325_v48 = vpop.f32.mrf.mxu0 }
 0x424   : > { %v3499_v57 = vpop.f32.mrf.mxu1 }
 0x425   : > { %v3390_v47 = vmax.f32 %v3323_v14, 0.0  ;;  %v3647_v31 = vadd.f32 %v3499_v57, %v6158_v27 }
 0x426   : > { %v3003_v32 = vpop.f32.mrf.mxu2 }
 0x427   : > { %v3164_v33 = vpop.f32.mrf.mxu3  ;;  %3695 = vst [vmem:[%s5693_s27 + $0xb0] sm:$0xff] %v3647_v31  ;;  %v3004_v38 = vadd.f32 %v3003_v32, %v2843_v30  ;;  %3546 = vmatmul.f32.gmra.mxu1 %v3390_v47  ;;  %v6167_v30 = vld [vmem:[#allocation51_spill] sm:$0xff]  ;;  %v6168_v31 = vld [vmem:[#allocation41_spill] sm:$0xff] }
 0x428   : > { %v2858_v47 = vadd.f32 %v5651_v13, %v6167_v30 }
 0x429   : > { %v3165_v54 = vadd.f32 %v3164_v33, %v3004_v38 }
 0x42b   : > { %v3326_v4 = vadd.f32 %v3325_v48, %v3165_v54  ;;  %v3328_v63 = vpop.f32.mrf.mxu0 }
 0x42c   : > { %v3502_v37 = vpop.f32.mrf.mxu1 }
 0x42d   : > { %v3391_v55 = vmax.f32 %v3326_v4, 0.0  ;;  %v3648_v40 = vadd.f32 %v3502_v37, %v6160_v9  ;;  %v6170_v9 = vld [vmem:[#allocation42_spill] sm:$0xff] }
 0x42e   : > { %v3006_v7 = vpop.f32.mrf.mxu2 }
 0x42f   : > { %v3167_v8 = vpop.f32.mrf.mxu3  ;;  %3696 = vst [vmem:[%s5693_s27 + $0xb8] sm:$0xff] %v3648_v40  ;;  %v3007_v18 = vadd.f32 %v3006_v7, %v2846_v49  ;;  %3549 = vmatmul.f32.gmra.mxu1 %v3391_v55  ;;  %v2861_v49 = vadd.f32 %v5660_v62, %v6169_v56 }
 0x431   : > { %v3168_v59 = vadd.f32 %v3167_v8, %v3007_v18 }
 0x433   : > { %v3329_v60 = vadd.f32 %v3328_v63, %v3168_v59  ;;  %v3331_v29 = vpop.f32.mrf.mxu0 }
 0x434   : > { %v3505_v28 = vpop.f32.mrf.mxu1 }
 0x435   : > { %v3392_v39 = vmax.f32 %v3329_v60, 0.0  ;;  %v3649_v43 = vadd.f32 %v3505_v28, %v6162_v5 }
 0x436   : > { %v3009_v20 = vpop.f32.mrf.mxu2 }
 0x437   : > { %v3170_v21 = vpop.f32.mrf.mxu3  ;;  %3697 = vst [vmem:[%s5693_s27 + $0xc0] sm:$0xff] %v3649_v43  ;;  %v3010_v36 = vadd.f32 %v3009_v20, %v2849_v16  ;;  %3552 = vmatmul.f32.gmra.mxu1 %v3392_v39  ;;  %v6172_v16 = vld [vmem:[#allocation59_spill] sm:$0xff] }
 0x439   : > { %v3171_v22 = vadd.f32 %v3170_v21, %v3010_v36 }
 0x43b   : > { %v3332_v41 = vadd.f32 %v3331_v29, %v3171_v22  ;;  %v3334_v6 = vpop.f32.mrf.mxu0  ;;  %v6171_v29 = vld [vmem:[#allocation54_spill] sm:$0xff] }
 0x43c   : > { %v3508_v35 = vpop.f32.mrf.mxu1  ;;  %v2864_v28 = vadd.f32 %v5671_v45, %v6171_v29  ;;  %v6188_v29 = vld [vmem:[#allocation28_spill] sm:$0xff] }
 0x43d   : > { %v3393_v19 = vmax.f32 %v3332_v41, 0.0  ;;  %v3650_v44 = vadd.f32 %v3508_v35, %v6164_v58  ;;  %v6173_v41 = vld [vmem:[#allocation55_spill] sm:$0xff] }
 0x43e   : > { %v3012_v26 = vpop.f32.mrf.mxu2 }
 0x43f   : > { %v3173_v25 = vpop.f32.mrf.mxu3  ;;  %3698 = vst [vmem:[%s5693_s27 + $0xc8] sm:$0xff] %v3650_v44  ;;  %v3013_v15 = vadd.f32 %v3012_v26, %v2852_v10  ;;  %3555 = vmatmul.f32.gmra.mxu1 %v3393_v19 }
 0x441   : > { %v3174_v12 = vadd.f32 %v3173_v25, %v3013_v15 }
 0x443   : > { %v3335_v17 = vadd.f32 %v3334_v6, %v3174_v12  ;;  %v3337_v11 = vpop.f32.mrf.mxu0  ;;  %v2867_v6 = vadd.f32 %v5681_v52, %v6173_v41 }
 0x444   : > { %v3511_v61 = vpop.f32.mrf.mxu1 }
 0x445   : > { %v3394_v46 = vmax.f32 %v3335_v17, 0.0  ;;  %v3651_v3 = vadd.f32 %v3511_v61, %v6166_v0  ;;  %v6175_v17 = vld [vmem:[#allocation61_spill] sm:$0xff]  ;;  %v6176_v61 = vld [vmem:[#allocation62_spill] sm:$0xff] }
 0x446   : > { %v3015_v51 = vpop.f32.mrf.mxu2 }
 0x447   : > { %v3176_v1 = vpop.f32.mrf.mxu3  ;;  %3699 = vst [vmem:[%s5693_s27 + $0xd0] sm:$0xff] %v3651_v3  ;;  %v3016_v53 = vadd.f32 %v3015_v51, %v2855_v24  ;;  %3558 = vmatmul.f32.gmra.mxu1 %v3394_v46  ;;  %v6177_v46 = vld [vmem:[#allocation63_spill] sm:$0xff]  ;;  %v6178_v51 = vld [vmem:[#allocation64_spill] sm:$0xff] }
 0x449   : > { %v3177_v14 = vadd.f32 %v3176_v1, %v3016_v53 }
 0x44b   : > { %v3338_v48 = vadd.f32 %v3337_v11, %v3177_v14  ;;  %v3340_v57 = vpop.f32.mrf.mxu0  ;;  %v6179_v14 = vld [vmem:[#allocation65_spill] sm:$0xff] }
 0x44c   : > { %v3514_v42 = vpop.f32.mrf.mxu1 }
 0x44d   : > { %v3395_v27 = vmax.f32 %v3338_v48, 0.0  ;;  %v3652_v50 = vadd.f32 %v3514_v42, %v6168_v31  ;;  %v6180_v42 = vld [vmem:[#allocation66_spill] sm:$0xff] }
 0x44e   : > { %v3018_v32 = vpop.f32.mrf.mxu2 }
 0x44f   : > { %v3179_v33 = vpop.f32.mrf.mxu3  ;;  %3700 = vst [vmem:[%s5693_s27 + $0xd8] sm:$0xff] %v3652_v50  ;;  %v3019_v38 = vadd.f32 %v3018_v32, %v2858_v47  ;;  %3561 = vmatmul.f32.gmra.mxu1 %v3395_v27  ;;  %v6181_v27 = vld [vmem:[#allocation67_spill] sm:$0xff]  ;;  %v6182_v32 = vld [vmem:[#allocation68_spill] sm:$0xff] }
 0x451   : > { %v3180_v54 = vadd.f32 %v3179_v33, %v3019_v38 }
 0x453   : > { %v3341_v4 = vadd.f32 %v3340_v57, %v3180_v54  ;;  %v3343_v63 = vpop.f32.mrf.mxu0  ;;  %v6183_v54 = vld [vmem:[#allocation69_spill] sm:$0xff] }
 0x454   : > { %v3517_v37 = vpop.f32.mrf.mxu1 }
 0x455   : > { %v3396_v55 = vmax.f32 %v3341_v4, 0.0  ;;  %v3653_v13 = vadd.f32 %v3517_v37, %v6170_v9  ;;  %v6184_v37 = vld [vmem:[#allocation58_spill] sm:$0xff] }
 0x456   : > { %v3021_v40 = vpop.f32.mrf.mxu2 }
 0x457   : > { %v3182_v7 = vpop.f32.mrf.mxu3  ;;  %3701 = vst [vmem:[%s5693_s27 + $0xe0] sm:$0xff] %v3653_v13  ;;  %v3022_v8 = vadd.f32 %v3021_v40, %v2861_v49  ;;  %3564 = vmatmul.f32.gmra.mxu1 %v3396_v55  ;;  %v6185_v55 = vld [vmem:[#allocation19_spill] sm:$0xff]  ;;  %v6186_v40 = vld [vmem:[#allocation21_spill] sm:$0xff] }
 0x459   : > { %v3183_v18 = vadd.f32 %v3182_v7, %v3022_v8 }
 0x45b   : > { %v3344_v59 = vadd.f32 %v3343_v63, %v3183_v18  ;;  %v3346_v62 = vpop.f32.mrf.mxu0  ;;  %v6187_v18 = vld [vmem:[#allocation24_spill] sm:$0xff] }
 0x45c   : > { %v3520_v60 = vpop.f32.mrf.mxu1 }
 0x45d   : > { %v3397_v2 = vmax.f32 %v3344_v59, 0.0  ;;  %v3654_v39 = vadd.f32 %v3520_v60, %v6172_v16  ;;  %v6189_v16 = vld [vmem:[#allocation32_spill] sm:$0xff] }
 0x45e   : > { %v3024_v5 = vpop.f32.mrf.mxu2 }
 0x45f   : > { %v3185_v43 = vpop.f32.mrf.mxu3  ;;  %3702 = vst [vmem:[%s5693_s27 + $0xe8] sm:$0xff] %v3654_v39  ;;  %v3025_v20 = vadd.f32 %v3024_v5, %v2864_v28  ;;  %3567 = vmatmul.f32.gmra.mxu1 %v3397_v2  ;;  %v6190_v5 = vld [vmem:[#allocation36_spill] sm:$0xff] }
 0x461   : > { %v3186_v21 = vadd.f32 %v3185_v43, %v3025_v20 }
 0x463   : > { %v3347_v36 = vadd.f32 %v3346_v62, %v3186_v21  ;;  %v3349_v44 = vpop.f32.mrf.mxu0  ;;  %v6191_v21 = vld [vmem:[#allocation38_spill] sm:$0xff] }
 0x464   : > { %v3523_v22 = vpop.f32.mrf.mxu1 }
 0x465   : > { %v3398_v35 = vmax.f32 %v3347_v36, 0.0  ;;  %v3655_v45 = vadd.f32 %v3523_v22, %v6174_v23 }
 0x466   : > { %v3027_v10 = vpop.f32.mrf.mxu2 }
 0x467   : > { %v3188_v19 = vpop.f32.mrf.mxu3  ;;  %3703 = vst [vmem:[%s5693_s27 + $0xf0] sm:$0xff] %v3655_v45  ;;  %v3028_v58 = vadd.f32 %v3027_v10, %v2867_v6  ;;  %3570 = vmatmul.f32.gmra.mxu1 %v3398_v35 }
 0x469   : > { %v3189_v26 = vadd.f32 %v3188_v19, %v3028_v58 }
 0x46b   : > { %v3350_v25 = vadd.f32 %v3349_v44, %v3189_v26 }
 0x46c   : > { %v3526_v15 = vpop.f32.mrf.mxu1 }
 0x46d   : > { %v3399_v12 = vmax.f32 %v3350_v25, 0.0  ;;  %v3656_v11 = vadd.f32 %v3526_v15, %v6175_v17 }
 0x46f   : > { %3704 = vst [vmem:[%s5693_s27 + $0xf8] sm:$0xff] %v3656_v11  ;;  %3573 = vmatmul.f32.gmra.mxu1 %v3399_v12 }
 0x474   : > { %v3529_v52 = vpop.f32.mrf.mxu1 }
 0x475   : > { %v3657_v34 = vadd.f32 %v3529_v52, %v6176_v61 }
 0x477   : > { %3705 = vst [vmem:[%s5693_s27 + $0x100] sm:$0xff] %v3657_v34 }
 0x47c   : > { %v3532_v24 = vpop.f32.mrf.mxu1 }
 0x47d   : > { %v3658_v0 = vadd.f32 %v3532_v24, %v6177_v46 }
 0x47f   : > { %3706 = vst [vmem:[%s5693_s27 + $0x108] sm:$0xff] %v3658_v0 }
 0x484   : > { %v3535_v3 = vpop.f32.mrf.mxu1 }
 0x485   : > { %v3659_v1 = vadd.f32 %v3535_v3, %v6178_v51 }
 0x487   : > { %3707 = vst [vmem:[%s5693_s27 + $0x110] sm:$0xff] %v3659_v1 }
 0x48c   : > { %v3538_v53 = vpop.f32.mrf.mxu1 }
 0x48d   : > { %v3660_v48 = vadd.f32 %v3538_v53, %v6179_v14 }
 0x48f   : > { %3708 = vst [vmem:[%s5693_s27 + $0x118] sm:$0xff] %v3660_v48 }
 0x494   : > { %v3541_v57 = vpop.f32.mrf.mxu1 }
 0x495   : > { %v3661_v30 = vadd.f32 %v3541_v57, %v6180_v42 }
 0x497   : > { %3709 = vst [vmem:[%s5693_s27 + $0x120] sm:$0xff] %v3661_v30 }
 0x49c   : > { %v3544_v47 = vpop.f32.mrf.mxu1 }
 0x49d   : > { %v3662_v31 = vadd.f32 %v3544_v47, %v6181_v27 }
 0x49f   : > { %3710 = vst [vmem:[%s5693_s27 + $0x128] sm:$0xff] %v3662_v31 }
 0x4a4   : > { %v3547_v50 = vpop.f32.mrf.mxu1 }
 0x4a5   : > { %v3663_v33 = vadd.f32 %v3547_v50, %v6182_v32 }
 0x4a7   : > { %3711 = vst [vmem:[%s5693_s27 + $0x130] sm:$0xff] %v3663_v33 }
 0x4ac   : > { %v3550_v38 = vpop.f32.mrf.mxu1 }
 0x4ad   : > { %v3664_v4 = vadd.f32 %v3550_v38, %v6183_v54 }
 0x4af   : > { %3712 = vst [vmem:[%s5693_s27 + $0x138] sm:$0xff] %v3664_v4 }
 0x4b4   : > { %v3553_v63 = vpop.f32.mrf.mxu1 }
 0x4b5   : > { %v3665_v56 = vadd.f32 %v3553_v63, %v6184_v37 }
 0x4b7   : > { %3713 = vst [vmem:[%s5693_s27 + $0x140] sm:$0xff] %v3665_v56 }
 0x4bc   : > { %v3556_v49 = vpop.f32.mrf.mxu1 }
 0x4bd   : > { %v3666_v9 = vadd.f32 %v3556_v49, %v6185_v55 }
 0x4bf   : > { %3714 = vst [vmem:[%s5693_s27 + $0x148] sm:$0xff] %v3666_v9 }
 0x4c4   : > { %v3559_v13 = vpop.f32.mrf.mxu1 }
 0x4c5   : > { %v3667_v7 = vadd.f32 %v3559_v13, %v6186_v40 }
 0x4c7   : > { %3715 = vst [vmem:[%s5693_s27 + $0x150] sm:$0xff] %v3667_v7 }
 0x4cc   : > { %v3562_v8 = vpop.f32.mrf.mxu1 }
 0x4cd   : > { %v3668_v59 = vadd.f32 %v3562_v8, %v6187_v18 }
 0x4cf   : > { %3716 = vst [vmem:[%s5693_s27 + $0x158] sm:$0xff] %v3668_v59 }
 0x4d4   : > { %v3565_v60 = vpop.f32.mrf.mxu1 }
 0x4d5   : > { %v3669_v28 = vadd.f32 %v3565_v60, %v6188_v29 }
 0x4d7   : > { %3717 = vst [vmem:[%s5693_s27 + $0x160] sm:$0xff] %v3669_v28 }
 0x4dc   : > { %v3568_v2 = vpop.f32.mrf.mxu1 }
 0x4dd   : > { %v3670_v39 = vadd.f32 %v3568_v2, %v6189_v16 }
 0x4df   : > { %3718 = vst [vmem:[%s5693_s27 + $0x168] sm:$0xff] %v3670_v39 }
 0x4e4   : > { %v3571_v62 = vpop.f32.mrf.mxu1 }
 0x4e5   : > { %v3671_v43 = vadd.f32 %v3571_v62, %v6190_v5 }
 0x4e7   : > { %3719 = vst [vmem:[%s5693_s27 + $0x170] sm:$0xff] %v3671_v43 }
 0x4ec   : > { %v3574_v20 = vpop.f32.mrf.mxu1 }
 0x4ed   : > { %v3672_v36 = vadd.f32 %v3574_v20, %v6191_v21 }
 0x4ef   : > { %3720 = vst [vmem:[%s5693_s27 + $0x178] sm:$0xff] %v3672_v36 }
 0x4f0 PF: > { %s13_s12 = sadd.s32 1, %s3857_s12  }
 0x4f1   : > { %p10_p4 = scmp.ge.s32.totalorder %s13_s12, 4  }
 0x4f3   :  { %12 = sbr.rel (!%p10_p4) target bundleno = 1 (0x1), region = 62 }

</bundles_post_ra>
